<compile_context>
chip_gen: v6e
topology: v6e:2x2x1
jax: 0.10.0
libtpu: 0.0.40
codegen_flags: <defaults>
</compile_context>

<pallas_src>
import functools

import numpy as np
import jax
import jax.numpy as jnp
from jax import lax
from jax.experimental import pallas as pl
from jax.experimental.pallas import tpu as pltpu  # noqa: F401

EMB = 32          # args.transformer_embed_dim
HEADS = 2         # args.transformer_heads
DEPTH = 2         # args.transformer_depth
FF_MULT = 4       # ff_hidden_mult
N_ACTIONS = 6     # q_basic output dim
LANES = 128       # TPU lane width; every in-kernel tensor is LANES wide

assert EMB <= LANES and FF_MULT * EMB <= LANES and EMB + N_ACTIONS <= LANES


# ---------------------------------------------------------------------------
# Parameter-slab layout: each parameter lives at an 8-aligned row offset of a
# (rows, 128) f32 slab, pre-padded so the kernel uses row-slices directly as
# matmul operands (no lane slicing in the kernel).
# ---------------------------------------------------------------------------
def _slab_layout():
    layout, off = {}, 0

    def add(name, rows):
        nonlocal off
        layout[name] = (off, rows)
        off += ((rows + 7) // 8) * 8

    add('w0', LANES)                               # embedding + hidden splice
    for d in range(DEPTH):
        for h in range(HEADS):
            add(f'wq{d}_{h}', LANES)
            add(f'wk{d}_{h}', LANES)
            add(f'wv{d}_{h}', LANES)
            add(f'wu{d}_{h}', LANES)
        add(f'bu{d}', 1)
        add(f'ln1w{d}', 1)
        add(f'ln1b{d}', 1)
        add(f'w1{d}', LANES)
        add(f'b1{d}', 1)
        add(f'w2{d}', LANES)
        add(f'b2{d}', 1)
        add(f'ln2w{d}', 1)
        add(f'ln2b{d}', 1)
    add('wfin', LANES)                             # toprobs + folded q_basic
    add('bfin', 1)
    return layout, off


_LAYOUT, _SLAB_ROWS = _slab_layout()


def pack_params(params, token_dim):
    """One-time packing of all UPDeepT parameters into a (rows, 128) f32 slab."""
    e, H = EMB, HEADS
    scale = np.float32(e ** -0.25)
    slab = np.zeros((_SLAB_ROWS, LANES), np.float32)

    def put(name, mat):
        off, rows = _LAYOUT[name]
        mat = np.asarray(mat, np.float32)
        assert mat.shape[0] <= rows and mat.shape[1] <= LANES, (name, mat.shape)
        slab[off:off + mat.shape[0], :mat.shape[1]] = mat

    # W0 = [tok_w ; tok_b ; I_e ; 0]: one matmul embeds token rows
    # ([token | 1 | 0]) and passes the hidden-token rows ([0 | 0 | h]) through.
    assert token_dim + 1 + e <= LANES
    w0 = np.zeros((LANES, e), np.float32)
    w0[:token_dim] = np.asarray(params['tok_w'])
    w0[token_dim] = np.asarray(params['tok_b'])[0]
    w0[token_dim + 1:token_dim + 1 + e] = np.eye(e, dtype=np.float32)
    put('w0', w0)

    for d, bp in enumerate(params['blocks']):
        wq, wk, wv = (np.asarray(bp[k]) for k in ('wq', 'wk', 'wv'))
        wu = np.asarray(bp['wu'])
        for h in range(H):
            put(f'wq{d}_{h}', wq[:, h * e:(h + 1) * e] * scale)   # e**-0.25 folded in
            put(f'wk{d}_{h}', wk[:, h * e:(h + 1) * e] * scale)
            put(f'wv{d}_{h}', wv[:, h * e:(h + 1) * e])
            put(f'wu{d}_{h}', wu[h * e:(h + 1) * e, :])
        put(f'bu{d}', bp['bu'])
        put(f'ln1w{d}', bp['ln1w'])
        put(f'ln1b{d}', bp['ln1b'])
        put(f'w1{d}', bp['w1'])
        put(f'b1{d}', bp['b1'])
        put(f'w2{d}', bp['w2'])
        put(f'b2{d}', bp['b2'])
        put(f'ln2w{d}', bp['ln2w'])
        put(f'ln2b{d}', bp['ln2b'])

    # Fused final projection: cols [0,e) = toprobs, cols [e,e+6) = q_basic o toprobs.
    top_w, top_b = np.asarray(params['top_w']), np.asarray(params['top_b'])
    q_w, q_b = np.asarray(params['q_w']), np.asarray(params['q_b'])
    wfin = np.zeros((LANES, LANES), np.float32)
    wfin[:e, :e] = top_w
    wfin[:e, e:e + N_ACTIONS] = top_w @ q_w
    bfin = np.zeros((1, LANES), np.float32)
    bfin[0, :e] = top_b[0]
    bfin[0, e:e + N_ACTIONS] = top_b[0] @ q_w + q_b[0]
    put('wfin', wfin)
    put('bfin', bfin)
    return jnp.asarray(slab)


# ---------------------------------------------------------------------------
# Single fused kernel: embedding -> DEPTH transformer blocks -> toprobs/q.
# ---------------------------------------------------------------------------
def _updeept_kernel(x0_ref, slab_ref, y_ref, *, t):
    e = EMB
    n = x0_ref.shape[0]          # B * t rows (tokens + hidden token, flattened)

    def W(name):
        off, rows = _LAYOUT[name]
        return slab_ref[off:off + rows, :]

    # Block-diagonal additive attention mask generated in-kernel: row r may
    # attend to col c iff r // t == c // t.  Integer division is done with a
    # multiply-shift (exact for r < 2**shift / t; vector int div is avoided).
    shift = 20
    mul = ((1 << shift) + t - 1) // t
    row = lax.broadcasted_iota(jnp.int32, (n, n), 0)
    col = lax.broadcasted_iota(jnp.int32, (n, n), 1)
    same = ((row * mul) >> shift) == ((col * mul) >> shift)
    neg = jnp.where(same, jnp.float32(0.0), jnp.float32(-1e9))

    # Lane mask selecting the e real columns of the 128-wide activations.
    col_mask = (lax.broadcasted_iota(jnp.int32, (1, LANES), 1) < e).astype(jnp.float32)
    inv_e = jnp.float32(1.0 / e)

    def layer_norm(x, wname, bname, eps=1e-5):
        mu = jnp.sum(x, axis=-1, keepdims=True) * inv_e        # pad cols are zero
        d = (x - mu) * col_mask
        var = jnp.sum(d * d, axis=-1, keepdims=True) * inv_e
        return d * lax.rsqrt(var + eps) * W(wname) + W(bname)  # pads stay zero

    # Token embedding + bias + hidden pass-through in one matmul (see W0).
    x = jnp.dot(x0_ref[...], W('w0'), preferred_element_type=jnp.float32)   # (n,128)

    for d_i in range(DEPTH):
        att = W(f'bu{d_i}')
        for h in range(HEADS):                     # unrolled at trace time
            q = jnp.dot(x, W(f'wq{d_i}_{h}'), preferred_element_type=jnp.float32)
            k = jnp.dot(x, W(f'wk{d_i}_{h}'), preferred_element_type=jnp.float32)
            v = jnp.dot(x, W(f'wv{d_i}_{h}'), preferred_element_type=jnp.float32)
            # (n, n) logits; padded lanes of q/k are zero so the 128-wide
            # contraction equals the e-wide one.
            dot = lax.dot_general(q, k, (((1,), (1,)), ((), ())),
                                  preferred_element_type=jnp.float32)
            dot = dot + neg
            dot = dot - jnp.max(dot, axis=-1, keepdims=True)
            p = jnp.exp(dot)                       # cross-batch entries -> exactly 0
            p = p / jnp.sum(p, axis=-1, keepdims=True)
            ctx = jnp.dot(p, v, preferred_element_type=jnp.float32)        # (n,128)
            att = att + jnp.dot(ctx, W(f'wu{d_i}_{h}'),
                                preferred_element_type=jnp.float32)
        x1 = layer_norm(att + x, f'ln1w{d_i}', f'ln1b{d_i}')
        ff = jnp.maximum(
            jnp.dot(x1, W(f'w1{d_i}'), preferred_element_type=jnp.float32)
            + W(f'b1{d_i}'), 0.0)
        ff = jnp.dot(ff, W(f'w2{d_i}'), preferred_element_type=jnp.float32) + W(f'b2{d_i}')
        x = layer_norm(ff + x1, f'ln2w{d_i}', f'ln2b{d_i}')

    # Fused toprobs + q_basic: single lane-dense (n, 128) store.
    y_ref[...] = jnp.dot(x, W('wfin'), preferred_element_type=jnp.float32) + W('bfin')


# ---------------------------------------------------------------------------
# Parameter init (deterministic, PyTorch-Linear-style uniform bounds).
# Weights are stored as (in_features, out_features); per-head Q/K/V weights
# are column-split by head, matching Linear(emb, emb*heads).view(..., h, e).
# ---------------------------------------------------------------------------
def init_params(key, token_dim):
    e, H = EMB, HEADS
    keys = iter(jax.random.split(key, 64))

    def lin(kin, kout):
        bound = 1.0 / (kin ** 0.5)
        w = jax.random.uniform(next(keys), (kin, kout), jnp.float32, -bound, bound)
        b = jax.random.uniform(next(keys), (1, kout), jnp.float32, -bound, bound)
        return w, b

    params = {}
    params['tok_w'], params['tok_b'] = lin(token_dim, e)

    blocks = []
    for _ in range(DEPTH):
        bp = {}
        qb = 1.0 / (e ** 0.5)
        bp['wq'] = jax.random.uniform(next(keys), (e, H * e), jnp.float32, -qb, qb)
        bp['wk'] = jax.random.uniform(next(keys), (e, H * e), jnp.float32, -qb, qb)
        bp['wv'] = jax.random.uniform(next(keys), (e, H * e), jnp.float32, -qb, qb)
        ub = 1.0 / ((H * e) ** 0.5)
        bp['wu'] = jax.random.uniform(next(keys), (H * e, e), jnp.float32, -ub, ub)
        bp['bu'] = jax.random.uniform(next(keys), (1, e), jnp.float32, -ub, ub)
        bp['ln1w'] = jnp.ones((1, e), jnp.float32)
        bp['ln1b'] = jnp.zeros((1, e), jnp.float32)
        bp['w1'], bp['b1'] = lin(e, FF_MULT * e)
        bp['w2'], bp['b2'] = lin(FF_MULT * e, e)
        bp['ln2w'] = jnp.ones((1, e), jnp.float32)
        bp['ln2b'] = jnp.zeros((1, e), jnp.float32)
        blocks.append(bp)
    params['blocks'] = blocks

    params['top_w'], params['top_b'] = lin(e, e)          # toprobs
    params['q_w'], params['q_b'] = lin(e, N_ACTIONS)      # q_basic
    return params


# ---------------------------------------------------------------------------
# UPDeepT forward (mask=None, gate='v1', no MoE)
# ---------------------------------------------------------------------------
def updeept_forward(inputs, hidden_state, slab, *, n_enemies):
    B, T_in, token_dim = inputs.shape
    t = T_in + 1                    # observation tokens + appended hidden token
    N = B * t

    # --- prologue (pure data layout): token rows are [token | 1 | 0...] and
    # hidden rows are [0 | 0 | hidden | 0...], padded to 128 lanes so the
    # kernel input DMA and the embedding matmul are lane-dense.
    h0 = hidden_state.reshape(B, 1, EMB).astype(jnp.float32)
    top = jnp.concatenate(
        [inputs.astype(jnp.float32),
         jnp.ones((B, T_in, 1), jnp.float32),
         jnp.zeros((B, T_in, LANES - token_dim - 1), jnp.float32)], axis=-1)
    bot = jnp.concatenate(
        [jnp.zeros((B, 1, token_dim + 1), jnp.float32), h0,
         jnp.zeros((B, 1, LANES - token_dim - 1 - EMB), jnp.float32)], axis=-1)
    x0 = jnp.concatenate([top, bot], axis=1).reshape(N, LANES)

    matmuls_128 = 2 + DEPTH * (4 * HEADS + 2)       # (N,128)@(128,128) matmuls
    cost = pl.CostEstimate(
        flops=2 * N * LANES * LANES * matmuls_128
              + 2 * 2 * DEPTH * HEADS * N * N * LANES,
        transcendentals=DEPTH * HEADS * N * N + 4 * N,
        bytes_accessed=4 * (2 * N * LANES + _SLAB_ROWS * LANES))

    y = pl.pallas_call(
        functools.partial(_updeept_kernel, t=t),
        out_shape=jax.ShapeDtypeStruct((N, LANES), jnp.float32),
        cost_estimate=cost,
    )(x0, slab)

    # --- epilogue (slices / mean / concat only, no real compute) ---
    out = y[:, :EMB].reshape(B, t, EMB)                          # toprobs output
    q_all = y[:, EMB:EMB + N_ACTIONS].reshape(B, t, N_ACTIONS)   # q_basic(toprobs)
    q_basic_actions = q_all[:, 0, :]                             # (B, 6)
    q_enemies = jnp.mean(q_all[:, 1:1 + n_enemies, :], axis=-1)  # (B, n_enemies)
    q = jnp.concatenate([q_basic_actions, q_enemies], axis=1)
    h = out[:, -1:, :]                                           # (B, 1, emb)
    all_stats = {}                                               # no MoE -> empty
    return q, h, all_stats


if __name__ == "__main__":
    n_agents, n_enemies, bs = 3, 4, 2
    token_dim = 8
    B = bs * n_agents
    T_in = 1 + n_enemies + (n_agents - 1)   # own + enemies + allies tokens

    key = jax.random.PRNGKey(0)
    k_in, k_h, k_p = jax.random.split(key, 3)
    inputs = jax.random.normal(k_in, (B, T_in, token_dim), jnp.float32)
    hidden_state = jax.random.normal(k_h, (B, EMB), jnp.float32)
    params = init_params(k_p, token_dim)
    slab = pack_params(params, token_dim)       # one-time parameter packing

    fwd = jax.jit(functools.partial(updeept_forward, n_enemies=n_enemies))
    q, h, stats = fwd(inputs, hidden_state, slab)
    jax.block_until_ready((q, h))

    assert q.shape == (B, N_ACTIONS + n_enemies), q.shape
    assert h.shape == (B, 1, EMB), h.shape
    assert bool(jnp.all(jnp.isfinite(q))) and bool(jnp.all(jnp.isfinite(h)))
    print("KERNEL_OK")
</pallas_src>

<mosaic_0001>
module attributes {stable_mosaic.version = 11 : i64} {
  func.func @_updeept_kernel(%arg0: memref<48x128xf32, #tpu.memory_space<vmem>>, %arg1: memref<2936x128xf32, #tpu.memory_space<vmem>>, %arg2: memref<48x128xf32, #tpu.memory_space<vmem>>) attributes {dimension_semantics = [], scalar_prefetch = 0 : i64, scratch_operands = 0 : i64, tpu.core_type = #tpu.core_type<tc>} {
    %0 = tpu.iota {dimensions = array<i32: 0>} : vector<48x48xi32>
    %1 = tpu.iota {dimensions = array<i32: 1>} : vector<48x48xi32>
    %c131072_i32 = arith.constant 131072 : i32
    %2 = vector.broadcast %c131072_i32 : i32 to vector<48x48xi32>
    %3 = arith.muli %0, %2 : vector<48x48xi32>
    %c20_i32 = arith.constant 20 : i32
    %4 = vector.broadcast %c20_i32 : i32 to vector<48x48xi32>
    %5 = arith.shrsi %3, %4 : vector<48x48xi32>
    %c131072_i32_0 = arith.constant 131072 : i32
    %6 = vector.broadcast %c131072_i32_0 : i32 to vector<48x48xi32>
    %7 = arith.muli %1, %6 : vector<48x48xi32>
    %c20_i32_1 = arith.constant 20 : i32
    %8 = vector.broadcast %c20_i32_1 : i32 to vector<48x48xi32>
    %9 = arith.shrsi %7, %8 : vector<48x48xi32>
    %10 = arith.cmpi eq, %5, %9 : vector<48x48xi32>
    %cst = arith.constant 0.000000e+00 : f32
    %cst_2 = arith.constant -1.000000e+09 : f32
    %11 = vector.broadcast %cst : f32 to vector<48x48xf32>
    %12 = vector.broadcast %cst_2 : f32 to vector<48x48xf32>
    %13 = arith.select %10, %11, %12 : vector<48x48xi1>, vector<48x48xf32>
    %14 = tpu.iota {dimensions = array<i32: 1>} : vector<1x128xi32>
    %c32_i32 = arith.constant 32 : i32
    %15 = vector.broadcast %c32_i32 : i32 to vector<1x128xi32>
    %16 = arith.cmpi slt, %14, %15 : vector<1x128xi32>
    %17 = arith.extui %16 : vector<1x128xi1> to vector<1x128xi32>
    %18 = arith.sitofp %17 : vector<1x128xi32> to vector<1x128xf32>
    %c0 = arith.constant 0 : index
    %c0_3 = arith.constant 0 : index
    %19 = vector.load %arg0[%c0, %c0_3] : memref<48x128xf32, #tpu.memory_space<vmem>>, vector<48x128xf32>
    %c0_4 = arith.constant 0 : index
    %c0_5 = arith.constant 0 : index
    %20 = vector.load %arg1[%c0_4, %c0_5] : memref<2936x128xf32, #tpu.memory_space<vmem>>, vector<128x128xf32>
    %cst_6 = arith.constant dense<0.000000e+00> : vector<48x128xf32>
    %21 = tpu.matmul %19, %20, %cst_6 {dimension_numbers = #tpu.dot_dimension_numbers<[1], [0], [0], [1], [0, 0, 1, 1], [], []>} : vector<48x128xf32>, vector<128x128xf32>, vector<48x128xf32> -> vector<48x128xf32>
    %c1152 = arith.constant 1152 : index
    %c0_7 = arith.constant 0 : index
    %22 = vector.load %arg1[%c1152, %c0_7] : memref<2936x128xf32, #tpu.memory_space<vmem>>, vector<1x128xf32>
    %c128 = arith.constant 128 : index
    %c0_8 = arith.constant 0 : index
    %23 = vector.load %arg1[%c128, %c0_8] : memref<2936x128xf32, #tpu.memory_space<vmem>>, vector<128x128xf32>
    %cst_9 = arith.constant dense<0.000000e+00> : vector<48x128xf32>
    %24 = tpu.matmul %21, %23, %cst_9 {dimension_numbers = #tpu.dot_dimension_numbers<[1], [0], [0], [1], [0, 0, 1, 1], [], []>} : vector<48x128xf32>, vector<128x128xf32>, vector<48x128xf32> -> vector<48x128xf32>
    %c256 = arith.constant 256 : index
    %c0_10 = arith.constant 0 : index
    %25 = vector.load %arg1[%c256, %c0_10] : memref<2936x128xf32, #tpu.memory_space<vmem>>, vector<128x128xf32>
    %cst_11 = arith.constant dense<0.000000e+00> : vector<48x128xf32>
    %26 = tpu.matmul %21, %25, %cst_11 {dimension_numbers = #tpu.dot_dimension_numbers<[1], [0], [0], [1], [0, 0, 1, 1], [], []>} : vector<48x128xf32>, vector<128x128xf32>, vector<48x128xf32> -> vector<48x128xf32>
    %c384 = arith.constant 384 : index
    %c0_12 = arith.constant 0 : index
    %27 = vector.load %arg1[%c384, %c0_12] : memref<2936x128xf32, #tpu.memory_space<vmem>>, vector<128x128xf32>
    %cst_13 = arith.constant dense<0.000000e+00> : vector<48x128xf32>
    %28 = tpu.matmul %21, %27, %cst_13 {dimension_numbers = #tpu.dot_dimension_numbers<[1], [0], [0], [1], [0, 0, 1, 1], [], []>} : vector<48x128xf32>, vector<128x128xf32>, vector<48x128xf32> -> vector<48x128xf32>
    %cst_14 = arith.constant dense<0.000000e+00> : vector<48x48xf32>
    %29 = tpu.matmul %24, %26, %cst_14 {dimension_numbers = #tpu.dot_dimension_numbers<[1], [1], [0], [0], [0, 0, 1, 0], [], []>} : vector<48x128xf32>, vector<48x128xf32>, vector<48x48xf32> -> vector<48x48xf32>
    %30 = arith.addf %29, %13 : vector<48x48xf32>
    %cst_15 = arith.constant dense<0xFF800000> : vector<48xf32>
    %31 = vector.multi_reduction <maximumf>, %30, %cst_15 [1] : vector<48x48xf32> to vector<48xf32>
    %32 = vector.shape_cast %31 : vector<48xf32> to vector<48x1xf32>
    %33 = vector.broadcast %32 : vector<48x1xf32> to vector<48x48xf32>
    %34 = arith.subf %30, %33 : vector<48x48xf32>
    %35 = math.exp %34 : vector<48x48xf32>
    %cst_16 = arith.constant dense<0.000000e+00> : vector<48xf32>
    %36 = vector.multi_reduction <add>, %35, %cst_16 [1] : vector<48x48xf32> to vector<48xf32>
    %37 = vector.shape_cast %36 : vector<48xf32> to vector<48x1xf32>
    %38 = vector.broadcast %37 : vector<48x1xf32> to vector<48x48xf32>
    %39 = arith.divf %35, %38 : vector<48x48xf32>
    %cst_17 = arith.constant dense<0.000000e+00> : vector<48x128xf32>
    %40 = tpu.matmul %39, %28, %cst_17 {dimension_numbers = #tpu.dot_dimension_numbers<[1], [0], [0], [1], [0, 0, 1, 1], [], []>} : vector<48x48xf32>, vector<48x128xf32>, vector<48x128xf32> -> vector<48x128xf32>
    %c512 = arith.constant 512 : index
    %c0_18 = arith.constant 0 : index
    %41 = vector.load %arg1[%c512, %c0_18] : memref<2936x128xf32, #tpu.memory_space<vmem>>, vector<128x128xf32>
    %cst_19 = arith.constant dense<0.000000e+00> : vector<48x128xf32>
    %42 = tpu.matmul %40, %41, %cst_19 {dimension_numbers = #tpu.dot_dimension_numbers<[1], [0], [0], [1], [0, 0, 1, 1], [], []>} : vector<48x128xf32>, vector<128x128xf32>, vector<48x128xf32> -> vector<48x128xf32>
    %43 = vector.broadcast %22 : vector<1x128xf32> to vector<48x128xf32>
    %44 = arith.addf %43, %42 : vector<48x128xf32>
    %c640 = arith.constant 640 : index
    %c0_20 = arith.constant 0 : index
    %45 = vector.load %arg1[%c640, %c0_20] : memref<2936x128xf32, #tpu.memory_space<vmem>>, vector<128x128xf32>
    %cst_21 = arith.constant dense<0.000000e+00> : vector<48x128xf32>
    %46 = tpu.matmul %21, %45, %cst_21 {dimension_numbers = #tpu.dot_dimension_numbers<[1], [0], [0], [1], [0, 0, 1, 1], [], []>} : vector<48x128xf32>, vector<128x128xf32>, vector<48x128xf32> -> vector<48x128xf32>
    %c768 = arith.constant 768 : index
    %c0_22 = arith.constant 0 : index
    %47 = vector.load %arg1[%c768, %c0_22] : memref<2936x128xf32, #tpu.memory_space<vmem>>, vector<128x128xf32>
    %cst_23 = arith.constant dense<0.000000e+00> : vector<48x128xf32>
    %48 = tpu.matmul %21, %47, %cst_23 {dimension_numbers = #tpu.dot_dimension_numbers<[1], [0], [0], [1], [0, 0, 1, 1], [], []>} : vector<48x128xf32>, vector<128x128xf32>, vector<48x128xf32> -> vector<48x128xf32>
    %c896 = arith.constant 896 : index
    %c0_24 = arith.constant 0 : index
    %49 = vector.load %arg1[%c896, %c0_24] : memref<2936x128xf32, #tpu.memory_space<vmem>>, vector<128x128xf32>
    %cst_25 = arith.constant dense<0.000000e+00> : vector<48x128xf32>
    %50 = tpu.matmul %21, %49, %cst_25 {dimension_numbers = #tpu.dot_dimension_numbers<[1], [0], [0], [1], [0, 0, 1, 1], [], []>} : vector<48x128xf32>, vector<128x128xf32>, vector<48x128xf32> -> vector<48x128xf32>
    %cst_26 = arith.constant dense<0.000000e+00> : vector<48x48xf32>
    %51 = tpu.matmul %46, %48, %cst_26 {dimension_numbers = #tpu.dot_dimension_numbers<[1], [1], [0], [0], [0, 0, 1, 0], [], []>} : vector<48x128xf32>, vector<48x128xf32>, vector<48x48xf32> -> vector<48x48xf32>
    %52 = arith.addf %51, %13 : vector<48x48xf32>
    %cst_27 = arith.constant dense<0xFF800000> : vector<48xf32>
    %53 = vector.multi_reduction <maximumf>, %52, %cst_27 [1] : vector<48x48xf32> to vector<48xf32>
    %54 = vector.shape_cast %53 : vector<48xf32> to vector<48x1xf32>
    %55 = vector.broadcast %54 : vector<48x1xf32> to vector<48x48xf32>
    %56 = arith.subf %52, %55 : vector<48x48xf32>
    %57 = math.exp %56 : vector<48x48xf32>
    %cst_28 = arith.constant dense<0.000000e+00> : vector<48xf32>
    %58 = vector.multi_reduction <add>, %57, %cst_28 [1] : vector<48x48xf32> to vector<48xf32>
    %59 = vector.shape_cast %58 : vector<48xf32> to vector<48x1xf32>
    %60 = vector.broadcast %59 : vector<48x1xf32> to vector<48x48xf32>
    %61 = arith.divf %57, %60 : vector<48x48xf32>
    %cst_29 = arith.constant dense<0.000000e+00> : vector<48x128xf32>
    %62 = tpu.matmul %61, %50, %cst_29 {dimension_numbers = #tpu.dot_dimension_numbers<[1], [0], [0], [1], [0, 0, 1, 1], [], []>} : vector<48x48xf32>, vector<48x128xf32>, vector<48x128xf32> -> vector<48x128xf32>
    %c1024 = arith.constant 1024 : index
    %c0_30 = arith.constant 0 : index
    %63 = vector.load %arg1[%c1024, %c0_30] : memref<2936x128xf32, #tpu.memory_space<vmem>>, vector<128x128xf32>
    %cst_31 = arith.constant dense<0.000000e+00> : vector<48x128xf32>
    %64 = tpu.matmul %62, %63, %cst_31 {dimension_numbers = #tpu.dot_dimension_numbers<[1], [0], [0], [1], [0, 0, 1, 1], [], []>} : vector<48x128xf32>, vector<128x128xf32>, vector<48x128xf32> -> vector<48x128xf32>
    %65 = arith.addf %44, %64 : vector<48x128xf32>
    %66 = arith.addf %65, %21 : vector<48x128xf32>
    %cst_32 = arith.constant dense<0.000000e+00> : vector<48xf32>
    %67 = vector.multi_reduction <add>, %66, %cst_32 [1] : vector<48x128xf32> to vector<48xf32>
    %68 = vector.shape_cast %67 : vector<48xf32> to vector<48x1xf32>
    %cst_33 = arith.constant 3.125000e-02 : f32
    %69 = vector.broadcast %cst_33 : f32 to vector<48x1xf32>
    %70 = arith.mulf %68, %69 : vector<48x1xf32>
    %71 = vector.broadcast %70 : vector<48x1xf32> to vector<48x128xf32>
    %72 = arith.subf %66, %71 : vector<48x128xf32>
    %73 = vector.broadcast %18 : vector<1x128xf32> to vector<48x128xf32>
    %74 = arith.mulf %72, %73 : vector<48x128xf32>
    %75 = arith.mulf %74, %74 : vector<48x128xf32>
    %cst_34 = arith.constant dense<0.000000e+00> : vector<48xf32>
    %76 = vector.multi_reduction <add>, %75, %cst_34 [1] : vector<48x128xf32> to vector<48xf32>
    %77 = vector.shape_cast %76 : vector<48xf32> to vector<48x1xf32>
    %cst_35 = arith.constant 3.125000e-02 : f32
    %78 = vector.broadcast %cst_35 : f32 to vector<48x1xf32>
    %79 = arith.mulf %77, %78 : vector<48x1xf32>
    %cst_36 = arith.constant 9.99999974E-6 : f32
    %80 = vector.broadcast %cst_36 : f32 to vector<48x1xf32>
    %81 = arith.addf %79, %80 : vector<48x1xf32>
    %82 = math.rsqrt %81 : vector<48x1xf32>
    %83 = vector.broadcast %82 : vector<48x1xf32> to vector<48x128xf32>
    %84 = arith.mulf %74, %83 : vector<48x128xf32>
    %c1160 = arith.constant 1160 : index
    %c0_37 = arith.constant 0 : index
    %85 = vector.load %arg1[%c1160, %c0_37] : memref<2936x128xf32, #tpu.memory_space<vmem>>, vector<1x128xf32>
    %86 = vector.broadcast %85 : vector<1x128xf32> to vector<48x128xf32>
    %87 = arith.mulf %84, %86 : vector<48x128xf32>
    %c1168 = arith.constant 1168 : index
    %c0_38 = arith.constant 0 : index
    %88 = vector.load %arg1[%c1168, %c0_38] : memref<2936x128xf32, #tpu.memory_space<vmem>>, vector<1x128xf32>
    %89 = vector.broadcast %88 : vector<1x128xf32> to vector<48x128xf32>
    %90 = arith.addf %87, %89 : vector<48x128xf32>
    %c1176 = arith.constant 1176 : index
    %c0_39 = arith.constant 0 : index
    %91 = vector.load %arg1[%c1176, %c0_39] : memref<2936x128xf32, #tpu.memory_space<vmem>>, vector<128x128xf32>
    %cst_40 = arith.constant dense<0.000000e+00> : vector<48x128xf32>
    %92 = tpu.matmul %90, %91, %cst_40 {dimension_numbers = #tpu.dot_dimension_numbers<[1], [0], [0], [1], [0, 0, 1, 1], [], []>} : vector<48x128xf32>, vector<128x128xf32>, vector<48x128xf32> -> vector<48x128xf32>
    %c1304 = arith.constant 1304 : index
    %c0_41 = arith.constant 0 : index
    %93 = vector.load %arg1[%c1304, %c0_41] : memref<2936x128xf32, #tpu.memory_space<vmem>>, vector<1x128xf32>
    %94 = vector.broadcast %93 : vector<1x128xf32> to vector<48x128xf32>
    %95 = arith.addf %92, %94 : vector<48x128xf32>
    %cst_42 = arith.constant 0.000000e+00 : f32
    %96 = vector.broadcast %cst_42 : f32 to vector<48x128xf32>
    %97 = arith.maximumf %95, %96 : vector<48x128xf32>
    %c1312 = arith.constant 1312 : index
    %c0_43 = arith.constant 0 : index
    %98 = vector.load %arg1[%c1312, %c0_43] : memref<2936x128xf32, #tpu.memory_space<vmem>>, vector<128x128xf32>
    %cst_44 = arith.constant dense<0.000000e+00> : vector<48x128xf32>
    %99 = tpu.matmul %97, %98, %cst_44 {dimension_numbers = #tpu.dot_dimension_numbers<[1], [0], [0], [1], [0, 0, 1, 1], [], []>} : vector<48x128xf32>, vector<128x128xf32>, vector<48x128xf32> -> vector<48x128xf32>
    %c1440 = arith.constant 1440 : index
    %c0_45 = arith.constant 0 : index
    %100 = vector.load %arg1[%c1440, %c0_45] : memref<2936x128xf32, #tpu.memory_space<vmem>>, vector<1x128xf32>
    %101 = vector.broadcast %100 : vector<1x128xf32> to vector<48x128xf32>
    %102 = arith.addf %99, %101 : vector<48x128xf32>
    %103 = arith.addf %102, %90 : vector<48x128xf32>
    %cst_46 = arith.constant dense<0.000000e+00> : vector<48xf32>
    %104 = vector.multi_reduction <add>, %103, %cst_46 [1] : vector<48x128xf32> to vector<48xf32>
    %105 = vector.shape_cast %104 : vector<48xf32> to vector<48x1xf32>
    %cst_47 = arith.constant 3.125000e-02 : f32
    %106 = vector.broadcast %cst_47 : f32 to vector<48x1xf32>
    %107 = arith.mulf %105, %106 : vector<48x1xf32>
    %108 = vector.broadcast %107 : vector<48x1xf32> to vector<48x128xf32>
    %109 = arith.subf %103, %108 : vector<48x128xf32>
    %110 = vector.broadcast %18 : vector<1x128xf32> to vector<48x128xf32>
    %111 = arith.mulf %109, %110 : vector<48x128xf32>
    %112 = arith.mulf %111, %111 : vector<48x128xf32>
    %cst_48 = arith.constant dense<0.000000e+00> : vector<48xf32>
    %113 = vector.multi_reduction <add>, %112, %cst_48 [1] : vector<48x128xf32> to vector<48xf32>
    %114 = vector.shape_cast %113 : vector<48xf32> to vector<48x1xf32>
    %cst_49 = arith.constant 3.125000e-02 : f32
    %115 = vector.broadcast %cst_49 : f32 to vector<48x1xf32>
    %116 = arith.mulf %114, %115 : vector<48x1xf32>
    %cst_50 = arith.constant 9.99999974E-6 : f32
    %117 = vector.broadcast %cst_50 : f32 to vector<48x1xf32>
    %118 = arith.addf %116, %117 : vector<48x1xf32>
    %119 = math.rsqrt %118 : vector<48x1xf32>
    %120 = vector.broadcast %119 : vector<48x1xf32> to vector<48x128xf32>
    %121 = arith.mulf %111, %120 : vector<48x128xf32>
    %c1448 = arith.constant 1448 : index
    %c0_51 = arith.constant 0 : index
    %122 = vector.load %arg1[%c1448, %c0_51] : memref<2936x128xf32, #tpu.memory_space<vmem>>, vector<1x128xf32>
    %123 = vector.broadcast %122 : vector<1x128xf32> to vector<48x128xf32>
    %124 = arith.mulf %121, %123 : vector<48x128xf32>
    %c1456 = arith.constant 1456 : index
    %c0_52 = arith.constant 0 : index
    %125 = vector.load %arg1[%c1456, %c0_52] : memref<2936x128xf32, #tpu.memory_space<vmem>>, vector<1x128xf32>
    %126 = vector.broadcast %125 : vector<1x128xf32> to vector<48x128xf32>
    %127 = arith.addf %124, %126 : vector<48x128xf32>
    %c2488 = arith.constant 2488 : index
    %c0_53 = arith.constant 0 : index
    %128 = vector.load %arg1[%c2488, %c0_53] : memref<2936x128xf32, #tpu.memory_space<vmem>>, vector<1x128xf32>
    %c1464 = arith.constant 1464 : index
    %c0_54 = arith.constant 0 : index
    %129 = vector.load %arg1[%c1464, %c0_54] : memref<2936x128xf32, #tpu.memory_space<vmem>>, vector<128x128xf32>
    %cst_55 = arith.constant dense<0.000000e+00> : vector<48x128xf32>
    %130 = tpu.matmul %127, %129, %cst_55 {dimension_numbers = #tpu.dot_dimension_numbers<[1], [0], [0], [1], [0, 0, 1, 1], [], []>} : vector<48x128xf32>, vector<128x128xf32>, vector<48x128xf32> -> vector<48x128xf32>
    %c1592 = arith.constant 1592 : index
    %c0_56 = arith.constant 0 : index
    %131 = vector.load %arg1[%c1592, %c0_56] : memref<2936x128xf32, #tpu.memory_space<vmem>>, vector<128x128xf32>
    %cst_57 = arith.constant dense<0.000000e+00> : vector<48x128xf32>
    %132 = tpu.matmul %127, %131, %cst_57 {dimension_numbers = #tpu.dot_dimension_numbers<[1], [0], [0], [1], [0, 0, 1, 1], [], []>} : vector<48x128xf32>, vector<128x128xf32>, vector<48x128xf32> -> vector<48x128xf32>
    %c1720 = arith.constant 1720 : index
    %c0_58 = arith.constant 0 : index
    %133 = vector.load %arg1[%c1720, %c0_58] : memref<2936x128xf32, #tpu.memory_space<vmem>>, vector<128x128xf32>
    %cst_59 = arith.constant dense<0.000000e+00> : vector<48x128xf32>
    %134 = tpu.matmul %127, %133, %cst_59 {dimension_numbers = #tpu.dot_dimension_numbers<[1], [0], [0], [1], [0, 0, 1, 1], [], []>} : vector<48x128xf32>, vector<128x128xf32>, vector<48x128xf32> -> vector<48x128xf32>
    %cst_60 = arith.constant dense<0.000000e+00> : vector<48x48xf32>
    %135 = tpu.matmul %130, %132, %cst_60 {dimension_numbers = #tpu.dot_dimension_numbers<[1], [1], [0], [0], [0, 0, 1, 0], [], []>} : vector<48x128xf32>, vector<48x128xf32>, vector<48x48xf32> -> vector<48x48xf32>
    %136 = arith.addf %135, %13 : vector<48x48xf32>
    %cst_61 = arith.constant dense<0xFF800000> : vector<48xf32>
    %137 = vector.multi_reduction <maximumf>, %136, %cst_61 [1] : vector<48x48xf32> to vector<48xf32>
    %138 = vector.shape_cast %137 : vector<48xf32> to vector<48x1xf32>
    %139 = vector.broadcast %138 : vector<48x1xf32> to vector<48x48xf32>
    %140 = arith.subf %136, %139 : vector<48x48xf32>
    %141 = math.exp %140 : vector<48x48xf32>
    %cst_62 = arith.constant dense<0.000000e+00> : vector<48xf32>
    %142 = vector.multi_reduction <add>, %141, %cst_62 [1] : vector<48x48xf32> to vector<48xf32>
    %143 = vector.shape_cast %142 : vector<48xf32> to vector<48x1xf32>
    %144 = vector.broadcast %143 : vector<48x1xf32> to vector<48x48xf32>
    %145 = arith.divf %141, %144 : vector<48x48xf32>
    %cst_63 = arith.constant dense<0.000000e+00> : vector<48x128xf32>
    %146 = tpu.matmul %145, %134, %cst_63 {dimension_numbers = #tpu.dot_dimension_numbers<[1], [0], [0], [1], [0, 0, 1, 1], [], []>} : vector<48x48xf32>, vector<48x128xf32>, vector<48x128xf32> -> vector<48x128xf32>
    %c1848 = arith.constant 1848 : index
    %c0_64 = arith.constant 0 : index
    %147 = vector.load %arg1[%c1848, %c0_64] : memref<2936x128xf32, #tpu.memory_space<vmem>>, vector<128x128xf32>
    %cst_65 = arith.constant dense<0.000000e+00> : vector<48x128xf32>
    %148 = tpu.matmul %146, %147, %cst_65 {dimension_numbers = #tpu.dot_dimension_numbers<[1], [0], [0], [1], [0, 0, 1, 1], [], []>} : vector<48x128xf32>, vector<128x128xf32>, vector<48x128xf32> -> vector<48x128xf32>
    %149 = vector.broadcast %128 : vector<1x128xf32> to vector<48x128xf32>
    %150 = arith.addf %149, %148 : vector<48x128xf32>
    %c1976 = arith.constant 1976 : index
    %c0_66 = arith.constant 0 : index
    %151 = vector.load %arg1[%c1976, %c0_66] : memref<2936x128xf32, #tpu.memory_space<vmem>>, vector<128x128xf32>
    %cst_67 = arith.constant dense<0.000000e+00> : vector<48x128xf32>
    %152 = tpu.matmul %127, %151, %cst_67 {dimension_numbers = #tpu.dot_dimension_numbers<[1], [0], [0], [1], [0, 0, 1, 1], [], []>} : vector<48x128xf32>, vector<128x128xf32>, vector<48x128xf32> -> vector<48x128xf32>
    %c2104 = arith.constant 2104 : index
    %c0_68 = arith.constant 0 : index
    %153 = vector.load %arg1[%c2104, %c0_68] : memref<2936x128xf32, #tpu.memory_space<vmem>>, vector<128x128xf32>
    %cst_69 = arith.constant dense<0.000000e+00> : vector<48x128xf32>
    %154 = tpu.matmul %127, %153, %cst_69 {dimension_numbers = #tpu.dot_dimension_numbers<[1], [0], [0], [1], [0, 0, 1, 1], [], []>} : vector<48x128xf32>, vector<128x128xf32>, vector<48x128xf32> -> vector<48x128xf32>
    %c2232 = arith.constant 2232 : index
    %c0_70 = arith.constant 0 : index
    %155 = vector.load %arg1[%c2232, %c0_70] : memref<2936x128xf32, #tpu.memory_space<vmem>>, vector<128x128xf32>
    %cst_71 = arith.constant dense<0.000000e+00> : vector<48x128xf32>
    %156 = tpu.matmul %127, %155, %cst_71 {dimension_numbers = #tpu.dot_dimension_numbers<[1], [0], [0], [1], [0, 0, 1, 1], [], []>} : vector<48x128xf32>, vector<128x128xf32>, vector<48x128xf32> -> vector<48x128xf32>
    %cst_72 = arith.constant dense<0.000000e+00> : vector<48x48xf32>
    %157 = tpu.matmul %152, %154, %cst_72 {dimension_numbers = #tpu.dot_dimension_numbers<[1], [1], [0], [0], [0, 0, 1, 0], [], []>} : vector<48x128xf32>, vector<48x128xf32>, vector<48x48xf32> -> vector<48x48xf32>
    %158 = arith.addf %157, %13 : vector<48x48xf32>
    %cst_73 = arith.constant dense<0xFF800000> : vector<48xf32>
    %159 = vector.multi_reduction <maximumf>, %158, %cst_73 [1] : vector<48x48xf32> to vector<48xf32>
    %160 = vector.shape_cast %159 : vector<48xf32> to vector<48x1xf32>
    %161 = vector.broadcast %160 : vector<48x1xf32> to vector<48x48xf32>
    %162 = arith.subf %158, %161 : vector<48x48xf32>
    %163 = math.exp %162 : vector<48x48xf32>
    %cst_74 = arith.constant dense<0.000000e+00> : vector<48xf32>
    %164 = vector.multi_reduction <add>, %163, %cst_74 [1] : vector<48x48xf32> to vector<48xf32>
    %165 = vector.shape_cast %164 : vector<48xf32> to vector<48x1xf32>
    %166 = vector.broadcast %165 : vector<48x1xf32> to vector<48x48xf32>
    %167 = arith.divf %163, %166 : vector<48x48xf32>
    %cst_75 = arith.constant dense<0.000000e+00> : vector<48x128xf32>
    %168 = tpu.matmul %167, %156, %cst_75 {dimension_numbers = #tpu.dot_dimension_numbers<[1], [0], [0], [1], [0, 0, 1, 1], [], []>} : vector<48x48xf32>, vector<48x128xf32>, vector<48x128xf32> -> vector<48x128xf32>
    %c2360 = arith.constant 2360 : index
    %c0_76 = arith.constant 0 : index
    %169 = vector.load %arg1[%c2360, %c0_76] : memref<2936x128xf32, #tpu.memory_space<vmem>>, vector<128x128xf32>
    %cst_77 = arith.constant dense<0.000000e+00> : vector<48x128xf32>
    %170 = tpu.matmul %168, %169, %cst_77 {dimension_numbers = #tpu.dot_dimension_numbers<[1], [0], [0], [1], [0, 0, 1, 1], [], []>} : vector<48x128xf32>, vector<128x128xf32>, vector<48x128xf32> -> vector<48x128xf32>
    %171 = arith.addf %150, %170 : vector<48x128xf32>
    %172 = arith.addf %171, %127 : vector<48x128xf32>
    %cst_78 = arith.constant dense<0.000000e+00> : vector<48xf32>
    %173 = vector.multi_reduction <add>, %172, %cst_78 [1] : vector<48x128xf32> to vector<48xf32>
    %174 = vector.shape_cast %173 : vector<48xf32> to vector<48x1xf32>
    %cst_79 = arith.constant 3.125000e-02 : f32
    %175 = vector.broadcast %cst_79 : f32 to vector<48x1xf32>
    %176 = arith.mulf %174, %175 : vector<48x1xf32>
    %177 = vector.broadcast %176 : vector<48x1xf32> to vector<48x128xf32>
    %178 = arith.subf %172, %177 : vector<48x128xf32>
    %179 = vector.broadcast %18 : vector<1x128xf32> to vector<48x128xf32>
    %180 = arith.mulf %178, %179 : vector<48x128xf32>
    %181 = arith.mulf %180, %180 : vector<48x128xf32>
    %cst_80 = arith.constant dense<0.000000e+00> : vector<48xf32>
    %182 = vector.multi_reduction <add>, %181, %cst_80 [1] : vector<48x128xf32> to vector<48xf32>
    %183 = vector.shape_cast %182 : vector<48xf32> to vector<48x1xf32>
    %cst_81 = arith.constant 3.125000e-02 : f32
    %184 = vector.broadcast %cst_81 : f32 to vector<48x1xf32>
    %185 = arith.mulf %183, %184 : vector<48x1xf32>
    %cst_82 = arith.constant 9.99999974E-6 : f32
    %186 = vector.broadcast %cst_82 : f32 to vector<48x1xf32>
    %187 = arith.addf %185, %186 : vector<48x1xf32>
    %188 = math.rsqrt %187 : vector<48x1xf32>
    %189 = vector.broadcast %188 : vector<48x1xf32> to vector<48x128xf32>
    %190 = arith.mulf %180, %189 : vector<48x128xf32>
    %c2496 = arith.constant 2496 : index
    %c0_83 = arith.constant 0 : index
    %191 = vector.load %arg1[%c2496, %c0_83] : memref<2936x128xf32, #tpu.memory_space<vmem>>, vector<1x128xf32>
    %192 = vector.broadcast %191 : vector<1x128xf32> to vector<48x128xf32>
    %193 = arith.mulf %190, %192 : vector<48x128xf32>
    %c2504 = arith.constant 2504 : index
    %c0_84 = arith.constant 0 : index
    %194 = vector.load %arg1[%c2504, %c0_84] : memref<2936x128xf32, #tpu.memory_space<vmem>>, vector<1x128xf32>
    %195 = vector.broadcast %194 : vector<1x128xf32> to vector<48x128xf32>
    %196 = arith.addf %193, %195 : vector<48x128xf32>
    %c2512 = arith.constant 2512 : index
    %c0_85 = arith.constant 0 : index
    %197 = vector.load %arg1[%c2512, %c0_85] : memref<2936x128xf32, #tpu.memory_space<vmem>>, vector<128x128xf32>
    %cst_86 = arith.constant dense<0.000000e+00> : vector<48x128xf32>
    %198 = tpu.matmul %196, %197, %cst_86 {dimension_numbers = #tpu.dot_dimension_numbers<[1], [0], [0], [1], [0, 0, 1, 1], [], []>} : vector<48x128xf32>, vector<128x128xf32>, vector<48x128xf32> -> vector<48x128xf32>
    %c2640 = arith.constant 2640 : index
    %c0_87 = arith.constant 0 : index
    %199 = vector.load %arg1[%c2640, %c0_87] : memref<2936x128xf32, #tpu.memory_space<vmem>>, vector<1x128xf32>
    %200 = vector.broadcast %199 : vector<1x128xf32> to vector<48x128xf32>
    %201 = arith.addf %198, %200 : vector<48x128xf32>
    %cst_88 = arith.constant 0.000000e+00 : f32
    %202 = vector.broadcast %cst_88 : f32 to vector<48x128xf32>
    %203 = arith.maximumf %201, %202 : vector<48x128xf32>
    %c2648 = arith.constant 2648 : index
    %c0_89 = arith.constant 0 : index
    %204 = vector.load %arg1[%c2648, %c0_89] : memref<2936x128xf32, #tpu.memory_space<vmem>>, vector<128x128xf32>
    %cst_90 = arith.constant dense<0.000000e+00> : vector<48x128xf32>
    %205 = tpu.matmul %203, %204, %cst_90 {dimension_numbers = #tpu.dot_dimension_numbers<[1], [0], [0], [1], [0, 0, 1, 1], [], []>} : vector<48x128xf32>, vector<128x128xf32>, vector<48x128xf32> -> vector<48x128xf32>
    %c2776 = arith.constant 2776 : index
    %c0_91 = arith.constant 0 : index
    %206 = vector.load %arg1[%c2776, %c0_91] : memref<2936x128xf32, #tpu.memory_space<vmem>>, vector<1x128xf32>
    %207 = vector.broadcast %206 : vector<1x128xf32> to vector<48x128xf32>
    %208 = arith.addf %205, %207 : vector<48x128xf32>
    %209 = arith.addf %208, %196 : vector<48x128xf32>
    %cst_92 = arith.constant dense<0.000000e+00> : vector<48xf32>
    %210 = vector.multi_reduction <add>, %209, %cst_92 [1] : vector<48x128xf32> to vector<48xf32>
    %211 = vector.shape_cast %210 : vector<48xf32> to vector<48x1xf32>
    %cst_93 = arith.constant 3.125000e-02 : f32
    %212 = vector.broadcast %cst_93 : f32 to vector<48x1xf32>
    %213 = arith.mulf %211, %212 : vector<48x1xf32>
    %214 = vector.broadcast %213 : vector<48x1xf32> to vector<48x128xf32>
    %215 = arith.subf %209, %214 : vector<48x128xf32>
    %216 = vector.broadcast %18 : vector<1x128xf32> to vector<48x128xf32>
    %217 = arith.mulf %215, %216 : vector<48x128xf32>
    %218 = arith.mulf %217, %217 : vector<48x128xf32>
    %cst_94 = arith.constant dense<0.000000e+00> : vector<48xf32>
    %219 = vector.multi_reduction <add>, %218, %cst_94 [1] : vector<48x128xf32> to vector<48xf32>
    %220 = vector.shape_cast %219 : vector<48xf32> to vector<48x1xf32>
    %cst_95 = arith.constant 3.125000e-02 : f32
    %221 = vector.broadcast %cst_95 : f32 to vector<48x1xf32>
    %222 = arith.mulf %220, %221 : vector<48x1xf32>
    %cst_96 = arith.constant 9.99999974E-6 : f32
    %223 = vector.broadcast %cst_96 : f32 to vector<48x1xf32>
    %224 = arith.addf %222, %223 : vector<48x1xf32>
    %225 = math.rsqrt %224 : vector<48x1xf32>
    %226 = vector.broadcast %225 : vector<48x1xf32> to vector<48x128xf32>
    %227 = arith.mulf %217, %226 : vector<48x128xf32>
    %c2784 = arith.constant 2784 : index
    %c0_97 = arith.constant 0 : index
    %228 = vector.load %arg1[%c2784, %c0_97] : memref<2936x128xf32, #tpu.memory_space<vmem>>, vector<1x128xf32>
    %229 = vector.broadcast %228 : vector<1x128xf32> to vector<48x128xf32>
    %230 = arith.mulf %227, %229 : vector<48x128xf32>
    %c2792 = arith.constant 2792 : index
    %c0_98 = arith.constant 0 : index
    %231 = vector.load %arg1[%c2792, %c0_98] : memref<2936x128xf32, #tpu.memory_space<vmem>>, vector<1x128xf32>
    %232 = vector.broadcast %231 : vector<1x128xf32> to vector<48x128xf32>
    %233 = arith.addf %230, %232 : vector<48x128xf32>
    %c2800 = arith.constant 2800 : index
    %c0_99 = arith.constant 0 : index
    %234 = vector.load %arg1[%c2800, %c0_99] : memref<2936x128xf32, #tpu.memory_space<vmem>>, vector<128x128xf32>
    %cst_100 = arith.constant dense<0.000000e+00> : vector<48x128xf32>
    %235 = tpu.matmul %233, %234, %cst_100 {dimension_numbers = #tpu.dot_dimension_numbers<[1], [0], [0], [1], [0, 0, 1, 1], [], []>} : vector<48x128xf32>, vector<128x128xf32>, vector<48x128xf32> -> vector<48x128xf32>
    %c2928 = arith.constant 2928 : index
    %c0_101 = arith.constant 0 : index
    %236 = vector.load %arg1[%c2928, %c0_101] : memref<2936x128xf32, #tpu.memory_space<vmem>>, vector<1x128xf32>
    %237 = vector.broadcast %236 : vector<1x128xf32> to vector<48x128xf32>
    %238 = arith.addf %235, %237 : vector<48x128xf32>
    %c0_102 = arith.constant 0 : index
    %c0_103 = arith.constant 0 : index
    %239 = vector.load %arg2[%c0_102, %c0_103] : memref<48x128xf32, #tpu.memory_space<vmem>>, vector<48x128xf32>
    tpu.vector_store %arg2[%c0_102, %c0_103], %238 {strides = array<i32>} : memref<48x128xf32, #tpu.memory_space<vmem>>, vector<48x128xf32>,
    return
  }
}

</mosaic_0001>

<bundles_post_ra>
// kernel: updeept_forward.1
= control target key start
LH: loop header
LB: loop body
LE: loop exit
PB: predicated region body
PF: predicated region fallthrough
CT: control target
= control target key end

     0   :  { %7 = vsyncpa [#allocation3], 0  ;;  %s5951_s9 = smov [#allocation2]   ;;  %s6472_s0 = inlined_call_operand.vmem [shape: f32[48,128], index: 0, kind: input, shape index: {}]   ;;  %s6473_s1 = inlined_call_operand.hbm [shape: f32[2936,128], index: 1, kind: input, shape index: {}]   ;;  %s6474_s2 = inlined_call_operand.vmem [shape: f32[48,128], index: 2, kind: output, shape index: {}]  }
   0x1   :  { %s15_s10 = sshll.u32 %s5951_s9, 4  ;;  %s16_s10 = int_to_ptr.vmem [resolvable:$true] %s15_s10 }
   0x2   :  { %s5937_s11 = scalar_lea.vmem %s16_s10, 46976  ;;  %p5942_p1 = scmp.lt.s32.totalorder %s16_s10, %s16_s10 }
   0x3   :  { %p5938_p0 = scmp.ne.s32.totalorder %s16_s10, %s5937_s11  ;;  %p5943_p2 = scmp.lt.s32.totalorder %s5937_s11, %s5937_s11 }
   0x5   :  { %p5944_p3 = por %p5943_p2, %p5942_p1 }
   0x7   :  { %p5945_p4 = pnand %p5944_p3, %p5938_p0 }
   0x9   :  { %5948 = shalt.err (!%p5945_p4)
}
   0xa   :  { %s5952_s12 = smov 128   ;;  %s5953_s13 = smov 8  }
   0xb   :  { %21 = dma.hbm_to_vmem [thread:$0]  %s6473_s1, 46976, %s16_s10, [#allocation3], %s5952_s12, %s5952_s12, %s5953_s13  }
   0xc   :  { %5949 = dma.done.wait [#allocation3], 46976  }
   0xd   :  { %5950 = vsyncadd [#allocation3], 4294920320  ;;  %v84_v0 = vld [vmem:[#allocation2 + $0x78] sm:$0xff]  ;;  %v83_v1 = vld [vmem:[#allocation2 + $0x70] sm:$0xff]  ;;  %vm609_vm4 = vcmask 392192  }
   0xe   :  { %4710 = vmatprep.subr.mxu0 %v84_v0  ;;  %v82_v2 = vld [vmem:[#allocation2 + $0x68] sm:$0xff]  ;;  %v81_v3 = vld [vmem:[#allocation2 + $0x60] sm:$0xff]  ;;  %v80_v5 = vld [vmem:[#allocation2 + $0x58] sm:$0xff] }
   0xf   :  { %4711 = vmatpush3.msra.mxu0 %v84_v0  ;;  %v63_v4 = vld [vmem:[%s6472_s0] sm:$0xff]  ;;  %v196_v6 = vld [vmem:[#allocation2 + $0xf8] sm:$0xff]  ;;  %v79_v7 = vld [vmem:[#allocation2 + $0x50] sm:$0xff] }
  0x10   :  { %4712 = vmatprep.subr.mxu0 %v83_v1  ;;  %4742 = vmatprep.mubr.f32.mxu0 %v63_v4  ;;  %v195_v8 = vld [vmem:[#allocation2 + $0xf0] sm:$0xff]  ;;  %v194_v9 = vld [vmem:[#allocation2 + $0xe8] sm:$0xff]  ;;  %v193_v11 = vld [vmem:[#allocation2 + $0xe0] sm:$0xff] }
  0x11   :  { %4713 = vmatpush3.msra.mxu0 %v83_v1  ;;  %4751 = vmatprep.subr.mxu1 %v196_v6  ;;  %v78_v10 = vld [vmem:[#allocation2 + $0x48] sm:$0xff]  ;;  %v77_v12 = vld [vmem:[#allocation2 + $0x40] sm:$0xff]  ;;  %v192_v13 = vld [vmem:[#allocation2 + $0xd8] sm:$0xff] }
  0x12   :  { %4714 = vmatprep.subr.mxu0 %v82_v2  ;;  %4752 = vmatpush3.msra.mxu1 %v196_v6  ;;  %v76_v14 = vld [vmem:[#allocation2 + $0x38] sm:$0xff]  ;;  %v191_v15 = vld [vmem:[#allocation2 + $0xd0] sm:$0xff]  ;;  %v190_v17 = vld [vmem:[#allocation2 + $0xc8] sm:$0xff] }
  0x13   :  { %4715 = vmatpush3.msra.mxu0 %v82_v2  ;;  %4753 = vmatprep.subr.mxu1 %v195_v8  ;;  %v75_v16 = vld [vmem:[#allocation2 + $0x30] sm:$0xff]  ;;  %v74_v18 = vld [vmem:[#allocation2 + $0x28] sm:$0xff]  ;;  %v189_v19 = vld [vmem:[#allocation2 + $0xc0] sm:$0xff] }
  0x14   :  { %4716 = vmatprep.subr.mxu0 %v81_v3  ;;  %4754 = vmatpush3.msra.mxu1 %v195_v8  ;;  %v73_v20 = vld [vmem:[#allocation2 + $0x20] sm:$0xff]  ;;  %v188_v21 = vld [vmem:[#allocation2 + $0xb8] sm:$0xff]  ;;  %v187_v23 = vld [vmem:[#allocation2 + $0xb0] sm:$0xff] }
  0x15   :  { %4717 = vmatpush3.msra.mxu0 %v81_v3  ;;  %4755 = vmatprep.subr.mxu1 %v194_v9  ;;  %v72_v22 = vld [vmem:[#allocation2 + $0x18] sm:$0xff]  ;;  %v71_v24 = vld [vmem:[#allocation2 + $0x10] sm:$0xff]  ;;  %v186_v25 = vld [vmem:[#allocation2 + $0xa8] sm:$0xff] }
  0x16   :  { %4718 = vmatprep.subr.mxu0 %v80_v5  ;;  %4756 = vmatpush3.msra.mxu1 %v194_v9  ;;  %v70_v26 = vld [vmem:[#allocation2 + $0x8] sm:$0xff]  ;;  %v185_v27 = vld [vmem:[#allocation2 + $0xa0] sm:$0xff]  ;;  %v184_v29 = vld [vmem:[#allocation2 + $0x98] sm:$0xff] }
  0x17   :  { %4719 = vmatpush3.msra.mxu0 %v80_v5  ;;  %4757 = vmatprep.subr.mxu1 %v193_v11  ;;  %v69_v28 = vld [vmem:[#allocation2] sm:$0xff]  ;;  %v64_v30 = vld [vmem:[%s6472_s0 + $0x8] sm:$0xff]  ;;  %v307_v31 = vld [vmem:[#allocation2 + $0x178] sm:$0xff] }
  0x18   :  { %4720 = vmatprep.subr.mxu0 %v79_v7  ;;  %4758 = vmatpush3.msra.mxu1 %v193_v11  ;;  %v65_v32 = vld [vmem:[%s6472_s0 + $0x10] sm:$0xff]  ;;  %v66_v35 = vld [vmem:[%s6472_s0 + $0x18] sm:$0xff]  ;;  %v305_v36 = vld [vmem:[#allocation2 + $0x168] sm:$0xff] }
  0x19   :  { %4721 = vmatpush3.msra.mxu0 %v79_v7  ;;  %4759 = vmatprep.subr.mxu1 %v192_v13  ;;  %v306_v33 = vld [vmem:[#allocation2 + $0x170] sm:$0xff]  ;;  %v67_v37 = vld [vmem:[%s6472_s0 + $0x20] sm:$0xff]  ;;  %v182_v39 = vld [vmem:[#allocation2 + $0x88] sm:$0xff] }
  0x1a   :  { %4722 = vmatprep.subr.mxu0 %v78_v10  ;;  %4760 = vmatpush3.msra.mxu1 %v192_v13  ;;  %v183_v34 = vld [vmem:[#allocation2 + $0x90] sm:$0xff]  ;;  %v304_v38 = vld [vmem:[#allocation2 + $0x160] sm:$0xff]  ;;  %v68_v40 = vld [vmem:[%s6472_s0 + $0x28] sm:$0xff] }
  0x1b   :  { %4723 = vmatpush3.msra.mxu0 %v78_v10  ;;  %4761 = vmatprep.subr.mxu1 %v191_v15  ;;  %v303_v41 = vld [vmem:[#allocation2 + $0x158] sm:$0xff]  ;;  %v302_v42 = vld [vmem:[#allocation2 + $0x150] sm:$0xff]  ;;  %v301_v43 = vld [vmem:[#allocation2 + $0x148] sm:$0xff] }
  0x1c   :  { %4724 = vmatprep.subr.mxu0 %v77_v12  ;;  %4762 = vmatpush3.msra.mxu1 %v191_v15  ;;  %v300_v44 = vld [vmem:[#allocation2 + $0x140] sm:$0xff]  ;;  %v299_v45 = vld [vmem:[#allocation2 + $0x138] sm:$0xff]  ;;  %v298_v46 = vld [vmem:[#allocation2 + $0x130] sm:$0xff] }
  0x1d   :  { %4725 = vmatpush3.msra.mxu0 %v77_v12  ;;  %4763 = vmatprep.subr.mxu1 %v190_v17  ;;  %v297_v47 = vld [vmem:[#allocation2 + $0x128] sm:$0xff]  ;;  %v296_v48 = vld [vmem:[#allocation2 + $0x120] sm:$0xff]  ;;  %v295_v49 = vld [vmem:[#allocation2 + $0x118] sm:$0xff] }
  0x1e   :  { %4726 = vmatprep.subr.mxu0 %v76_v14  ;;  %4764 = vmatpush3.msra.mxu1 %v190_v17  ;;  %v294_v50 = vld [vmem:[#allocation2 + $0x110] sm:$0xff]  ;;  %v293_v51 = vld [vmem:[#allocation2 + $0x108] sm:$0xff]  ;;  %v181_v52 = vld [vmem:[#allocation2 + $0x80] sm:$0xff] }
  0x1f   :  { %4727 = vmatpush3.msra.mxu0 %v76_v14  ;;  %4765 = vmatprep.subr.mxu1 %v189_v19  ;;  %v292_v53 = vld [vmem:[#allocation2 + $0x100] sm:$0xff]  ;;  %v418_v54 = vld [vmem:[#allocation2 + $0x1f8] sm:$0xff]  ;;  %v417_v57 = vld [vmem:[#allocation2 + $0x1f0] sm:$0xff] }
  0x20   :  { %4728 = vmatprep.subr.mxu0 %v75_v16  ;;  %4766 = vmatpush3.msra.mxu1 %v189_v19  ;;  %v416_v59 = vld [vmem:[#allocation2 + $0x1e8] sm:$0xff]  ;;  %v415_v62 = vld [vmem:[#allocation2 + $0x1e0] sm:$0xff]  ;;  %v414_v0 = vld [vmem:[#allocation2 + $0x1d8] sm:$0xff] }
  0x21   :  { %4729 = vmatpush3.msra.mxu0 %v75_v16  ;;  %4767 = vmatprep.subr.mxu1 %v188_v21  ;;  %v413_v1 = vld [vmem:[#allocation2 + $0x1d0] sm:$0xff]  ;;  %v412_v2 = vld [vmem:[#allocation2 + $0x1c8] sm:$0xff]  ;;  %v411_v3 = vld [vmem:[#allocation2 + $0x1c0] sm:$0xff] }
  0x22   :  { %4730 = vmatprep.subr.mxu0 %v74_v18  ;;  %4768 = vmatpush3.msra.mxu1 %v188_v21  ;;  %v410_v4 = vld [vmem:[#allocation2 + $0x1b8] sm:$0xff]  ;;  %v409_v5 = vld [vmem:[#allocation2 + $0x1b0] sm:$0xff]  ;;  %v408_v6 = vld [vmem:[#allocation2 + $0x1a8] sm:$0xff] }
  0x23   :  { %4731 = vmatpush3.msra.mxu0 %v74_v18  ;;  %4769 = vmatprep.subr.mxu1 %v187_v23  ;;  %v407_v7 = vld [vmem:[#allocation2 + $0x1a0] sm:$0xff]  ;;  %v406_v8 = vld [vmem:[#allocation2 + $0x198] sm:$0xff]  ;;  %v405_v9 = vld [vmem:[#allocation2 + $0x190] sm:$0xff] }
  0x24   :  { %4732 = vmatprep.subr.mxu0 %v73_v20  ;;  %4770 = vmatpush3.msra.mxu1 %v187_v23  ;;  %v404_v10 = vld [vmem:[#allocation2 + $0x188] sm:$0xff]  ;;  %v403_v11 = vld [vmem:[#allocation2 + $0x180] sm:$0xff]  ;;  %v925_v23 = vld [vmem:[#allocation2 + $0x2f8] sm:$0xff] }
  0x25   :  { %4733 = vmatpush3.msra.mxu0 %v73_v20  ;;  %4771 = vmatprep.subr.mxu1 %v186_v25 }
  0x26   :  { %4734 = vmatprep.subr.mxu0 %v72_v22  ;;  %4772 = vmatpush3.msra.mxu1 %v186_v25 }
  0x27   :  { %4735 = vmatpush3.msra.mxu0 %v72_v22  ;;  %4773 = vmatprep.subr.mxu1 %v185_v27 }
  0x28   :  { %4736 = vmatprep.subr.mxu0 %v71_v24  ;;  %4774 = vmatpush3.msra.mxu1 %v185_v27 }
  0x29   :  { %4737 = vmatpush3.msra.mxu0 %v71_v24  ;;  %4775 = vmatprep.subr.mxu1 %v184_v29 }
  0x2a   :  { %4738 = vmatprep.subr.mxu0 %v70_v26  ;;  %4776 = vmatpush3.msra.mxu1 %v184_v29 }
  0x2b   :  { %4739 = vmatpush3.msra.mxu0 %v70_v26  ;;  %4777 = vmatprep.subr.mxu1 %v183_v34  ;;  %v924_v26 = vld [vmem:[#allocation2 + $0x2f0] sm:$0xff] }
  0x2c   :  { %4740 = vmatprep.subr.mxu0 %v69_v28  ;;  %4778 = vmatpush3.msra.mxu1 %v183_v34 }
  0x2d   :  { %4741 = vmatpush3.msra.mxu0 %v69_v28  ;;  %4779 = vmatprep.subr.mxu1 %v182_v39  ;;  %v923_v28 = vld [vmem:[#allocation2 + $0x2e8] sm:$0xff] }
  0x2e   :  { %4743 = vmatmul.mubr.f32.vlgmr.msra.gmra.mxu0 %v64_v30  ;;  %4792 = vmatprep.subr.mxu0 %v307_v31  ;;  %v922_v30 = vld [vmem:[#allocation2 + $0x2e0] sm:$0xff] }
  0x2f   :  { %4745 = vmatprep.mubr.f32.mxu0 %v65_v32  ;;  %4793 = vmatpush3.msra.mxu0 %v307_v31 }
  0x30   :  { %4794 = vmatprep.subr.mxu0 %v306_v33  ;;  %4780 = vmatpush3.msra.mxu1 %v182_v39  ;;  %v916_v39 = vld [vmem:[#allocation2 + $0x2b0] sm:$0xff] }
  0x31   :  { %4795 = vmatpush3.msra.mxu0 %v306_v33  ;;  %4781 = vmatprep.subr.mxu1 %v181_v52  ;;  %v921_v33 = vld [vmem:[#allocation2 + $0x2d8] sm:$0xff] }
  0x32   :  { %4746 = vmatmul.mubr.f32.gmra.mxu0 %v66_v35  ;;  %4796 = vmatprep.subr.mxu0 %v305_v36  ;;  %v920_v35 = vld [vmem:[#allocation2 + $0x2d0] sm:$0xff] }
  0x33   :  { %4748 = vmatprep.mubr.f32.mxu0 %v67_v37  ;;  %4797 = vmatpush3.msra.mxu0 %v305_v36  ;;  %v919_v36 = vld [vmem:[#allocation2 + $0x2c8] sm:$0xff]  ;;  %v918_v37 = vld [vmem:[#allocation2 + $0x2c0] sm:$0xff] }
  0x34   :  { %4798 = vmatprep.subr.mxu0 %v304_v38  ;;  %4782 = vmatpush3.msra.mxu1 %v181_v52  ;;  %v1141_v52 = vld [vmem:[#allocation2 + $0x3c8] sm:$0xff] }
  0x35   :  { %4799 = vmatpush3.msra.mxu0 %v304_v38  ;;  %4833 = vmatprep.subr.mxu1 %v418_v54  ;;  %v917_v38 = vld [vmem:[#allocation2 + $0x2b8] sm:$0xff] }
  0x36   :  { %4749 = vmatmul.mubr.f32.gmra.mxu0 %v68_v40  ;;  %4800 = vmatprep.subr.mxu0 %v303_v41  ;;  %v915_v40 = vld [vmem:[#allocation2 + $0x2a8] sm:$0xff] }
  0x37   :  { %4801 = vmatpush3.msra.mxu0 %v303_v41  ;;  %v914_v41 = vld [vmem:[#allocation2 + $0x2a0] sm:$0xff] }
  0x38   :  { %4802 = vmatprep.subr.mxu0 %v302_v42 }
  0x39   :  { %4803 = vmatpush3.msra.mxu0 %v302_v42  ;;  %v913_v42 = vld [vmem:[#allocation2 + $0x298] sm:$0xff] }
  0x3a   :  { %4804 = vmatprep.subr.mxu0 %v301_v43 }
  0x3b   :  { %4805 = vmatpush3.msra.mxu0 %v301_v43  ;;  %v912_v43 = vld [vmem:[#allocation2 + $0x290] sm:$0xff] }
  0x3c   :  { %4806 = vmatprep.subr.mxu0 %v300_v44 }
  0x3d   :  { %4807 = vmatpush3.msra.mxu0 %v300_v44  ;;  %v911_v44 = vld [vmem:[#allocation2 + $0x288] sm:$0xff] }
  0x3e   :  { %4808 = vmatprep.subr.mxu0 %v299_v45 }
  0x3f   :  { %4809 = vmatpush3.msra.mxu0 %v299_v45  ;;  %v910_v45 = vld [vmem:[#allocation2 + $0x280] sm:$0xff] }
  0x40   :  { %4810 = vmatprep.subr.mxu0 %v298_v46 }
  0x41   :  { %4811 = vmatpush3.msra.mxu0 %v298_v46  ;;  %v1147_v46 = vld [vmem:[#allocation2 + $0x3f8] sm:$0xff] }
  0x42   :  { %4812 = vmatprep.subr.mxu0 %v297_v47 }
  0x43   :  { %4813 = vmatpush3.msra.mxu0 %v297_v47  ;;  %v1146_v47 = vld [vmem:[#allocation2 + $0x3f0] sm:$0xff] }
  0x44   :  { %4814 = vmatprep.subr.mxu0 %v296_v48 }
  0x45   :  { %4815 = vmatpush3.msra.mxu0 %v296_v48  ;;  %v1145_v48 = vld [vmem:[#allocation2 + $0x3e8] sm:$0xff] }
  0x46   :  { %4816 = vmatprep.subr.mxu0 %v295_v49 }
  0x47   :  { %4817 = vmatpush3.msra.mxu0 %v295_v49  ;;  %v1144_v49 = vld [vmem:[#allocation2 + $0x3e0] sm:$0xff] }
  0x48   :  { %4818 = vmatprep.subr.mxu0 %v294_v50 }
  0x49   :  { %4819 = vmatpush3.msra.mxu0 %v294_v50  ;;  %v1143_v50 = vld [vmem:[#allocation2 + $0x3d8] sm:$0xff] }
  0x4a   :  { %4820 = vmatprep.subr.mxu0 %v293_v51 }
  0x4b   :  { %4821 = vmatpush3.msra.mxu0 %v293_v51  ;;  %v1142_v51 = vld [vmem:[#allocation2 + $0x3d0] sm:$0xff] }
  0x4c   :  { %4822 = vmatprep.subr.mxu0 %v292_v53 }
  0x4d   :  { %4823 = vmatpush3.msra.mxu0 %v292_v53  ;;  %v1140_v53 = vld [vmem:[#allocation2 + $0x3c0] sm:$0xff] }
  0xee   :  { %v5992_v55 = vpop.f32.mrf.mxu0 }
  0xf0   :  { %v5994_v56 = vpop.f32.mrf.mxu0 }
  0xf1   :  { %4783 = vmatprep.mubr.f32.mxu1 %v5994_v56  ;;  %4824 = vmatprep.mubr.f32.mxu0 %v5994_v56 }
  0xf2   :  { %v5998_v58 = vpop.f32.mrf.mxu0  ;;  %4784 = vmatmul.mubr.f32.vlgmr.msra.gmra.mxu1 %v5992_v55  ;;  %4825 = vmatmul.mubr.f32.vlgmr.msra.gmra.mxu0 %v5992_v55 }
  0xf3   :  { %4834 = vmatpush3.msra.mxu1 %v418_v54  ;;  %v1139_v54 = vld [vmem:[#allocation2 + $0x3b8] sm:$0xff] }
  0xf4   :  { %4835 = vmatprep.subr.mxu1 %v417_v57  ;;  %v6002_v60 = vpop.f32.mrf.mxu0 }
  0xf5   :  { %4836 = vmatpush3.msra.mxu1 %v417_v57  ;;  %4786 = vmatprep.mubr.f32.mxu1 %v6002_v60  ;;  %v1138_v57 = vld [vmem:[#allocation2 + $0x3b0] sm:$0xff] }
  0xf6   :  { %4827 = vmatprep.mubr.f32.mxu0 %v6002_v60  ;;  %4837 = vmatprep.subr.mxu1 %v416_v59  ;;  %v6006_v61 = vpop.f32.mrf.mxu0 }
  0xf7   :  { %4787 = vmatmul.mubr.f32.gmra.mxu1 %v5998_v58  ;;  %4828 = vmatmul.mubr.f32.gmra.mxu0 %v5998_v58 }
  0xf8   :  { %4838 = vmatpush3.msra.mxu1 %v416_v59  ;;  %v6010_v63 = vpop.f32.mrf.mxu0  ;;  %v1137_v59 = vld [vmem:[#allocation2 + $0x3a8] sm:$0xff] }
  0xf9   :  { %4839 = vmatprep.subr.mxu1 %v415_v62  ;;  %4789 = vmatprep.mubr.f32.mxu1 %v6010_v63 }
  0xfa   :  { %4840 = vmatpush3.msra.mxu1 %v415_v62  ;;  %4830 = vmatprep.mubr.f32.mxu0 %v6010_v63  ;;  %v1136_v62 = vld [vmem:[#allocation2 + $0x3a0] sm:$0xff] }
  0xfb   :  { %4841 = vmatprep.subr.mxu1 %v414_v0  ;;  %4790 = vmatmul.mubr.f32.gmra.mxu1 %v6006_v61 }
  0xfc   :  { %4831 = vmatmul.mubr.f32.gmra.mxu0 %v6006_v61  ;;  %4842 = vmatpush3.msra.mxu1 %v414_v0  ;;  %v1135_v0 = vld [vmem:[#allocation2 + $0x398] sm:$0xff] }
  0xfd   :  { %4843 = vmatprep.subr.mxu1 %v413_v1  ;;  %4865 = vmatprep.mubr.f32.mxu1 %v5994_v56 }
  0xfe   :  { %4844 = vmatpush3.msra.mxu1 %v413_v1  ;;  %v1134_v1 = vld [vmem:[#allocation2 + $0x390] sm:$0xff] }
  0xff   :  { %4845 = vmatprep.subr.mxu1 %v412_v2 }
 0x100   :  { %4846 = vmatpush3.msra.mxu1 %v412_v2  ;;  %v1133_v2 = vld [vmem:[#allocation2 + $0x388] sm:$0xff] }
 0x101   :  { %4847 = vmatprep.subr.mxu1 %v411_v3 }
 0x102   :  { %4848 = vmatpush3.msra.mxu1 %v411_v3  ;;  %v1132_v3 = vld [vmem:[#allocation2 + $0x380] sm:$0xff] }
 0x103   :  { %4849 = vmatprep.subr.mxu1 %v410_v4 }
 0x104   :  { %4850 = vmatpush3.msra.mxu1 %v410_v4  ;;  %v25_v4 = vlaneseq }
 0x105   :  { %4851 = vmatprep.subr.mxu1 %v409_v5 }
 0x106   :  { %4852 = vmatpush3.msra.mxu1 %v409_v5  ;;  %v26_v5 = vshrl.u32 %v25_v4, 7 }
 0x107   :  { %4853 = vmatprep.subr.mxu1 %v408_v6 }
 0x108   :  { %4854 = vmatpush3.msra.mxu1 %v408_v6  ;;  %v27_v6 = vadd.s32 8, %v26_v5 }
 0x109   :  { %4855 = vmatprep.subr.mxu1 %v407_v7 }
 0x10a   :  { %4856 = vmatpush3.msra.mxu1 %v407_v7  ;;  %v6034_v7 = vand.u32 127, %v25_v4 }
 0x10b   :  { %4857 = vmatprep.subr.mxu1 %v406_v8 }
 0x10c   :  { %4858 = vmatpush3.msra.mxu1 %v406_v8  ;;  %v34_v8 = vmul.u32 131072, %v26_v5  ;;  %vm60_vm7 = vcmp.lt.s32.totalorder %v6034_v7, 32 }
 0x10d   :  { %4859 = vmatprep.subr.mxu1 %v405_v9 }
 0x10e   :  { %4860 = vmatpush3.msra.mxu1 %v405_v9  ;;  %v28_v9 = vadd.s32 16, %v26_v5 }
 0x10f   :  { %4861 = vmatprep.subr.mxu1 %v404_v10 }
 0x110   :  { %4862 = vmatpush3.msra.mxu1 %v404_v10  ;;  %v35_v10 = vmul.u32 131072, %v27_v6 }
 0x111   :  { %4863 = vmatprep.subr.mxu1 %v403_v11 }
 0x112   :  { %4864 = vmatpush3.msra.mxu1 %v403_v11  ;;  %v46_v11 = vmul.u32 131072, %v6034_v7 }
 0x113   :  { %4866 = vmatmul.mubr.f32.vlgmr.msra.gmra.mxu1 %v5992_v55 }
 0x114   :  { %4868 = vmatprep.mubr.f32.mxu1 %v6002_v60 }
 0x117   :  { %4869 = vmatmul.mubr.f32.gmra.mxu1 %v5998_v58 }
 0x118   :  { %4871 = vmatprep.mubr.f32.mxu1 %v6010_v63 }
 0x11b   :  { %4872 = vmatmul.mubr.f32.gmra.mxu1 %v6006_v61 }
 0x1b2   :  { %v4785_v12 = vpop.f32.mrf.mxu1  ;;  %v4826_v13 = vpop.f32.mrf.mxu0 }
 0x1b4   :  { %v263_v14 = vpop.f32.mrf.mxu1  ;;  %v374_v15 = vpop.f32.mrf.mxu0 }
 0x1b5   :  { %4886 = vmatprep.mubr.f32.mxu0 %v263_v14  ;;  %v36_v14 = vmul.u32 131072, %v28_v9 }
 0x1b7   :  { %v4829_v16 = vpop.f32.mrf.mxu0  ;;  %v4788_v20 = vpop.f32.mrf.mxu1 }
 0x1b9   :  { %v384_v17 = vpop.f32.mrf.mxu0  ;;  %v273_v21 = vpop.f32.mrf.mxu1 }
 0x1bb   :  { %v4791_v22 = vpop.f32.mrf.mxu1 }
 0x1bc   :  { %v4832_v18 = vpop.f32.mrf.mxu0 }
 0x1bd   :  { %4874 = vmatprep.subr.mxu0 %v4832_v18  ;;  %v283_v24 = vpop.f32.mrf.mxu1 }
 0x1be   :  { %v394_v19 = vpop.f32.mrf.mxu0  ;;  %4875 = vmatpush3.xpose.msra.mxu0 %v4832_v18 }
 0x1bf   :  { %4876 = vmatprep.subr.mxu0 %v394_v19 }
 0x1c2   :  { %4877 = vmatpush3.xpose.msra.mxu0 %v394_v19  ;;  %v31_v19 = vadd.s32 40, %v26_v5 }
 0x1c3   :  { %4878 = vmatprep.subr.mxu0 %v4829_v16 }
 0x1c6   :  { %4879 = vmatpush3.xpose.msra.mxu0 %v4829_v16  ;;  %v41_v16 = vshra.s32 %v35_v10, 20 }
 0x1c7   :  { %4880 = vmatprep.subr.mxu0 %v384_v17 }
 0x1ca   :  { %4881 = vmatpush3.xpose.msra.mxu0 %v384_v17  ;;  %v47_v17 = vshra.s32 %v46_v11, 20 }
 0x1cb   :  { %4882 = vmatprep.subr.mxu0 %v4826_v13 }
 0x1cc   :  { %vm49_vm1 = vcmp.eq.s32.totalorder %v41_v16, %v47_v17 }
 0x1ce   :  { %4883 = vmatpush3.xpose.msra.mxu0 %v4826_v13  ;;  %v40_v13 = vshra.s32 %v34_v8, 20 }
 0x1cf   :  { %4884 = vmatprep.subr.mxu0 %v374_v15 }
 0x1d0   :  { %vm48_vm0 = vcmp.eq.s32.totalorder %v40_v13, %v47_v17 }
 0x1d2   :  { %4885 = vmatpush3.xpose.msra.mxu0 %v374_v15  ;;  %v30_v15 = vadd.s32 32, %v26_v5 }
 0x1d3   :  { %v4867_v25 = vpop.f32.mrf.mxu1  ;;  %4957 = vmatprep.subr.mxu0 %v925_v23 }
 0x1d5   :  { %v485_v27 = vpop.f32.mrf.mxu1  ;;  %4887 = vmatmul.mubr.f32.vlgmr.msra.gmra.mxu0 %v4785_v12  ;;  %v29_v12 = vadd.s32 24, %v26_v5 }
 0x1d6   :  { %4889 = vmatprep.mubr.f32.mxu0 %v273_v21  ;;  %4958 = vmatpush3.msra.mxu0 %v925_v23  ;;  %v38_v21 = vmul.u32 131072, %v30_v15  ;;  %v39_v23 = vmul.u32 131072, %v31_v19 }
 0x1d7   :  { %v4870_v29 = vpop.f32.mrf.mxu1  ;;  %4959 = vmatprep.subr.mxu0 %v924_v26  ;;  %v37_v18 = vmul.u32 131072, %v29_v12 }
 0x1d8   :  { %4960 = vmatpush3.msra.mxu0 %v924_v26 }
 0x1d9   :  { %v495_v31 = vpop.f32.mrf.mxu1  ;;  %4890 = vmatmul.mubr.f32.gmra.mxu0 %v4788_v20  ;;  %4961 = vmatprep.subr.mxu0 %v923_v28  ;;  %v42_v20 = vshra.s32 %v36_v14, 20 }
 0x1da   :  { %4892 = vmatprep.mubr.f32.mxu0 %v283_v24  ;;  %4962 = vmatpush3.msra.mxu0 %v923_v28 }
 0x1db   :  { %v4873_v32 = vpop.f32.mrf.mxu1  ;;  %4963 = vmatprep.subr.mxu0 %v922_v30  ;;  %vm50_vm2 = vcmp.eq.s32.totalorder %v42_v20, %v47_v17 }
 0x1dc   :  { %4895 = vmatprep.subr.mxu1 %v4873_v32  ;;  %4964 = vmatpush3.msra.mxu0 %v922_v30 }
 0x1dd   :  { %v505_v34 = vpop.f32.mrf.mxu1  ;;  %4893 = vmatmul.mubr.f32.gmra.mxu0 %v4791_v22  ;;  %4896 = vmatpush3.msra.mxu1 %v4873_v32  ;;  %v43_v22 = vshra.s32 %v37_v18, 20 }
 0x1de   :  { %4965 = vmatprep.subr.mxu0 %v921_v33  ;;  %4897 = vmatprep.subr.mxu1 %v505_v34 }
 0x1df   :  { %4966 = vmatpush3.msra.mxu0 %v921_v33  ;;  %4989 = vmatprep.mubr.f32.mxu0 %v5994_v56  ;;  %vm51_vm3 = vcmp.eq.s32.totalorder %v43_v22, %v47_v17 }
 0x1e0   :  { %4898 = vmatpush3.msra.mxu1 %v505_v34  ;;  %4967 = vmatprep.subr.mxu0 %v920_v35 }
 0x1e1   :  { %4899 = vmatprep.subr.mxu1 %v4870_v29  ;;  %4968 = vmatpush3.msra.mxu0 %v920_v35 }
 0x1e2   :  { %4900 = vmatpush3.msra.mxu1 %v4870_v29  ;;  %4969 = vmatprep.subr.mxu0 %v919_v36 }
 0x1e3   :  { %4901 = vmatprep.subr.mxu1 %v495_v31  ;;  %4970 = vmatpush3.msra.mxu0 %v919_v36 }
 0x1e4   :  { %4902 = vmatpush3.msra.mxu1 %v495_v31  ;;  %4971 = vmatprep.subr.mxu0 %v918_v37  ;;  %v45_v31 = vshra.s32 %v39_v23, 20 }
 0x1e5   :  { %4903 = vmatprep.subr.mxu1 %v4867_v25  ;;  %4972 = vmatpush3.msra.mxu0 %v918_v37 }
 0x1e6   :  { %4904 = vmatpush3.msra.mxu1 %v4867_v25  ;;  %4973 = vmatprep.subr.mxu0 %v917_v38  ;;  %v5954_v25 = vmov -1e+09   ;;  %vm53_vm6 = vcmp.eq.s32.totalorder %v45_v31, %v47_v17 }
 0x1e7   :  { %4905 = vmatprep.subr.mxu1 %v485_v27  ;;  %4974 = vmatpush3.msra.mxu0 %v917_v38  ;;  %v6037_v26 = vsel %vm48_vm0, 0.0, %v5954_v25  ;;  %v6039_v28 = vsel %vm49_vm1, 0.0, %v5954_v25  ;;  %v6042_v33 = vsel %vm50_vm2, 0.0, %v5954_v25  ;;  %v6046_v36 = vsel %vm51_vm3, 0.0, %v5954_v25 }
 0x1e8   :  { %4906 = vmatpush3.msra.mxu1 %v485_v27  ;;  %4975 = vmatprep.subr.mxu0 %v916_v39  ;;  %v44_v27 = vshra.s32 %v38_v21, 20 }
 0x1e9   :  { %4976 = vmatpush3.msra.mxu0 %v916_v39 }
 0x1ea   :  { %4977 = vmatprep.subr.mxu0 %v915_v40  ;;  %vm52_vm5 = vcmp.eq.s32.totalorder %v44_v27, %v47_v17 }
 0x1eb   :  { %4978 = vmatpush3.msra.mxu0 %v915_v40  ;;  %v6049_v40 = vsel %vm52_vm5, 0.0, %v5954_v25 }
 0x1ec   :  { %4979 = vmatprep.subr.mxu0 %v914_v41 }
 0x1ed   :  { %4980 = vmatpush3.msra.mxu0 %v914_v41 }
 0x1ee   :  { %4981 = vmatprep.subr.mxu0 %v913_v42 }
 0x1ef   :  { %4982 = vmatpush3.msra.mxu0 %v913_v42 }
 0x1f0   :  { %4983 = vmatprep.subr.mxu0 %v912_v43 }
 0x1f1   :  { %4984 = vmatpush3.msra.mxu0 %v912_v43 }
 0x1f2   :  { %4985 = vmatprep.subr.mxu0 %v911_v44 }
 0x1f3   :  { %4986 = vmatpush3.msra.mxu0 %v911_v44  ;;  %v6054_v44 = vsel %vm53_vm6, 0.0, %v5954_v25 }
 0x1f4   :  { %4987 = vmatprep.subr.mxu0 %v910_v45 }
 0x1f5   :  { %4988 = vmatpush3.msra.mxu0 %v910_v45 }
 0x1f6   :  { %4990 = vmatmul.mubr.f32.vlgmr.msra.gmra.mxu0 %v5992_v55  ;;  %5039 = vmatprep.subr.mxu0 %v1147_v46 }
 0x1f7   :  { %4992 = vmatprep.mubr.f32.mxu0 %v6002_v60  ;;  %5040 = vmatpush3.msra.mxu0 %v1147_v46 }
 0x1f8   :  { %5041 = vmatprep.subr.mxu0 %v1146_v47 }
 0x1f9   :  { %5042 = vmatpush3.msra.mxu0 %v1146_v47 }
 0x1fa   :  { %4993 = vmatmul.mubr.f32.gmra.mxu0 %v5998_v58  ;;  %5043 = vmatprep.subr.mxu0 %v1145_v48 }
 0x1fb   :  { %4995 = vmatprep.mubr.f32.mxu0 %v6010_v63  ;;  %5044 = vmatpush3.msra.mxu0 %v1145_v48 }
 0x1fc   :  { %5045 = vmatprep.subr.mxu0 %v1144_v49 }
 0x1fd   :  { %5046 = vmatpush3.msra.mxu0 %v1144_v49 }
 0x1fe   :  { %4996 = vmatmul.mubr.f32.gmra.mxu0 %v6006_v61  ;;  %5047 = vmatprep.subr.mxu0 %v1143_v50 }
 0x1ff   :  { %5048 = vmatpush3.msra.mxu0 %v1143_v50  ;;  %5071 = vmatprep.mubr.f32.mxu0 %v5994_v56 }
 0x200   :  { %5049 = vmatprep.subr.mxu0 %v1142_v51 }
 0x201   :  { %5050 = vmatpush3.msra.mxu0 %v1142_v51 }
 0x202   :  { %5051 = vmatprep.subr.mxu0 %v1141_v52 }
 0x203   :  { %5052 = vmatpush3.msra.mxu0 %v1141_v52 }
 0x204   :  { %5053 = vmatprep.subr.mxu0 %v1140_v53 }
 0x205   :  { %5054 = vmatpush3.msra.mxu0 %v1140_v53 }
 0x206   :  { %5055 = vmatprep.subr.mxu0 %v1139_v54 }
 0x207   :  { %5056 = vmatpush3.msra.mxu0 %v1139_v54 }
 0x208   :  { %5057 = vmatprep.subr.mxu0 %v1138_v57 }
 0x209   :  { %5058 = vmatpush3.msra.mxu0 %v1138_v57 }
 0x20a   :  { %5059 = vmatprep.subr.mxu0 %v1137_v59 }
 0x20b   :  { %5060 = vmatpush3.msra.mxu0 %v1137_v59 }
 0x20c   :  { %5061 = vmatprep.subr.mxu0 %v1136_v62 }
 0x20d   :  { %5062 = vmatpush3.msra.mxu0 %v1136_v62 }
 0x20e   :  { %5063 = vmatprep.subr.mxu0 %v1135_v0 }
 0x20f   :  { %5064 = vmatpush3.msra.mxu0 %v1135_v0 }
 0x210   :  { %5065 = vmatprep.subr.mxu0 %v1134_v1 }
 0x211   :  { %5066 = vmatpush3.msra.mxu0 %v1134_v1 }
 0x212   :  { %5067 = vmatprep.subr.mxu0 %v1133_v2 }
 0x213   :  { %5068 = vmatpush3.msra.mxu0 %v1133_v2 }
 0x214   :  { %5069 = vmatprep.subr.mxu0 %v1132_v3 }
 0x215   :  { %5070 = vmatpush3.msra.mxu0 %v1132_v3 }
 0x216   :  { %5072 = vmatmul.mubr.f32.vlgmr.msra.gmra.mxu0 %v5992_v55 }
 0x217   :  { %5074 = vmatprep.mubr.f32.mxu0 %v6002_v60 }
 0x21a   :  { %5075 = vmatmul.mubr.f32.gmra.mxu0 %v5998_v58 }
 0x21b   :  { %5077 = vmatprep.mubr.f32.mxu0 %v6010_v63 }
 0x21e   :  { %5078 = vmatmul.mubr.f32.gmra.mxu0 %v6006_v61 }
 0x295   :  { %v4888_v24 = vpop.f32.mrf.mxu0 }
 0x296   :  { %v586_v34 = vadd.f32 %v4888_v24, %v6039_v28 }
 0x297   :  { %v580_v29 = vpop.f32.mrf.mxu0 }
 0x298   :  { %v581_v30 = vadd.f32 %v580_v29, %v6037_v26  ;;  %v613_v43 = vsel %vm609_vm4, %v586_v34, -inf }
 0x299   :  { %v4891_v32 = vpop.f32.mrf.mxu0 }
 0x29a   :  { %v610_v35 = vsel %vm609_vm4, %v581_v30, -inf  ;;  %v596_v41 = vadd.f32 %v4891_v32, %v6046_v36 }
 0x29b   :  { %v590_v37 = vpop.f32.mrf.mxu0  ;;  %611 = vmax.xlane.f32.xlu0 %v610_v35 }
 0x29c   :  { %v591_v38 = vadd.f32 %v590_v37, %v6042_v33  ;;  %v619_v48 = vsel %vm609_vm4, %v596_v41, -inf }
 0x29d   :  { %v4894_v39 = vpop.f32.mrf.mxu0 }
 0x29e   :  { %v616_v42 = vsel %vm609_vm4, %v591_v38, -inf  ;;  %v606_v47 = vadd.f32 %v4894_v39, %v6054_v44 }
 0x29f   :  { %617 = vmax.xlane.f32.xlu1 %v616_v42  ;;  %614 = vmax.xlane.f32.xlu0 %v613_v43  ;;  %v600_v45 = vpop.f32.mrf.mxu0 }
 0x2a0   :  { %v601_v46 = vadd.f32 %v600_v45, %v6049_v40  ;;  %v625_v50 = vsel %vm609_vm4, %v606_v47, -inf }
 0x2a2   :  { %v622_v49 = vsel %vm609_vm4, %v601_v46, -inf }
 0x2a3   :  { %620 = vmax.xlane.f32.xlu1 %v619_v48  ;;  %623 = vmax.xlane.f32.xlu0 %v622_v49 }
 0x2a7   :  { %626 = vmax.xlane.f32.xlu1 %v625_v50 }
 0x2b6   :  { %v6061_v51 = vpop.f32.mrf.mxu0 }
 0x2b8   :  { %v6063_v52 = vpop.f32.mrf.mxu0 }
 0x2ba   :  { %v6065_v53 = vpop.f32.mrf.mxu0 }
 0x2bc   :  { %v6067_v54 = vpop.f32.mrf.mxu0 }
 0x2be   :  { %v6069_v57 = vpop.f32.mrf.mxu0 }
 0x2c0   :  { %v6071_v59 = vpop.f32.mrf.mxu0 }
 0x2d6   :  { %v5073_v62 = vpop.f32.mrf.mxu0 }
 0x2d8   :  { %v1214_v0 = vpop.f32.mrf.mxu0 }
 0x2da   :  { %v5076_v1 = vpop.f32.mrf.mxu0 }
 0x2dc   :  { %v1224_v2 = vpop.f32.mrf.mxu0 }
 0x2de   :  { %v5079_v3 = vpop.f32.mrf.mxu0 }
 0x2df   :  { %5101 = vmatprep.subr.mxu0 %v5079_v3 }
 0x2e0   :  { %v1234_v4 = vpop.f32.mrf.mxu0  ;;  %5102 = vmatpush3.msra.mxu0 %v5079_v3  ;;  %v803_v3 = vld [vmem:[#allocation2 + $0x270] sm:$0xff] }
 0x2e1   :  { %5103 = vmatprep.subr.mxu0 %v1234_v4 }
 0x2e2   :  { %5104 = vmatpush3.msra.mxu0 %v1234_v4 }
 0x2e3   :  { %5105 = vmatprep.subr.mxu0 %v5076_v1 }
 0x2e4   :  { %5106 = vmatpush3.msra.mxu0 %v5076_v1 }
 0x2e5   :  { %5107 = vmatprep.subr.mxu0 %v1224_v2 }
 0x2e6   :  { %5108 = vmatpush3.msra.mxu0 %v1224_v2 }
 0x2e7   :  { %5109 = vmatprep.subr.mxu0 %v5073_v62 }
 0x2e8   :  { %5110 = vmatpush3.msra.mxu0 %v5073_v62 }
 0x2e9   :  { %5111 = vmatprep.subr.mxu0 %v1214_v0 }
 0x2ea   :  { %5112 = vmatpush3.msra.mxu0 %v1214_v0 }
 0x324   :  { %v612_v5 = vpop.xlane.xlu0 %611 }
 0x325   :  { %v628_v6 = vsub.f32 %v581_v30, %v612_v5  ;;  %v802_v5 = vld [vmem:[#allocation2 + $0x268] sm:$0xff] }
 0x327   :  { %v634_v8 = vmul.f32 1.442695, %v628_v6 }
 0x328   :  { %v618_v9 = vpop.xlane.xlu1 %617  ;;  %v615_v10 = vpop.xlane.xlu0 %614 }
 0x329   :  { %5785 = vpow2.f32 %v634_v8  ;;  %v630_v11 = vsub.f32 %v591_v38, %v618_v9  ;;  %v629_v12 = vsub.f32 %v586_v34, %v615_v10  ;;  %v801_v10 = vld [vmem:[#allocation2 + $0x260] sm:$0xff] }
 0x32b   :  { %v638_v13 = vmul.f32 1.442695, %v630_v11  ;;  %v636_v14 = vmul.f32 1.442695, %v629_v12  ;;  %v800_v12 = vld [vmem:[#allocation2 + $0x258] sm:$0xff] }
 0x32c   :  { %v621_v15 = vpop.xlane.xlu1 %620  ;;  %v624_v16 = vpop.xlane.xlu0 %623 }
 0x32d   :  { %5787 = vpow2.f32 %v638_v13  ;;  %v631_v17 = vsub.f32 %v596_v41, %v621_v15  ;;  %v632_v18 = vsub.f32 %v601_v46, %v624_v16  ;;  %v804_v41 = vld [vmem:[#allocation2 + $0x278] sm:$0xff]  ;;  %v798_v15 = vld [vmem:[#allocation2 + $0x248] sm:$0xff]  ;;  %v797_v16 = vld [vmem:[#allocation2 + $0x240] sm:$0xff] }
 0x32e   :  { %5789 = vpow2.f32 %v636_v14  ;;  %4916 = vmatprep.subr.mxu1 %v804_v41  ;;  %v799_v14 = vld [vmem:[#allocation2 + $0x250] sm:$0xff] }
 0x32f   :  { %v640_v19 = vmul.f32 1.442695, %v631_v17  ;;  %v642_v20 = vmul.f32 1.442695, %v632_v18  ;;  %v796_v17 = vld [vmem:[#allocation2 + $0x238] sm:$0xff]  ;;  %v795_v18 = vld [vmem:[#allocation2 + $0x230] sm:$0xff] }
 0x330   :  { %v627_v21 = vpop.xlane.xlu1 %626 }
 0x331   :  { %5791 = vpow2.f32 %v640_v19  ;;  %v633_v22 = vsub.f32 %v606_v47, %v627_v21  ;;  %v794_v19 = vld [vmem:[#allocation2 + $0x228] sm:$0xff]  ;;  %v792_v21 = vld [vmem:[#allocation2 + $0x218] sm:$0xff] }
 0x332   :  { %5793 = vpow2.f32 %v642_v20  ;;  %v793_v20 = vld [vmem:[#allocation2 + $0x220] sm:$0xff] }
 0x333   :  { %v644_v23 = vmul.f32 1.442695, %v633_v22  ;;  %v791_v22 = vld [vmem:[#allocation2 + $0x210] sm:$0xff] }
 0x335   :  { %5795 = vpow2.f32 %v644_v23  ;;  %v790_v23 = vld [vmem:[#allocation2 + $0x208] sm:$0xff] }
 0x336   :  { %v5786_v24 = vpop.eup %5785 }
 0x337   :  { %v646_v25 = vsel %vm609_vm4, %v5786_v24, 0.0 }
 0x338   :  { %647 = vadd.xlane.f32.xlu0 %v646_v25  ;;  %v1036_v25 = vld [vmem:[#allocation2 + $0x378] sm:$0xff] }
 0x33a   :  { %v5788_v27 = vpop.eup %5787 }
 0x33b   :  { %v5790_v29 = vpop.eup %5789  ;;  %v652_v30 = vsel %vm609_vm4, %v5788_v27, 0.0 }
 0x33c   :  { %v649_v31 = vsel %vm609_vm4, %v5790_v29, 0.0  ;;  %653 = vadd.xlane.f32.xlu0 %v652_v30  ;;  %v1035_v30 = vld [vmem:[#allocation2 + $0x370] sm:$0xff] }
 0x33d   :  { %650 = vadd.xlane.f32.xlu1 %v649_v31 }
 0x33e   :  { %v5792_v32 = vpop.eup %5791 }
 0x33f   :  { %v5794_v34 = vpop.eup %5793  ;;  %v655_v35 = vsel %vm609_vm4, %v5792_v32, 0.0 }
 0x340   :  { %v658_v37 = vsel %vm609_vm4, %v5794_v34, 0.0 }
 0x341   :  { %656 = vadd.xlane.f32.xlu1 %v655_v35  ;;  %659 = vadd.xlane.f32.xlu0 %v658_v37  ;;  %v1033_v35 = vld [vmem:[#allocation2 + $0x360] sm:$0xff] }
 0x342   :  { %v5796_v38 = vpop.eup %5795 }
 0x343   :  { %v661_v39 = vsel %vm609_vm4, %v5796_v38, 0.0 }
 0x345   :  { %662 = vadd.xlane.f32.xlu1 %v661_v39 }
 0x3c1   :  { %v648_v42 = vpop.xlane.xlu0 %647 }
 0x3c2   :  { %5797 = vrcp.f32 %v648_v42  ;;  %v1030_v42 = vld [vmem:[#allocation2 + $0x348] sm:$0xff] }
 0x3c5   :  { %v654_v43 = vpop.xlane.xlu0 %653 }
 0x3c6   :  { %v651_v45 = vpop.xlane.xlu1 %650  ;;  %5799 = vrcp.f32 %v654_v43  ;;  %v1029_v43 = vld [vmem:[#allocation2 + $0x340] sm:$0xff] }
 0x3c7   :  { %5801 = vrcp.f32 %v651_v45  ;;  %v1028_v45 = vld [vmem:[#allocation2 + $0x338] sm:$0xff] }
 0x3ca   :  { %v657_v46 = vpop.xlane.xlu1 %656  ;;  %v660_v47 = vpop.xlane.xlu0 %659 }
 0x3cb   :  { %5803 = vrcp.f32 %v657_v46  ;;  %v1027_v46 = vld [vmem:[#allocation2 + $0x330] sm:$0xff] }
 0x3cc   :  { %5805 = vrcp.f32 %v660_v47  ;;  %v1026_v47 = vld [vmem:[#allocation2 + $0x328] sm:$0xff] }
 0x3ce   :  { %v663_v48 = vpop.xlane.xlu1 %662 }
 0x3cf   :  { %v5798_v49 = vpop.eup %5797  ;;  %5807 = vrcp.f32 %v663_v48  ;;  %v1025_v48 = vld [vmem:[#allocation2 + $0x320] sm:$0xff] }
 0x3d0   :  { %v665_v50 = vmul.f32 %v5798_v49, %v5786_v24  ;;  %v789_v24 = vld [vmem:[#allocation2 + $0x200] sm:$0xff]  ;;  %v1024_v49 = vld [vmem:[#allocation2 + $0x318] sm:$0xff] }
 0x3d2   :  { %4907 = vmatprep.mubr.msk.f32.mxu1 %vm609_vm4, %v665_v50  ;;  %v1023_v50 = vld [vmem:[#allocation2 + $0x310] sm:$0xff] }
 0x3d3   :  { %v5800_v62 = vpop.eup %5799 }
 0x3d4   :  { %v5802_v0 = vpop.eup %5801  ;;  %v669_v1 = vmul.f32 %v5800_v62, %v5788_v27  ;;  %v1022_v62 = vld [vmem:[#allocation2 + $0x308] sm:$0xff] }
 0x3d5   :  { %v667_v2 = vmul.f32 %v5802_v0, %v5790_v29  ;;  %v1021_v0 = vld [vmem:[#allocation2 + $0x300] sm:$0xff] }
 0x3d7   :  { %4908 = vmatmul.mubr.msk.f32.vlgmr.msra.gmra.mxu1 %vm609_vm4, %v667_v2 }
 0x3d8   :  { %v5804_v4 = vpop.eup %5803  ;;  %4910 = vmatprep.mubr.msk.f32.mxu1 %vm609_vm4, %v669_v1  ;;  %4917 = vmatpush3.msra.mxu1 %v804_v41  ;;  %v1031_v41 = vld [vmem:[#allocation2 + $0x350] sm:$0xff] }
 0x3d9   :  { %v5806_v6 = vpop.eup %5805  ;;  %v671_v8 = vmul.f32 %v5804_v4, %v5792_v32  ;;  %4918 = vmatprep.subr.mxu1 %v803_v3  ;;  %v1034_v32 = vld [vmem:[#allocation2 + $0x368] sm:$0xff] }
 0x3da   :  { %v673_v9 = vmul.f32 %v5806_v6, %v5794_v34  ;;  %4919 = vmatpush3.msra.mxu1 %v803_v3 }
 0x3db   :  { %4911 = vmatmul.mubr.msk.f32.gmra.mxu1 %vm609_vm4, %v671_v8  ;;  %4920 = vmatprep.subr.mxu1 %v802_v5 }
 0x3dc   :  { %v5808_v11 = vpop.eup %5807  ;;  %4913 = vmatprep.mubr.msk.f32.mxu1 %vm609_vm4, %v673_v9  ;;  %4921 = vmatpush3.msra.mxu1 %v802_v5 }
 0x3dd   :  { %v675_v13 = vmul.f32 %v5808_v11, %v5796_v38  ;;  %4922 = vmatprep.subr.mxu1 %v801_v10  ;;  %v1032_v38 = vld [vmem:[#allocation2 + $0x358] sm:$0xff] }
 0x3de   :  { %4923 = vmatpush3.msra.mxu1 %v801_v10 }
 0x3df   :  { %4914 = vmatmul.mubr.msk.f32.gmra.mxu1 %vm609_vm4, %v675_v13  ;;  %4924 = vmatprep.subr.mxu1 %v800_v12 }
 0x3e0   :  { %4925 = vmatpush3.msra.mxu1 %v800_v12 }
 0x3e1   :  { %4926 = vmatprep.subr.mxu1 %v799_v14 }
 0x3e2   :  { %4927 = vmatpush3.msra.mxu1 %v799_v14 }
 0x3e3   :  { %4928 = vmatprep.subr.mxu1 %v798_v15 }
 0x3e4   :  { %4929 = vmatpush3.msra.mxu1 %v798_v15 }
 0x3e5   :  { %4930 = vmatprep.subr.mxu1 %v797_v16 }
 0x3e6   :  { %4931 = vmatpush3.msra.mxu1 %v797_v16 }
 0x3e7   :  { %4932 = vmatprep.subr.mxu1 %v796_v17 }
 0x3e8   :  { %4933 = vmatpush3.msra.mxu1 %v796_v17 }
 0x3e9   :  { %4934 = vmatprep.subr.mxu1 %v795_v18 }
 0x3ea   :  { %4935 = vmatpush3.msra.mxu1 %v795_v18 }
 0x3eb   :  { %4936 = vmatprep.subr.mxu1 %v794_v19 }
 0x3ec   :  { %4937 = vmatpush3.msra.mxu1 %v794_v19 }
 0x3ed   :  { %4938 = vmatprep.subr.mxu1 %v793_v20 }
 0x3ee   :  { %4939 = vmatpush3.msra.mxu1 %v793_v20 }
 0x3ef   :  { %4940 = vmatprep.subr.mxu1 %v792_v21 }
 0x3f0   :  { %4941 = vmatpush3.msra.mxu1 %v792_v21 }
 0x3f1   :  { %4942 = vmatprep.subr.mxu1 %v791_v22 }
 0x3f2   :  { %4943 = vmatpush3.msra.mxu1 %v791_v22 }
 0x3f3   :  { %4944 = vmatprep.subr.mxu1 %v790_v23 }
 0x3f4   :  { %4945 = vmatpush3.msra.mxu1 %v790_v23 }
 0x3f5   :  { %4946 = vmatprep.subr.mxu1 %v789_v24 }
 0x3f6   :  { %4947 = vmatpush3.msra.mxu1 %v789_v24 }
 0x3f7   :  { %4998 = vmatprep.subr.mxu1 %v1036_v25 }
 0x497   :  { %v4909_v27 = vpop.f32.mrf.mxu1 }
 0x499   :  { %v760_v29 = vpop.f32.mrf.mxu1 }
 0x49a   :  { %4948 = vmatprep.mubr.f32.mxu1 %v760_v29 }
 0x49b   :  { %v4912_v31 = vpop.f32.mrf.mxu1  ;;  %4949 = vmatmul.mubr.f32.vlgmr.msra.gmra.mxu1 %v4909_v27 }
 0x49c   :  { %4999 = vmatpush3.msra.mxu1 %v1036_v25 }
 0x49d   :  { %5000 = vmatprep.subr.mxu1 %v1035_v30  ;;  %v770_v34 = vpop.f32.mrf.mxu1 }
 0x49e   :  { %5001 = vmatpush3.msra.mxu1 %v1035_v30  ;;  %4951 = vmatprep.mubr.f32.mxu1 %v770_v34 }
 0x49f   :  { %5002 = vmatprep.subr.mxu1 %v1034_v32  ;;  %v4915_v37 = vpop.f32.mrf.mxu1  ;;  %4952 = vmatmul.mubr.f32.gmra.mxu1 %v4912_v31 }
 0x4a0   :  { %5003 = vmatpush3.msra.mxu1 %v1034_v32 }
 0x4a1   :  { %5004 = vmatprep.subr.mxu1 %v1033_v35  ;;  %v780_v39 = vpop.f32.mrf.mxu1 }
 0x4a2   :  { %5005 = vmatpush3.msra.mxu1 %v1033_v35  ;;  %4954 = vmatprep.mubr.f32.mxu1 %v780_v39 }
 0x4a3   :  { %5006 = vmatprep.subr.mxu1 %v1032_v38  ;;  %4955 = vmatmul.mubr.f32.gmra.mxu1 %v4915_v37 }
 0x4a4   :  { %5007 = vmatpush3.msra.mxu1 %v1032_v38  ;;  %5030 = vmatprep.mubr.f32.mxu1 %v5994_v56 }
 0x4a5   :  { %5008 = vmatprep.subr.mxu1 %v1031_v41 }
 0x4a6   :  { %5009 = vmatpush3.msra.mxu1 %v1031_v41 }
 0x4a7   :  { %5010 = vmatprep.subr.mxu1 %v1030_v42 }
 0x4a8   :  { %5011 = vmatpush3.msra.mxu1 %v1030_v42 }
 0x4a9   :  { %5012 = vmatprep.subr.mxu1 %v1029_v43 }
 0x4aa   :  { %5013 = vmatpush3.msra.mxu1 %v1029_v43 }
 0x4ab   :  { %5014 = vmatprep.subr.mxu1 %v1028_v45 }
 0x4ac   :  { %5015 = vmatpush3.msra.mxu1 %v1028_v45 }
 0x4ad   :  { %5016 = vmatprep.subr.mxu1 %v1027_v46 }
 0x4ae   :  { %5017 = vmatpush3.msra.mxu1 %v1027_v46 }
 0x4af   :  { %5018 = vmatprep.subr.mxu1 %v1026_v47 }
 0x4b0   :  { %5019 = vmatpush3.msra.mxu1 %v1026_v47 }
 0x4b1   :  { %5020 = vmatprep.subr.mxu1 %v1025_v48 }
 0x4b2   :  { %5021 = vmatpush3.msra.mxu1 %v1025_v48 }
 0x4b3   :  { %5022 = vmatprep.subr.mxu1 %v1024_v49 }
 0x4b4   :  { %5023 = vmatpush3.msra.mxu1 %v1024_v49 }
 0x4b5   :  { %5024 = vmatprep.subr.mxu1 %v1023_v50 }
 0x4b6   :  { %5025 = vmatpush3.msra.mxu1 %v1023_v50 }
 0x4b7   :  { %5026 = vmatprep.subr.mxu1 %v1022_v62 }
 0x4b8   :  { %5027 = vmatpush3.msra.mxu1 %v1022_v62 }
 0x4b9   :  { %5028 = vmatprep.subr.mxu1 %v1021_v0 }
 0x4ba   :  { %5029 = vmatpush3.msra.mxu1 %v1021_v0 }
 0x4bb   :  { %5031 = vmatmul.mubr.f32.vlgmr.msra.gmra.mxu1 %v5992_v55 }
 0x4bc   :  { %5033 = vmatprep.mubr.f32.mxu1 %v6002_v60 }
 0x4bf   :  { %5034 = vmatmul.mubr.f32.gmra.mxu1 %v5998_v58 }
 0x4c0   :  { %5036 = vmatprep.mubr.f32.mxu1 %v6010_v63 }
 0x4c3   :  { %5037 = vmatmul.mubr.f32.gmra.mxu1 %v6006_v61 }
 0x4c4   :  { %5092 = vmatprep.mubr.f32.mxu1 %v6063_v52 }
 0x55b   :  { %v6092_v1 = vpop.f32.mrf.mxu1 }
 0x55d   :  { %v6094_v2 = vpop.f32.mrf.mxu1 }
 0x55f   :  { %v6096_v3 = vpop.f32.mrf.mxu1 }
 0x561   :  { %v6098_v4 = vpop.f32.mrf.mxu1 }
 0x563   :  { %v6100_v5 = vpop.f32.mrf.mxu1 }
 0x565   :  { %v6102_v6 = vpop.f32.mrf.mxu1 }
 0x57b   :  { %v5032_v8 = vpop.f32.mrf.mxu1 }
 0x57d   :  { %v1103_v9 = vpop.f32.mrf.mxu1 }
 0x57f   :  { %v5035_v10 = vpop.f32.mrf.mxu1 }
 0x581   :  { %v1113_v11 = vpop.f32.mrf.mxu1 }
 0x583   :  { %v5038_v12 = vpop.f32.mrf.mxu1 }
 0x584   :  { %5080 = vmatprep.subr.mxu1 %v5038_v12 }
 0x585   :  { %v1123_v13 = vpop.f32.mrf.mxu1  ;;  %5081 = vmatpush3.xpose.msra.mxu1 %v5038_v12 }
 0x586   :  { %5082 = vmatprep.subr.mxu1 %v1123_v13 }
 0x589   :  { %5083 = vmatpush3.xpose.msra.mxu1 %v1123_v13 }
 0x58a   :  { %5084 = vmatprep.subr.mxu1 %v5035_v10 }
 0x58d   :  { %5085 = vmatpush3.xpose.msra.mxu1 %v5035_v10 }
 0x58e   :  { %5086 = vmatprep.subr.mxu1 %v1113_v11 }
 0x591   :  { %5087 = vmatpush3.xpose.msra.mxu1 %v1113_v11 }
 0x592   :  { %5088 = vmatprep.subr.mxu1 %v5032_v8 }
 0x595   :  { %5089 = vmatpush3.xpose.msra.mxu1 %v5032_v8 }
 0x596   :  { %5090 = vmatprep.subr.mxu1 %v1103_v9 }
 0x599   :  { %5091 = vmatpush3.xpose.msra.mxu1 %v1103_v9 }
 0x59c   :  { %5093 = vmatmul.mubr.f32.vlgmr.msra.gmra.mxu1 %v6061_v51 }
 0x59d   :  { %5095 = vmatprep.mubr.f32.mxu1 %v6067_v54 }
 0x5a0   :  { %5096 = vmatmul.mubr.f32.gmra.mxu1 %v6065_v53 }
 0x5a1   :  { %5098 = vmatprep.mubr.f32.mxu1 %v6071_v59 }
 0x5a4   :  { %5099 = vmatmul.mubr.f32.gmra.mxu1 %v6069_v57 }
 0x65c   :  { %v5094_v52 = vpop.f32.mrf.mxu1 }
 0x65d   :  { %v1315_v14 = vadd.f32 %v5094_v52, %v6039_v28 }
 0x65e   :  { %v1309_v15 = vpop.f32.mrf.mxu1 }
 0x65f   :  { %v1310_v16 = vadd.f32 %v1309_v15, %v6037_v26  ;;  %v1341_v17 = vsel %vm609_vm4, %v1315_v14, -inf }
 0x660   :  { %1342 = vmax.xlane.f32.xlu1 %v1341_v17  ;;  %v5097_v18 = vpop.f32.mrf.mxu1 }
 0x661   :  { %v1325_v51 = vadd.f32 %v5097_v18, %v6046_v36  ;;  %v1338_v54 = vsel %vm609_vm4, %v1310_v16, -inf }
 0x662   :  { %v1319_v19 = vpop.f32.mrf.mxu1  ;;  %1339 = vmax.xlane.f32.xlu0 %v1338_v54 }
 0x663   :  { %v1320_v53 = vadd.f32 %v1319_v19, %v6042_v33  ;;  %v1347_v57 = vsel %vm609_vm4, %v1325_v51, -inf }
 0x664   :  { %1348 = vmax.xlane.f32.xlu1 %v1347_v57  ;;  %v5100_v59 = vpop.f32.mrf.mxu1 }
 0x665   :  { %v1335_v20 = vadd.f32 %v5100_v59, %v6054_v44  ;;  %v1344_v21 = vsel %vm609_vm4, %v1320_v53, -inf }
 0x666   :  { %v1329_v22 = vpop.f32.mrf.mxu1  ;;  %1345 = vmax.xlane.f32.xlu0 %v1344_v21 }
 0x667   :  { %v1330_v23 = vadd.f32 %v1329_v22, %v6049_v40  ;;  %v1353_v24 = vsel %vm609_vm4, %v1335_v20, -inf }
 0x668   :  { %1354 = vmax.xlane.f32.xlu1 %v1353_v24 }
 0x669   :  { %v1350_v25 = vsel %vm609_vm4, %v1330_v23, -inf }
 0x66a   :  { %1351 = vmax.xlane.f32.xlu0 %v1350_v25 }
 0x6e9   :  { %v1343_v27 = vpop.xlane.xlu1 %1342 }
 0x6ea   :  { %v1357_v29 = vsub.f32 %v1315_v14, %v1343_v27  ;;  %v1530_v27 = vld [vmem:[#allocation2 + $0x468] sm:$0xff] }
 0x6eb   :  { %v1340_v30 = vpop.xlane.xlu0 %1339 }
 0x6ec   :  { %v1364_v31 = vmul.f32 1.442695, %v1357_v29  ;;  %v1356_v32 = vsub.f32 %v1310_v16, %v1340_v30  ;;  %v1532_v16 = vld [vmem:[#allocation2 + $0x478] sm:$0xff] }
 0x6ed   :  { %v1349_v34 = vpop.xlane.xlu1 %1348  ;;  %5122 = vmatprep.subr.mxu0 %v1532_v16 }
 0x6ee   :  { %5809 = vpow2.f32 %v1364_v31  ;;  %v1362_v35 = vmul.f32 1.442695, %v1356_v32  ;;  %v1359_v37 = vsub.f32 %v1325_v51, %v1349_v34  ;;  %v1529_v31 = vld [vmem:[#allocation2 + $0x460] sm:$0xff] }
 0x6ef   :  { %v1346_v38 = vpop.xlane.xlu0 %1345 }
 0x6f0   :  { %5811 = vpow2.f32 %v1362_v35  ;;  %v1368_v39 = vmul.f32 1.442695, %v1359_v37  ;;  %v1358_v41 = vsub.f32 %v1320_v53, %v1346_v38  ;;  %v1528_v35 = vld [vmem:[#allocation2 + $0x458] sm:$0xff]  ;;  %v1527_v38 = vld [vmem:[#allocation2 + $0x450] sm:$0xff] }
 0x6f1   :  { %v1355_v42 = vpop.xlane.xlu1 %1354 }
 0x6f2   :  { %5813 = vpow2.f32 %v1368_v39  ;;  %v1366_v43 = vmul.f32 1.442695, %v1358_v41  ;;  %v1361_v45 = vsub.f32 %v1335_v20, %v1355_v42  ;;  %v1526_v39 = vld [vmem:[#allocation2 + $0x448] sm:$0xff]  ;;  %v1525_v41 = vld [vmem:[#allocation2 + $0x440] sm:$0xff]  ;;  %v1524_v42 = vld [vmem:[#allocation2 + $0x438] sm:$0xff] }
 0x6f3   :  { %v1352_v46 = vpop.xlane.xlu0 %1351 }
 0x6f4   :  { %5815 = vpow2.f32 %v1366_v43  ;;  %v1372_v47 = vmul.f32 1.442695, %v1361_v45  ;;  %v1360_v48 = vsub.f32 %v1330_v23, %v1352_v46  ;;  %v1531_v23 = vld [vmem:[#allocation2 + $0x470] sm:$0xff]  ;;  %v1522_v45 = vld [vmem:[#allocation2 + $0x428] sm:$0xff]  ;;  %v1521_v46 = vld [vmem:[#allocation2 + $0x420] sm:$0xff] }
 0x6f5   :  { %v1523_v43 = vld [vmem:[#allocation2 + $0x430] sm:$0xff] }
 0x6f6   :  { %5817 = vpow2.f32 %v1372_v47  ;;  %v1370_v49 = vmul.f32 1.442695, %v1360_v48  ;;  %v1520_v47 = vld [vmem:[#allocation2 + $0x418] sm:$0xff]  ;;  %v1519_v48 = vld [vmem:[#allocation2 + $0x410] sm:$0xff] }
 0x6f8   :  { %5819 = vpow2.f32 %v1370_v49  ;;  %v1518_v49 = vld [vmem:[#allocation2 + $0x408] sm:$0xff] }
 0x6fb   :  { %v5810_v50 = vpop.eup %5809 }
 0x6fc   :  { %v1377_v62 = vsel %vm609_vm4, %v5810_v50, 0.0 }
 0x6fd   :  { %v5812_v0 = vpop.eup %5811  ;;  %1378 = vadd.xlane.f32.xlu1 %v1377_v62 }
 0x6fe   :  { %v1374_v8 = vsel %vm609_vm4, %v5812_v0, 0.0 }
 0x6ff   :  { %v5814_v9 = vpop.eup %5813  ;;  %1375 = vadd.xlane.f32.xlu0 %v1374_v8 }
 0x700   :  { %v1383_v10 = vsel %vm609_vm4, %v5814_v9, 0.0 }
 0x701   :  { %v5816_v11 = vpop.eup %5815  ;;  %1384 = vadd.xlane.f32.xlu1 %v1383_v10 }
 0x702   :  { %v1380_v12 = vsel %vm609_vm4, %v5816_v11, 0.0 }
 0x703   :  { %v5818_v13 = vpop.eup %5817  ;;  %1381 = vadd.xlane.f32.xlu0 %v1380_v12  ;;  %v4097_v12 = vld [vmem:[#allocation2 + $0x480] ss:$0 sm:$0xff] }
 0x704   :  { %v1389_v52 = vsel %vm609_vm4, %v5818_v13, 0.0 }
 0x705   :  { %v5820_v14 = vpop.eup %5819  ;;  %1390 = vadd.xlane.f32.xlu1 %v1389_v52 }
 0x706   :  { %v1386_v15 = vsel %vm609_vm4, %v5820_v14, 0.0 }
 0x707   :  { %1387 = vadd.xlane.f32.xlu0 %v1386_v15 }
 0x786   :  { %v1379_v17 = vpop.xlane.xlu1 %1378 }
 0x787   :  { %5821 = vrcp.f32 %v1379_v17  ;;  %v907_v17 = vadd.f32 %v6096_v3, %v4097_v12  ;;  %v908_v3 = vadd.f32 %v4097_v12, %v6102_v6 }
 0x788   :  { %v1376_v18 = vpop.xlane.xlu0 %1375 }
 0x789   :  { %5823 = vrcp.f32 %v1376_v18 }
 0x78a   :  { %v1385_v51 = vpop.xlane.xlu1 %1384 }
 0x78b   :  { %5825 = vrcp.f32 %v1385_v51 }
 0x78c   :  { %v1382_v54 = vpop.xlane.xlu0 %1381 }
 0x78d   :  { %5827 = vrcp.f32 %v1382_v54 }
 0x78e   :  { %v1391_v19 = vpop.xlane.xlu1 %1390 }
 0x78f   :  { %5829 = vrcp.f32 %v1391_v19  ;;  %v906_v19 = vadd.f32 %v4097_v12, %v6098_v4 }
 0x790   :  { %v1388_v53 = vpop.xlane.xlu0 %1387 }
 0x791   :  { %5831 = vrcp.f32 %v1388_v53 }
 0x794   :  { %v5822_v57 = vpop.eup %5821 }
 0x795   :  { %v1395_v21 = vmul.f32 %v5822_v57, %v5810_v50  ;;  %v1517_v50 = vld [vmem:[#allocation2 + $0x400] sm:$0xff] }
 0x796   :  { %v5824_v59 = vpop.eup %5823 }
 0x797   :  { %v1393_v20 = vmul.f32 %v5824_v59, %v5812_v0 }
 0x798   :  { %v5826_v22 = vpop.eup %5825 }
 0x799   :  { %5113 = vmatprep.mubr.msk.f32.mxu0 %vm609_vm4, %v1393_v20  ;;  %v1399_v29 = vmul.f32 %v5826_v22, %v5814_v9 }
 0x79a   :  { %v5828_v24 = vpop.eup %5827  ;;  %5114 = vmatmul.mubr.msk.f32.vlgmr.msra.gmra.mxu0 %vm609_vm4, %v1395_v21 }
 0x79b   :  { %v1397_v25 = vmul.f32 %v5828_v24, %v5816_v11  ;;  %5123 = vmatpush3.msra.mxu0 %v1532_v16 }
 0x79c   :  { %5124 = vmatprep.subr.mxu0 %v1531_v23  ;;  %v5830_v30 = vpop.eup %5829 }
 0x79d   :  { %5116 = vmatprep.mubr.msk.f32.mxu0 %vm609_vm4, %v1397_v25  ;;  %5125 = vmatpush3.msra.mxu0 %v1531_v23  ;;  %v1403_v37 = vmul.f32 %v5830_v30, %v5818_v13  ;;  %v905_v13 = vadd.f32 %v6092_v1, %v4097_v12  ;;  %v909_v1 = vadd.f32 %v6100_v5, %v4097_v12  ;;  %v1749_v5 = vld [vmem:[#allocation2 + $0x510] sm:$0xff]  ;;  %v1748_v25 = vld [vmem:[#allocation2 + $0x508] sm:$0xff] }
 0x79e   :  { %v5832_v32 = vpop.eup %5831  ;;  %5117 = vmatmul.mubr.msk.f32.gmra.mxu0 %vm609_vm4, %v1399_v29  ;;  %5126 = vmatprep.subr.mxu0 %v1530_v27 }
 0x79f   :  { %v1401_v34 = vmul.f32 %v5832_v32, %v5820_v14  ;;  %5127 = vmatpush3.msra.mxu0 %v1530_v27  ;;  %v904_v14 = vadd.f32 %v4097_v12, %v6094_v2  ;;  %5163 = vmatprep.subr.mxu1 %v1749_v5  ;;  %v5955_v27 = vmov 0.0  }
 0x7a0   :  { %5128 = vmatprep.subr.mxu0 %v1529_v31  ;;  %5164 = vmatpush3.msra.mxu1 %v1749_v5  ;;  %v6146_v29 = vsel %vm60_vm7, 1.0, %v5955_v27  ;;  %v1861_v5 = vld [vmem:[#allocation2 + $0x548] sm:$0xff] }
 0x7a1   :  { %5119 = vmatprep.mubr.msk.f32.mxu0 %vm609_vm4, %v1401_v34  ;;  %5129 = vmatpush3.msra.mxu0 %v1529_v31 }
 0x7a2   :  { %5120 = vmatmul.mubr.msk.f32.gmra.mxu0 %vm609_vm4, %v1403_v37  ;;  %5130 = vmatprep.subr.mxu0 %v1528_v35 }
 0x7a3   :  { %5131 = vmatpush3.msra.mxu0 %v1528_v35  ;;  %5165 = vmatprep.subr.mxu1 %v1748_v25 }
 0x7a4   :  { %5132 = vmatprep.subr.mxu0 %v1527_v38  ;;  %5166 = vmatpush3.msra.mxu1 %v1748_v25  ;;  %v1860_v25 = vld [vmem:[#allocation2 + $0x540] sm:$0xff] }
 0x7a5   :  { %5133 = vmatpush3.msra.mxu0 %v1527_v38 }
 0x7a6   :  { %5134 = vmatprep.subr.mxu0 %v1526_v39 }
 0x7a7   :  { %5135 = vmatpush3.msra.mxu0 %v1526_v39 }
 0x7a8   :  { %5136 = vmatprep.subr.mxu0 %v1525_v41 }
 0x7a9   :  { %5137 = vmatpush3.msra.mxu0 %v1525_v41 }
 0x7aa   :  { %5138 = vmatprep.subr.mxu0 %v1524_v42 }
 0x7ab   :  { %5139 = vmatpush3.msra.mxu0 %v1524_v42 }
 0x7ac   :  { %5140 = vmatprep.subr.mxu0 %v1523_v43 }
 0x7ad   :  { %5141 = vmatpush3.msra.mxu0 %v1523_v43 }
 0x7ae   :  { %5142 = vmatprep.subr.mxu0 %v1522_v45 }
 0x7af   :  { %5143 = vmatpush3.msra.mxu0 %v1522_v45 }
 0x7b0   :  { %5144 = vmatprep.subr.mxu0 %v1521_v46 }
 0x7b1   :  { %5145 = vmatpush3.msra.mxu0 %v1521_v46 }
 0x7b2   :  { %5146 = vmatprep.subr.mxu0 %v1520_v47 }
 0x7b3   :  { %5147 = vmatpush3.msra.mxu0 %v1520_v47 }
 0x7b4   :  { %5148 = vmatprep.subr.mxu0 %v1519_v48 }
 0x7b5   :  { %5149 = vmatpush3.msra.mxu0 %v1519_v48 }
 0x7b6   :  { %5150 = vmatprep.subr.mxu0 %v1518_v49 }
 0x7b7   :  { %5151 = vmatpush3.msra.mxu0 %v1518_v49 }
 0x7b8   :  { %5152 = vmatprep.subr.mxu0 %v1517_v50 }
 0x7b9   :  { %5153 = vmatpush3.msra.mxu0 %v1517_v50 }
 0x85a   :  { %v5115_v62 = vpop.f32.mrf.mxu0 }
 0x85c   :  { %v1488_v0 = vpop.f32.mrf.mxu0 }
 0x85d   :  { %5154 = vmatprep.mubr.f32.mxu0 %v1488_v0 }
 0x85e   :  { %v5118_v8 = vpop.f32.mrf.mxu0  ;;  %5155 = vmatmul.mubr.f32.vlgmr.msra.gmra.mxu0 %v5115_v62 }
 0x860   :  { %v1498_v9 = vpop.f32.mrf.mxu0 }
 0x861   :  { %5157 = vmatprep.mubr.f32.mxu0 %v1498_v9 }
 0x862   :  { %v5121_v10 = vpop.f32.mrf.mxu0  ;;  %5158 = vmatmul.mubr.f32.gmra.mxu0 %v5118_v8 }
 0x864   :  { %v1508_v11 = vpop.f32.mrf.mxu0 }
 0x865   :  { %5160 = vmatprep.mubr.f32.mxu0 %v1508_v11 }
 0x866   :  { %5161 = vmatmul.mubr.f32.gmra.mxu0 %v5121_v10 }
 0x91e   :  { %v5156_v52 = vpop.f32.mrf.mxu0 }
 0x91f   :  { %v1629_v15 = vadd.f32 %v5156_v52, %v905_v13  ;;  %v1746_v52 = vld [vmem:[#allocation2 + $0x4f8] sm:$0xff] }
 0x920   :  { %v1599_v16 = vpop.f32.mrf.mxu0 }
 0x921   :  { %v1628_v18 = vadd.f32 %v1599_v16, %v904_v14  ;;  %v1635_v51 = vadd.f32 %v5992_v55, %v1629_v15  ;;  %v1745_v14 = vld [vmem:[#allocation2 + $0x4f0] sm:$0xff]  ;;  %v1744_v15 = vld [vmem:[#allocation2 + $0x4e8] sm:$0xff]  ;;  %v1743_v16 = vld [vmem:[#allocation2 + $0x4e0] sm:$0xff] }
 0x922   :  { %v5159_v54 = vpop.f32.mrf.mxu0 }
 0x923   :  { %v1631_v53 = vadd.f32 %v5159_v54, %v907_v17  ;;  %1642 = vadd.xlane.f32.xlu1 %v1635_v51  ;;  %v1634_v57 = vadd.f32 %v1628_v18, %v5994_v56  ;;  %v1742_v17 = vld [vmem:[#allocation2 + $0x4d8] sm:$0xff]  ;;  %v1741_v18 = vld [vmem:[#allocation2 + $0x4d0] sm:$0xff]  ;;  %v1739_v54 = vld [vmem:[#allocation2 + $0x4c0] sm:$0xff] }
 0x924   :  { %v1609_v59 = vpop.f32.mrf.mxu0 }
 0x925   :  { %v1630_v20 = vadd.f32 %v1609_v59, %v906_v19  ;;  %1640 = vadd.xlane.f32.xlu0 %v1634_v57  ;;  %v1637_v2 = vadd.f32 %v5998_v58, %v1631_v53  ;;  %v1747_v58 = vld [vmem:[#allocation2 + $0x500] sm:$0xff]  ;;  %v1738_v19 = vld [vmem:[#allocation2 + $0x4b8] sm:$0xff]  ;;  %v1737_v53 = vld [vmem:[#allocation2 + $0x4b0] sm:$0xff] }
 0x926   :  { %v5162_v21 = vpop.f32.mrf.mxu0  ;;  %5167 = vmatprep.subr.mxu1 %v1747_v58  ;;  %v1735_v59 = vld [vmem:[#allocation2 + $0x4a0] sm:$0xff] }
 0x927   :  { %v1633_v22 = vadd.f32 %v5162_v21, %v909_v1  ;;  %1646 = vadd.xlane.f32.xlu1 %v1637_v2  ;;  %v1636_v55 = vadd.f32 %v1630_v20, %v6002_v60  ;;  %5168 = vmatpush3.msra.mxu1 %v1747_v58  ;;  %v1734_v1 = vld [vmem:[#allocation2 + $0x498] sm:$0xff]  ;;  %v1869_v21 = vld [vmem:[#allocation2 + $0x588] sm:$0xff] }
 0x928   :  { %v1619_v23 = vpop.f32.mrf.mxu0  ;;  %5169 = vmatprep.subr.mxu1 %v1746_v52  ;;  %v1871_v20 = vld [vmem:[#allocation2 + $0x598] sm:$0xff] }
 0x929   :  { %v1632_v4 = vadd.f32 %v1619_v23, %v908_v3  ;;  %1644 = vadd.xlane.f32.xlu0 %v1636_v55  ;;  %v1639_v24 = vadd.f32 %v6006_v61, %v1633_v22  ;;  %5170 = vmatpush3.msra.mxu1 %v1746_v52  ;;  %v1868_v3 = vld [vmem:[#allocation2 + $0x580] sm:$0xff]  ;;  %v1867_v22 = vld [vmem:[#allocation2 + $0x578] sm:$0xff]  ;;  %v1865_v23 = vld [vmem:[#allocation2 + $0x568] sm:$0xff] }
 0x92a   :  { %5171 = vmatprep.subr.mxu1 %v1745_v14  ;;  %5204 = vmatprep.subr.mxu0 %v1871_v20  ;;  %v4105_v52 = vld [vmem:[#allocation2 + $0x490] ss:$0 sm:$0xff] }
 0x92b   :  { %1650 = vadd.xlane.f32.xlu1 %v1639_v24  ;;  %v1638_v56 = vadd.f32 %v1632_v4, %v6010_v63  ;;  %5172 = vmatpush3.msra.mxu1 %v1745_v14  ;;  %v1864_v4 = vld [vmem:[#allocation2 + $0x560] sm:$0xff] }
 0x92c   :  { %5173 = vmatprep.subr.mxu1 %v1744_v15  ;;  %5205 = vmatpush3.msra.mxu0 %v1871_v20 }
 0x92d   :  { %1648 = vadd.xlane.f32.xlu0 %v1638_v56  ;;  %5174 = vmatpush3.msra.mxu1 %v1744_v15 }
 0x92e   :  { %5175 = vmatprep.subr.mxu1 %v1743_v16 }
 0x92f   :  { %5176 = vmatpush3.msra.mxu1 %v1743_v16 }
 0x930   :  { %5177 = vmatprep.subr.mxu1 %v1742_v17 }
 0x931   :  { %5178 = vmatpush3.msra.mxu1 %v1742_v17 }
 0x932   :  { %5179 = vmatprep.subr.mxu1 %v1741_v18 }
 0x933   :  { %5180 = vmatpush3.msra.mxu1 %v1741_v18 }
 0x9ac   :  { %v1643_v60 = vpop.xlane.xlu1 %1642 }
 0x9ad   :  { %v1653_v6 = vmul.f32 0.03125, %v1643_v60 }
 0x9ae   :  { %v1641_v61 = vpop.xlane.xlu0 %1640 }
 0x9af   :  { %v1659_v30 = vsub.f32 %v1635_v51, %v1653_v6  ;;  %v1652_v63 = vmul.f32 0.03125, %v1641_v61  ;;  %v1740_v51 = vld [vmem:[#allocation2 + $0x4c8] sm:$0xff] }
 0x9b0   :  { %v1647_v31 = vpop.xlane.xlu1 %1646  ;;  %5181 = vmatprep.subr.mxu1 %v1740_v51 }
 0x9b1   :  { %v1658_v32 = vsub.f32 %v1634_v57, %v1652_v63  ;;  %v1655_v34 = vmul.f32 0.03125, %v1647_v31  ;;  %v6149_v35 = vmul.f32 %v6146_v29, %v1659_v30  ;;  %5182 = vmatpush3.msra.mxu1 %v1740_v51  ;;  %v1736_v57 = vld [vmem:[#allocation2 + $0x4a8] sm:$0xff] }
 0x9b2   :  { %v1645_v37 = vpop.xlane.xlu0 %1644  ;;  %5183 = vmatprep.subr.mxu1 %v1739_v54 }
 0x9b3   :  { %v1661_v38 = vsub.f32 %v1637_v2, %v1655_v34  ;;  %v1654_v39 = vmul.f32 0.03125, %v1645_v37  ;;  %v1671_v7 = vmul.f32 %v6149_v35, %v6149_v35  ;;  %v6154_v41 = vmul.f32 %v6146_v29, %v1658_v32  ;;  %5184 = vmatpush3.msra.mxu1 %v1739_v54  ;;  %v1870_v2 = vld [vmem:[#allocation2 + $0x590] sm:$0xff] }
 0x9b4   :  { %v1651_v42 = vpop.xlane.xlu1 %1650  ;;  %5185 = vmatprep.subr.mxu1 %v1738_v19  ;;  %5206 = vmatprep.subr.mxu0 %v1870_v2 }
 0x9b5   :  { %v1660_v43 = vsub.f32 %v1636_v55, %v1654_v39  ;;  %v1657_v45 = vmul.f32 0.03125, %v1651_v42  ;;  %1678 = vadd.xlane.f32.xlu1 %v1671_v7  ;;  %v1670_v46 = vmul.f32 %v6154_v41, %v6154_v41  ;;  %v6159_v47 = vmul.f32 %v6146_v29, %v1661_v38  ;;  %5186 = vmatpush3.msra.mxu1 %v1738_v19  ;;  %v1866_v55 = vld [vmem:[#allocation2 + $0x570] sm:$0xff] }
 0x9b6   :  { %v1649_v48 = vpop.xlane.xlu0 %1648  ;;  %5187 = vmatprep.subr.mxu1 %v1737_v53  ;;  %5207 = vmatpush3.msra.mxu0 %v1870_v2  ;;  %v1859_v2 = vld [vmem:[#allocation2 + $0x538] sm:$0xff] }
 0x9b7   :  { %v1663_v49 = vsub.f32 %v1639_v24, %v1657_v45  ;;  %v1656_v50 = vmul.f32 0.03125, %v1649_v48  ;;  %1676 = vadd.xlane.f32.xlu0 %v1670_v46  ;;  %v1673_v62 = vmul.f32 %v6159_v47, %v6159_v47  ;;  %v6164_v0 = vmul.f32 %v6146_v29, %v1660_v43  ;;  %5188 = vmatpush3.msra.mxu1 %v1737_v53  ;;  %v1863_v24 = vld [vmem:[#allocation2 + $0x558] sm:$0xff] }
 0x9b8   :  { %5189 = vmatprep.subr.mxu1 %v1736_v57  ;;  %5208 = vmatprep.subr.mxu0 %v1869_v21 }
 0x9b9   :  { %v1662_v8 = vsub.f32 %v1638_v56, %v1656_v50  ;;  %1682 = vadd.xlane.f32.xlu1 %v1673_v62  ;;  %v1672_v9 = vmul.f32 %v6164_v0, %v6164_v0  ;;  %v6169_v10 = vmul.f32 %v6146_v29, %v1663_v49  ;;  %5190 = vmatpush3.msra.mxu1 %v1736_v57  ;;  %v1862_v56 = vld [vmem:[#allocation2 + $0x550] sm:$0xff]  ;;  %v4104_v50 = vld [vmem:[#allocation2 + $0x488] ss:$0 sm:$0xff] }
 0x9ba   :  { %5191 = vmatprep.subr.mxu1 %v1735_v59  ;;  %5209 = vmatpush3.msra.mxu0 %v1869_v21  ;;  %v1857_v21 = vld [vmem:[#allocation2 + $0x528] sm:$0xff] }
 0x9bb   :  { %1680 = vadd.xlane.f32.xlu0 %v1672_v9  ;;  %v1675_v11 = vmul.f32 %v6169_v10, %v6169_v10  ;;  %v6174_v12 = vmul.f32 %v6146_v29, %v1662_v8  ;;  %5192 = vmatpush3.msra.mxu1 %v1735_v59 }
 0x9bc   :  { %5193 = vmatprep.subr.mxu1 %v1734_v1  ;;  %5210 = vmatprep.subr.mxu0 %v1868_v3 }
 0x9bd   :  { %1686 = vadd.xlane.f32.xlu1 %v1675_v11  ;;  %v1674_v13 = vmul.f32 %v6174_v12, %v6174_v12  ;;  %5194 = vmatpush3.msra.mxu1 %v1734_v1 }
 0x9be   :  { %5211 = vmatpush3.msra.mxu0 %v1868_v3  ;;  %v4106_v3 = vld [vmem:[#allocation2 + $0x518] ss:$0 sm:$0xff] }
 0x9bf   :  { %1684 = vadd.xlane.f32.xlu0 %v1674_v13  ;;  %5212 = vmatprep.subr.mxu0 %v1867_v22 }
 0x9c0   :  { %5213 = vmatpush3.msra.mxu0 %v1867_v22 }
 0x9c1   :  { %5214 = vmatprep.subr.mxu0 %v1866_v55 }
 0x9c2   :  { %5215 = vmatpush3.msra.mxu0 %v1866_v55 }
 0x9c3   :  { %5216 = vmatprep.subr.mxu0 %v1865_v23 }
 0x9c4   :  { %5217 = vmatpush3.msra.mxu0 %v1865_v23 }
 0x9c5   :  { %5218 = vmatprep.subr.mxu0 %v1864_v4 }
 0x9c6   :  { %5219 = vmatpush3.msra.mxu0 %v1864_v4 }
 0x9c7   :  { %5220 = vmatprep.subr.mxu0 %v1863_v24 }
 0x9c8   :  { %5221 = vmatpush3.msra.mxu0 %v1863_v24 }
 0x9c9   :  { %5222 = vmatprep.subr.mxu0 %v1862_v56 }
 0x9ca   :  { %5223 = vmatpush3.msra.mxu0 %v1862_v56 }
 0x9cb   :  { %5224 = vmatprep.subr.mxu0 %v1861_v5 }
 0x9cc   :  { %5225 = vmatpush3.msra.mxu0 %v1861_v5 }
 0x9cd   :  { %5226 = vmatprep.subr.mxu0 %v1860_v25 }
 0x9ce   :  { %5227 = vmatpush3.msra.mxu0 %v1860_v25 }
 0x9cf   :  { %5228 = vmatprep.subr.mxu0 %v1859_v2 }
 0x9d0   :  { %5229 = vmatpush3.msra.mxu0 %v1859_v2 }
 0xa3e   :  { %v1679_v58 = vpop.xlane.xlu1 %1678 }
 0xa3f   :  { %v1689_v60 = vmul.f32 0.03125, %v1679_v58 }
 0xa40   :  { %v1677_v6 = vpop.xlane.xlu0 %1676 }
 0xa41   :  { %v1695_v27 = vadd.f32 1e-05, %v1689_v60  ;;  %v1688_v61 = vmul.f32 0.03125, %v1677_v6 }
 0xa42   :  { %v1683_v30 = vpop.xlane.xlu1 %1682 }
 0xa43   :  { %5833 = vrsqrt.f32 %v1695_v27  ;;  %v1694_v63 = vadd.f32 1e-05, %v1688_v61  ;;  %v1691_v31 = vmul.f32 0.03125, %v1683_v30 }
 0xa44   :  { %v1681_v32 = vpop.xlane.xlu0 %1680 }
 0xa45   :  { %5835 = vrsqrt.f32 %v1694_v63  ;;  %v1697_v34 = vadd.f32 1e-05, %v1691_v31  ;;  %v1690_v37 = vmul.f32 0.03125, %v1681_v32 }
 0xa46   :  { %v1687_v38 = vpop.xlane.xlu1 %1686 }
 0xa47   :  { %5837 = vrsqrt.f32 %v1697_v34  ;;  %v1696_v39 = vadd.f32 1e-05, %v1690_v37  ;;  %v1693_v7 = vmul.f32 0.03125, %v1687_v38  ;;  %v4107_v37 = vld [vmem:[#allocation2 + $0x5a0] ss:$0 sm:$0xff] }
 0xa48   :  { %v1685_v42 = vpop.xlane.xlu0 %1684 }
 0xa49   :  { %5839 = vrsqrt.f32 %v1696_v39  ;;  %v1699_v43 = vadd.f32 1e-05, %v1693_v7  ;;  %v1692_v45 = vmul.f32 0.03125, %v1685_v42 }
 0xa4b   :  { %5841 = vrsqrt.f32 %v1699_v43  ;;  %v1698_v46 = vadd.f32 1e-05, %v1692_v45 }
 0xa4d   :  { %5843 = vrsqrt.f32 %v1698_v46 }
 0xa50   :  { %v5834_v48 = vpop.eup %5833 }
 0xa51   :  { %v1707_v49 = vmul.f32 %v5834_v48, %v6149_v35 }
 0xa52   :  { %v5836_v62 = vpop.eup %5835 }
 0xa53   :  { %v1706_v8 = vmul.f32 %v5836_v62, %v6154_v41  ;;  %v1718_v11 = vmul.f32 %v4104_v50, %v1707_v49 }
 0xa54   :  { %v5838_v9 = vpop.eup %5837 }
 0xa55   :  { %v1717_v13 = vmul.f32 %v4104_v50, %v1706_v8  ;;  %v1709_v14 = vmul.f32 %v5838_v9, %v6159_v47  ;;  %v1729_v51 = vadd.f32 %v4105_v52, %v1718_v11 }
 0xa56   :  { %v5840_v15 = vpop.eup %5839 }
 0xa57   :  { %v6181_v16 = vadd.f32 %v4105_v52, %v1717_v13  ;;  %v1708_v17 = vmul.f32 %v5840_v15, %v6164_v0  ;;  %v1720_v54 = vmul.f32 %v4104_v50, %v1709_v14 }
 0xa58   :  { %v5842_v18 = vpop.eup %5841 }
 0xa59   :  { %5195 = vmatprep.mubr.f32.mxu1 %v6181_v16  ;;  %v1719_v35 = vmul.f32 %v4104_v50, %v1708_v17  ;;  %v1711_v19 = vmul.f32 %v5842_v18, %v6169_v10  ;;  %v1731_v47 = vadd.f32 %v4105_v52, %v1720_v54  ;;  %v1858_v10 = vld [vmem:[#allocation2 + $0x530] sm:$0xff]  ;;  %v2086_v54 = vld [vmem:[#allocation2 + $0x620] sm:$0xff] }
 0xa5a   :  { %v5844_v41 = vpop.eup %5843  ;;  %5196 = vmatmul.mubr.f32.vlgmr.msra.gmra.mxu1 %v1729_v51  ;;  %5230 = vmatprep.subr.mxu0 %v1858_v10  ;;  %v2088_v17 = vld [vmem:[#allocation2 + $0x630] sm:$0xff] }
 0xa5b   :  { %v6186_v53 = vadd.f32 %v4105_v52, %v1719_v35  ;;  %v1710_v57 = vmul.f32 %v5844_v41, %v6174_v12  ;;  %v1722_v59 = vmul.f32 %v4104_v50, %v1711_v19  ;;  %5231 = vmatpush3.msra.mxu0 %v1858_v10  ;;  %v1856_v12 = vld [vmem:[#allocation2 + $0x520] sm:$0xff]  ;;  %v2199_v18 = vld [vmem:[#allocation2 + $0x6b0] sm:$0xff]  ;;  %5245 = vmatprep.subr.mxu1 %v2088_v17 }
 0xa5c   :  { %5232 = vmatprep.subr.mxu0 %v1857_v21  ;;  %5246 = vmatpush3.msra.mxu1 %v2088_v17  ;;  %v2197_v35 = vld [vmem:[#allocation2 + $0x6a0] sm:$0xff]  ;;  %v2186_v17 = vld [vmem:[#allocation2 + $0x648] sm:$0xff] }
 0xa5d   :  { %5198 = vmatprep.mubr.f32.mxu1 %v6186_v53  ;;  %v1721_v1 = vmul.f32 %v4104_v50, %v1710_v57  ;;  %v1733_v20 = vadd.f32 %v4105_v52, %v1722_v59  ;;  %5233 = vmatpush3.msra.mxu0 %v1857_v21 }
 0xa5e   :  { %5199 = vmatmul.mubr.f32.gmra.mxu1 %v1731_v47  ;;  %5234 = vmatprep.subr.mxu0 %v1856_v12 }
 0xa5f   :  { %v6190_v0 = vadd.f32 %v4105_v52, %v1721_v1  ;;  %5235 = vmatpush3.msra.mxu0 %v1856_v12 }
 0xa60   :  { %5286 = vmatprep.subr.mxu0 %v2199_v18 }
 0xa61   :  { %5201 = vmatprep.mubr.f32.mxu1 %v6190_v0 }
 0xa62   :  { %5202 = vmatmul.mubr.f32.gmra.mxu1 %v1733_v20 }
 0xb1a   :  { %v5197_v22 = vpop.f32.mrf.mxu1 }
 0xb1b   :  { %v1827_v55 = vadd.f32 %v5197_v22, %v4106_v3 }
 0xb1c   :  { %v1821_v23 = vpop.f32.mrf.mxu1 }
 0xb1d   :  { %v1822_v4 = vadd.f32 %v4106_v3, %v1821_v23  ;;  %v1851_v5 = vmax.f32 %v1827_v55, 0.0 }
 0xb1e   :  { %v5200_v24 = vpop.f32.mrf.mxu1 }
 0xb1f   :  { %v1850_v56 = vmax.f32 %v1822_v4, 0.0  ;;  %v1837_v25 = vadd.f32 %v5200_v24, %v4106_v3 }
 0xb20   :  { %v1831_v58 = vpop.f32.mrf.mxu1 }
 0xb21   :  { %v1832_v60 = vadd.f32 %v4106_v3, %v1831_v58  ;;  %5236 = vmatprep.mubr.f32.mxu0 %v1850_v56  ;;  %v1853_v61 = vmax.f32 %v1837_v25, 0.0 }
 0xb22   :  { %v5203_v6 = vpop.f32.mrf.mxu1  ;;  %5237 = vmatmul.mubr.f32.vlgmr.msra.gmra.mxu0 %v1851_v5 }
 0xb23   :  { %v1852_v27 = vmax.f32 %v1832_v60, 0.0  ;;  %v1847_v30 = vadd.f32 %v5203_v6, %v4106_v3  ;;  %5287 = vmatpush3.msra.mxu0 %v2199_v18  ;;  %v2074_v18 = vld [vmem:[#allocation2 + $0x5c0] sm:$0xff] }
 0xb24   :  { %v1841_v63 = vpop.f32.mrf.mxu1 }
 0xb25   :  { %v1842_v31 = vadd.f32 %v4106_v3, %v1841_v63  ;;  %5239 = vmatprep.mubr.f32.mxu0 %v1852_v27  ;;  %v1855_v34 = vmax.f32 %v1847_v30, 0.0 }
 0xb26   :  { %5240 = vmatmul.mubr.f32.gmra.mxu0 %v1853_v61 }
 0xb27   :  { %v1854_v32 = vmax.f32 %v1842_v31, 0.0 }
 0xb29   :  { %5242 = vmatprep.mubr.f32.mxu0 %v1854_v32  ;;  %v2085_v32 = vld [vmem:[#allocation2 + $0x618] sm:$0xff] }
 0xb2a   :  { %5243 = vmatmul.mubr.f32.gmra.mxu0 %v1855_v34  ;;  %v2196_v34 = vld [vmem:[#allocation2 + $0x698] sm:$0xff] }
 0xbe2   :  { %v5238_v38 = vpop.f32.mrf.mxu0 }
 0xbe3   :  { %v1949_v39 = vadd.f32 %v5238_v38, %v4107_v37  ;;  %v2195_v38 = vld [vmem:[#allocation2 + $0x690] sm:$0xff] }
 0xbe4   :  { %v1943_v7 = vpop.f32.mrf.mxu0 }
 0xbe5   :  { %v1944_v42 = vadd.f32 %v4107_v37, %v1943_v7  ;;  %v1973_v43 = vadd.f32 %v1949_v39, %v1729_v51  ;;  %v2198_v51 = vld [vmem:[#allocation2 + $0x6a8] sm:$0xff] }
 0xbe6   :  { %v5241_v45 = vpop.f32.mrf.mxu0  ;;  %5288 = vmatprep.subr.mxu0 %v2198_v51  ;;  %v2083_v39 = vld [vmem:[#allocation2 + $0x608] sm:$0xff] }
 0xbe7   :  { %v1959_v46 = vadd.f32 %v5241_v45, %v4107_v37  ;;  %1980 = vadd.xlane.f32.xlu1 %v1973_v43  ;;  %v1972_v48 = vadd.f32 %v1944_v42, %v6181_v16  ;;  %v2087_v16 = vld [vmem:[#allocation2 + $0x628] sm:$0xff]  ;;  %5289 = vmatpush3.msra.mxu0 %v2198_v51  ;;  %v2082_v42 = vld [vmem:[#allocation2 + $0x600] sm:$0xff]  ;;  %v2081_v45 = vld [vmem:[#allocation2 + $0x5f8] sm:$0xff] }
 0xbe8   :  { %v1953_v49 = vpop.f32.mrf.mxu0  ;;  %5247 = vmatprep.subr.mxu1 %v2087_v16  ;;  %5290 = vmatprep.subr.mxu0 %v2197_v35  ;;  %v2194_v7 = vld [vmem:[#allocation2 + $0x688] sm:$0xff]  ;;  %v2073_v51 = vld [vmem:[#allocation2 + $0x5b8] sm:$0xff] }
 0xbe9   :  { %v1954_v50 = vadd.f32 %v4107_v37, %v1953_v49  ;;  %1978 = vadd.xlane.f32.xlu0 %v1972_v48  ;;  %v1975_v62 = vadd.f32 %v1959_v46, %v1731_v47  ;;  %5248 = vmatpush3.msra.mxu1 %v2087_v16  ;;  %v2192_v46 = vld [vmem:[#allocation2 + $0x678] sm:$0xff]  ;;  %v2191_v49 = vld [vmem:[#allocation2 + $0x670] sm:$0xff]  ;;  %v2185_v16 = vld [vmem:[#allocation2 + $0x640] sm:$0xff] }
 0xbea   :  { %v5244_v8 = vpop.f32.mrf.mxu0  ;;  %5249 = vmatprep.subr.mxu1 %v2086_v54  ;;  %5291 = vmatpush3.msra.mxu0 %v2197_v35  ;;  %v2310_v35 = vld [vmem:[#allocation2 + $0x730] sm:$0xff] }
 0xbeb   :  { %v1969_v9 = vadd.f32 %v5244_v8, %v4107_v37  ;;  %1984 = vadd.xlane.f32.xlu1 %v1975_v62  ;;  %v1974_v11 = vadd.f32 %v1954_v50, %v6186_v53  ;;  %5250 = vmatpush3.msra.mxu1 %v2086_v54  ;;  %v2079_v50 = vld [vmem:[#allocation2 + $0x5e8] sm:$0xff]  ;;  %v2078_v8 = vld [vmem:[#allocation2 + $0x5e0] sm:$0xff]  ;;  %v2184_v54 = vld [vmem:[#allocation2 + $0x638] sm:$0xff] }
 0xbec   :  { %v1963_v13 = vpop.f32.mrf.mxu0  ;;  %5251 = vmatprep.subr.mxu1 %v2085_v32  ;;  %5292 = vmatprep.subr.mxu0 %v2196_v34 }
 0xbed   :  { %v1964_v52 = vadd.f32 %v4107_v37, %v1963_v13  ;;  %1982 = vadd.xlane.f32.xlu0 %v1974_v11  ;;  %v1977_v14 = vadd.f32 %v1969_v9, %v1733_v20  ;;  %5252 = vmatpush3.msra.mxu1 %v2085_v32  ;;  %v2084_v37 = vld [vmem:[#allocation2 + $0x610] sm:$0xff]  ;;  %v2189_v9 = vld [vmem:[#allocation2 + $0x660] sm:$0xff]  ;;  %v2188_v13 = vld [vmem:[#allocation2 + $0x658] sm:$0xff] }
 0xbee   :  { %5253 = vmatprep.subr.mxu1 %v2084_v37  ;;  %5293 = vmatpush3.msra.mxu0 %v2196_v34  ;;  %v4109_v34 = vld [vmem:[#allocation2 + $0x5b0] ss:$0 sm:$0xff] }
 0xbef   :  { %1988 = vadd.xlane.f32.xlu1 %v1977_v14  ;;  %v1976_v15 = vadd.f32 %v1964_v52, %v6190_v0  ;;  %5254 = vmatpush3.msra.mxu1 %v2084_v37  ;;  %v2076_v52 = vld [vmem:[#allocation2 + $0x5d0] sm:$0xff] }
 0xbf0   :  { %5294 = vmatprep.subr.mxu0 %v2195_v38  ;;  %5255 = vmatprep.subr.mxu1 %v2083_v39 }
 0xbf1   :  { %1986 = vadd.xlane.f32.xlu0 %v1976_v15  ;;  %5295 = vmatpush3.msra.mxu0 %v2195_v38 }
 0xbf2   :  { %5256 = vmatpush3.msra.mxu1 %v2083_v39  ;;  %5296 = vmatprep.subr.mxu0 %v2194_v7 }
 0xbf3   :  { %5257 = vmatprep.subr.mxu1 %v2082_v42  ;;  %5297 = vmatpush3.msra.mxu0 %v2194_v7 }
 0xbf4   :  { %5258 = vmatpush3.msra.mxu1 %v2082_v42 }
 0xbf5   :  { %5259 = vmatprep.subr.mxu1 %v2081_v45 }
 0xbf6   :  { %5260 = vmatpush3.msra.mxu1 %v2081_v45 }
 0xc70   :  { %v1981_v19 = vpop.xlane.xlu1 %1980 }
 0xc71   :  { %v1991_v41 = vmul.f32 0.03125, %v1981_v19 }
 0xc72   :  { %v1979_v53 = vpop.xlane.xlu0 %1978 }
 0xc73   :  { %v1997_v57 = vsub.f32 %v1973_v43, %v1991_v41  ;;  %v1990_v47 = vmul.f32 0.03125, %v1979_v53  ;;  %v2193_v43 = vld [vmem:[#allocation2 + $0x680] sm:$0xff] }
 0xc74   :  { %v1985_v59 = vpop.xlane.xlu1 %1984  ;;  %5298 = vmatprep.subr.mxu0 %v2193_v43 }
 0xc75   :  { %v1996_v1 = vsub.f32 %v1972_v48, %v1990_v47  ;;  %v1993_v0 = vmul.f32 0.03125, %v1985_v59  ;;  %v6197_v20 = vmul.f32 %v6146_v29, %v1997_v57  ;;  %5299 = vmatpush3.msra.mxu0 %v2193_v43  ;;  %v2080_v48 = vld [vmem:[#allocation2 + $0x5f0] sm:$0xff] }
 0xc76   :  { %v1983_v2 = vpop.xlane.xlu0 %1982  ;;  %5300 = vmatprep.subr.mxu0 %v2192_v46  ;;  %5261 = vmatprep.subr.mxu1 %v2080_v48 }
 0xc77   :  { %v1999_v10 = vsub.f32 %v1975_v62, %v1993_v0  ;;  %v1992_v21 = vmul.f32 0.03125, %v1983_v2  ;;  %v2009_v12 = vmul.f32 %v6197_v20, %v6197_v20  ;;  %v6202_v3 = vmul.f32 %v6146_v29, %v1996_v1  ;;  %5301 = vmatpush3.msra.mxu0 %v2192_v46  ;;  %5262 = vmatpush3.msra.mxu1 %v2080_v48  ;;  %v2190_v62 = vld [vmem:[#allocation2 + $0x668] sm:$0xff] }
 0xc78   :  { %v1989_v22 = vpop.xlane.xlu1 %1988  ;;  %5302 = vmatprep.subr.mxu0 %v2191_v49  ;;  %5263 = vmatprep.subr.mxu1 %v2079_v50 }
 0xc79   :  { %v1998_v55 = vsub.f32 %v1974_v11, %v1992_v21  ;;  %v1995_v23 = vmul.f32 0.03125, %v1989_v22  ;;  %2016 = vadd.xlane.f32.xlu1 %v2009_v12  ;;  %v2008_v4 = vmul.f32 %v6202_v3, %v6202_v3  ;;  %v6207_v24 = vmul.f32 %v6146_v29, %v1999_v10  ;;  %5303 = vmatpush3.msra.mxu0 %v2191_v49  ;;  %v2077_v11 = vld [vmem:[#allocation2 + $0x5d8] sm:$0xff] }
 0xc7a   :  { %v1987_v56 = vpop.xlane.xlu0 %1986  ;;  %5264 = vmatpush3.msra.mxu1 %v2079_v50  ;;  %5304 = vmatprep.subr.mxu0 %v2190_v62  ;;  %v2308_v50 = vld [vmem:[#allocation2 + $0x720] sm:$0xff] }
 0xc7b   :  { %v2001_v5 = vsub.f32 %v1977_v14, %v1995_v23  ;;  %v1994_v25 = vmul.f32 0.03125, %v1987_v56  ;;  %2014 = vadd.xlane.f32.xlu0 %v2008_v4  ;;  %v2011_v58 = vmul.f32 %v6207_v24, %v6207_v24  ;;  %v6212_v60 = vmul.f32 %v6146_v29, %v1998_v55  ;;  %5265 = vmatprep.subr.mxu1 %v2078_v8  ;;  %v2187_v14 = vld [vmem:[#allocation2 + $0x650] sm:$0xff] }
 0xc7c   :  { %5305 = vmatpush3.msra.mxu0 %v2190_v62  ;;  %5266 = vmatpush3.msra.mxu1 %v2078_v8 }
 0xc7d   :  { %v2000_v6 = vsub.f32 %v1976_v15, %v1994_v25  ;;  %2020 = vadd.xlane.f32.xlu1 %v2011_v58  ;;  %v2010_v27 = vmul.f32 %v6212_v60, %v6212_v60  ;;  %v6217_v61 = vmul.f32 %v6146_v29, %v2001_v5  ;;  %5306 = vmatprep.subr.mxu0 %v2189_v9  ;;  %v2075_v15 = vld [vmem:[#allocation2 + $0x5c8] sm:$0xff] }
 0xc7e   :  { %5267 = vmatprep.subr.mxu1 %v2077_v11  ;;  %5307 = vmatpush3.msra.mxu0 %v2189_v9  ;;  %v4108_v58 = vld [vmem:[#allocation2 + $0x5a8] ss:$0 sm:$0xff]  ;;  %v2307_v9 = vld [vmem:[#allocation2 + $0x718] sm:$0xff] }
 0xc7f   :  { %2018 = vadd.xlane.f32.xlu0 %v2010_v27  ;;  %v2013_v30 = vmul.f32 %v6217_v61, %v6217_v61  ;;  %v6222_v63 = vmul.f32 %v6146_v29, %v2000_v6  ;;  %5268 = vmatpush3.msra.mxu1 %v2077_v11 }
 0xc80   :  { %5308 = vmatprep.subr.mxu0 %v2188_v13  ;;  %5269 = vmatprep.subr.mxu1 %v2076_v52 }
 0xc81   :  { %2024 = vadd.xlane.f32.xlu1 %v2013_v30  ;;  %v2012_v31 = vmul.f32 %v6222_v63, %v6222_v63  ;;  %5309 = vmatpush3.msra.mxu0 %v2188_v13 }
 0xc82   :  { %5270 = vmatpush3.msra.mxu1 %v2076_v52  ;;  %5310 = vmatprep.subr.mxu0 %v2187_v14  ;;  %v2305_v52 = vld [vmem:[#allocation2 + $0x708] sm:$0xff] }
 0xc83   :  { %2022 = vadd.xlane.f32.xlu0 %v2012_v31  ;;  %5271 = vmatprep.subr.mxu1 %v2075_v15 }
 0xc84   :  { %5311 = vmatpush3.msra.mxu0 %v2187_v14  ;;  %5272 = vmatpush3.msra.mxu1 %v2075_v15  ;;  %v2304_v14 = vld [vmem:[#allocation2 + $0x700] sm:$0xff]  ;;  %v2303_v15 = vld [vmem:[#allocation2 + $0x6f8] sm:$0xff] }
 0xc85   :  { %5312 = vmatprep.subr.mxu0 %v2186_v17  ;;  %5273 = vmatprep.subr.mxu1 %v2074_v18 }
 0xc86   :  { %5313 = vmatpush3.msra.mxu0 %v2186_v17  ;;  %5274 = vmatpush3.msra.mxu1 %v2074_v18  ;;  %v2302_v17 = vld [vmem:[#allocation2 + $0x6f0] sm:$0xff]  ;;  %v2301_v18 = vld [vmem:[#allocation2 + $0x6e8] sm:$0xff] }
 0xc87   :  { %5314 = vmatprep.subr.mxu0 %v2185_v16  ;;  %5275 = vmatprep.subr.mxu1 %v2073_v51 }
 0xc88   :  { %5315 = vmatpush3.msra.mxu0 %v2185_v16  ;;  %5276 = vmatpush3.msra.mxu1 %v2073_v51  ;;  %v2300_v16 = vld [vmem:[#allocation2 + $0x6e0] sm:$0xff]  ;;  %v2299_v51 = vld [vmem:[#allocation2 + $0x6d8] sm:$0xff] }
 0xc89   :  { %5316 = vmatprep.subr.mxu0 %v2184_v54  ;;  %5327 = vmatprep.subr.mxu1 %v2310_v35 }
 0xc8a   :  { %5317 = vmatpush3.msra.mxu0 %v2184_v54  ;;  %v2298_v54 = vld [vmem:[#allocation2 + $0x6d0] sm:$0xff] }
 0xd02   :  { %v2017_v19 = vpop.xlane.xlu1 %2016 }
 0xd03   :  { %v2027_v41 = vmul.f32 0.03125, %v2017_v19  ;;  %v2296_v19 = vld [vmem:[#allocation2 + $0x6c0] sm:$0xff] }
 0xd04   :  { %v2015_v53 = vpop.xlane.xlu0 %2014 }
 0xd05   :  { %v2033_v57 = vadd.f32 1e-05, %v2027_v41  ;;  %v2026_v47 = vmul.f32 0.03125, %v2015_v53  ;;  %v2295_v41 = vld [vmem:[#allocation2 + $0x6b8] sm:$0xff] }
 0xd06   :  { %v2021_v59 = vpop.xlane.xlu1 %2020 }
 0xd07   :  { %5845 = vrsqrt.f32 %v2033_v57  ;;  %v2032_v1 = vadd.f32 1e-05, %v2026_v47  ;;  %v2029_v0 = vmul.f32 0.03125, %v2021_v59 }
 0xd08   :  { %v2019_v2 = vpop.xlane.xlu0 %2018 }
 0xd09   :  { %5847 = vrsqrt.f32 %v2032_v1  ;;  %v2035_v10 = vadd.f32 1e-05, %v2029_v0  ;;  %v2028_v21 = vmul.f32 0.03125, %v2019_v2 }
 0xd0a   :  { %v2025_v12 = vpop.xlane.xlu1 %2024 }
 0xd0b   :  { %5849 = vrsqrt.f32 %v2035_v10  ;;  %v2034_v22 = vadd.f32 1e-05, %v2028_v21  ;;  %v2031_v55 = vmul.f32 0.03125, %v2025_v12 }
 0xd0c   :  { %v2023_v23 = vpop.xlane.xlu0 %2022 }
 0xd0d   :  { %5851 = vrsqrt.f32 %v2034_v22  ;;  %v2037_v4 = vadd.f32 1e-05, %v2031_v55  ;;  %v2030_v56 = vmul.f32 0.03125, %v2023_v23  ;;  %v2816_v55 = vld [vmem:[#allocation2 + $0x830] sm:$0xff] }
 0xd0f   :  { %5853 = vrsqrt.f32 %v2037_v4  ;;  %v2036_v5 = vadd.f32 1e-05, %v2030_v56  ;;  %v2815_v56 = vld [vmem:[#allocation2 + $0x828] sm:$0xff] }
 0xd11   :  { %5855 = vrsqrt.f32 %v2036_v5 }
 0xd14   :  { %v5846_v25 = vpop.eup %5845 }
 0xd15   :  { %v2045_v6 = vmul.f32 %v5846_v25, %v6197_v20  ;;  %v2814_v25 = vld [vmem:[#allocation2 + $0x820] sm:$0xff] }
 0xd16   :  { %v5848_v27 = vpop.eup %5847 }
 0xd17   :  { %v2044_v30 = vmul.f32 %v5848_v27, %v6202_v3  ;;  %v2056_v32 = vmul.f32 %v4108_v58, %v2045_v6  ;;  %v2309_v3 = vld [vmem:[#allocation2 + $0x728] sm:$0xff]  ;;  %v2813_v6 = vld [vmem:[#allocation2 + $0x818] sm:$0xff] }
 0xd18   :  { %v5850_v31 = vpop.eup %5849 }
 0xd19   :  { %v2055_v37 = vmul.f32 %v4108_v58, %v2044_v30  ;;  %v2047_v38 = vmul.f32 %v5850_v31, %v6207_v24  ;;  %v6232_v45 = vadd.f32 %v4109_v34, %v2056_v32  ;;  %v2812_v31 = vld [vmem:[#allocation2 + $0x810] sm:$0xff] }
 0xd1a   :  { %v5852_v39 = vpop.eup %5851 }
 0xd1b   :  { %v6229_v7 = vadd.f32 %v4109_v34, %v2055_v37  ;;  %v2046_v42 = vmul.f32 %v5852_v39, %v6212_v60  ;;  %v2058_v46 = vmul.f32 %v4108_v58, %v2047_v38  ;;  %v2810_v37 = vld [vmem:[#allocation2 + $0x800] sm:$0xff]  ;;  %v2809_v38 = vld [vmem:[#allocation2 + $0x7f8] sm:$0xff]  ;;  %v2808_v39 = vld [vmem:[#allocation2 + $0x7f0] sm:$0xff] }
 0xd1c   :  { %v5854_v43 = vpop.eup %5853 }
 0xd1d   :  { %v2057_v48 = vmul.f32 %v4108_v58, %v2046_v42  ;;  %v2049_v20 = vmul.f32 %v5854_v43, %v6217_v61  ;;  %5277 = vmatprep.mubr.f32.mxu1 %v6229_v7  ;;  %5318 = vmatprep.mubr.f32.mxu0 %v6229_v7  ;;  %v6242_v62 = vadd.f32 %v4109_v34, %v2058_v46  ;;  %v2807_v42 = vld [vmem:[#allocation2 + $0x7e8] sm:$0xff]  ;;  %v2806_v43 = vld [vmem:[#allocation2 + $0x7e0] sm:$0xff]  ;;  %v2805_v46 = vld [vmem:[#allocation2 + $0x7d8] sm:$0xff] }
 0xd1e   :  { %v5856_v49 = vpop.eup %5855  ;;  %5278 = vmatmul.mubr.f32.vlgmr.msra.gmra.mxu1 %v6232_v45  ;;  %5319 = vmatmul.mubr.f32.vlgmr.msra.gmra.mxu0 %v6232_v45 }
 0xd1f   :  { %v6239_v24 = vadd.f32 %v4109_v34, %v2057_v48  ;;  %v2048_v60 = vmul.f32 %v5856_v49, %v6222_v63  ;;  %5328 = vmatpush3.msra.mxu1 %v2310_v35  ;;  %v2060_v61 = vmul.f32 %v4108_v58, %v2049_v20  ;;  %v2306_v63 = vld [vmem:[#allocation2 + $0x710] sm:$0xff]  ;;  %v2297_v35 = vld [vmem:[#allocation2 + $0x6c8] sm:$0xff]  ;;  %v2801_v49 = vld [vmem:[#allocation2 + $0x7b8] sm:$0xff] }
 0xd20   :  { %5329 = vmatprep.subr.mxu1 %v2309_v3  ;;  %v2804_v48 = vld [vmem:[#allocation2 + $0x7d0] sm:$0xff]  ;;  %v2803_v20 = vld [vmem:[#allocation2 + $0x7c8] sm:$0xff] }
 0xd21   :  { %v2059_v8 = vmul.f32 %v4108_v58, %v2048_v60  ;;  %5330 = vmatpush3.msra.mxu1 %v2309_v3  ;;  %5280 = vmatprep.mubr.f32.mxu1 %v6239_v24  ;;  %v6250_v13 = vadd.f32 %v4109_v34, %v2060_v61  ;;  %v2802_v3 = vld [vmem:[#allocation2 + $0x7c0] sm:$0xff]  ;;  %v3038_v60 = vld [vmem:[#allocation2 + $0x930] sm:$0xff] }
 0xd22   :  { %5321 = vmatprep.mubr.f32.mxu0 %v6239_v24  ;;  %5331 = vmatprep.subr.mxu1 %v2308_v50  ;;  %v3036_v61 = vld [vmem:[#allocation2 + $0x920] sm:$0xff] }
 0xd23   :  { %v6246_v11 = vadd.f32 %v4109_v34, %v2059_v8  ;;  %5281 = vmatmul.mubr.f32.gmra.mxu1 %v6242_v62  ;;  %5322 = vmatmul.mubr.f32.gmra.mxu0 %v6242_v62  ;;  %v2811_v34 = vld [vmem:[#allocation2 + $0x808] sm:$0xff]  ;;  %v3035_v8 = vld [vmem:[#allocation2 + $0x918] sm:$0xff] }
 0xd24   :  { %5332 = vmatpush3.msra.mxu1 %v2308_v50  ;;  %v3037_v50 = vld [vmem:[#allocation2 + $0x928] sm:$0xff] }
 0xd25   :  { %5333 = vmatprep.subr.mxu1 %v2307_v9  ;;  %5283 = vmatprep.mubr.f32.mxu1 %v6246_v11 }
 0xd26   :  { %5334 = vmatpush3.msra.mxu1 %v2307_v9  ;;  %5324 = vmatprep.mubr.f32.mxu0 %v6246_v11  ;;  %v3034_v9 = vld [vmem:[#allocation2 + $0x910] sm:$0xff] }
 0xd27   :  { %5335 = vmatprep.subr.mxu1 %v2306_v63  ;;  %5284 = vmatmul.mubr.f32.gmra.mxu1 %v6250_v13 }
 0xd28   :  { %5325 = vmatmul.mubr.f32.gmra.mxu0 %v6250_v13  ;;  %5336 = vmatpush3.msra.mxu1 %v2306_v63  ;;  %v3033_v63 = vld [vmem:[#allocation2 + $0x908] sm:$0xff] }
 0xd29   :  { %5337 = vmatprep.subr.mxu1 %v2305_v52  ;;  %5359 = vmatprep.mubr.f32.mxu1 %v6229_v7 }
 0xd2a   :  { %5338 = vmatpush3.msra.mxu1 %v2305_v52  ;;  %v3032_v52 = vld [vmem:[#allocation2 + $0x900] sm:$0xff] }
 0xd2b   :  { %5339 = vmatprep.subr.mxu1 %v2304_v14 }
 0xd2c   :  { %5340 = vmatpush3.msra.mxu1 %v2304_v14  ;;  %v3031_v14 = vld [vmem:[#allocation2 + $0x8f8] sm:$0xff] }
 0xd2d   :  { %5341 = vmatprep.subr.mxu1 %v2303_v15 }
 0xd2e   :  { %5342 = vmatpush3.msra.mxu1 %v2303_v15  ;;  %v3030_v15 = vld [vmem:[#allocation2 + $0x8f0] sm:$0xff] }
 0xd2f   :  { %5343 = vmatprep.subr.mxu1 %v2302_v17 }
 0xd30   :  { %5344 = vmatpush3.msra.mxu1 %v2302_v17  ;;  %v3029_v17 = vld [vmem:[#allocation2 + $0x8e8] sm:$0xff] }
 0xd31   :  { %5345 = vmatprep.subr.mxu1 %v2301_v18 }
 0xd32   :  { %5346 = vmatpush3.msra.mxu1 %v2301_v18  ;;  %v3028_v18 = vld [vmem:[#allocation2 + $0x8e0] sm:$0xff] }
 0xd33   :  { %5347 = vmatprep.subr.mxu1 %v2300_v16 }
 0xd34   :  { %5348 = vmatpush3.msra.mxu1 %v2300_v16  ;;  %v3027_v16 = vld [vmem:[#allocation2 + $0x8d8] sm:$0xff] }
 0xd35   :  { %5349 = vmatprep.subr.mxu1 %v2299_v51 }
 0xd36   :  { %5350 = vmatpush3.msra.mxu1 %v2299_v51  ;;  %v3026_v51 = vld [vmem:[#allocation2 + $0x8d0] sm:$0xff] }
 0xd37   :  { %5351 = vmatprep.subr.mxu1 %v2298_v54 }
 0xd38   :  { %5352 = vmatpush3.msra.mxu1 %v2298_v54  ;;  %v3025_v54 = vld [vmem:[#allocation2 + $0x8c8] sm:$0xff] }
 0xd39   :  { %5353 = vmatprep.subr.mxu1 %v2297_v35 }
 0xd3a   :  { %5354 = vmatpush3.msra.mxu1 %v2297_v35  ;;  %v3024_v35 = vld [vmem:[#allocation2 + $0x8c0] sm:$0xff] }
 0xd3b   :  { %5355 = vmatprep.subr.mxu1 %v2296_v19 }
 0xd3c   :  { %5356 = vmatpush3.msra.mxu1 %v2296_v19  ;;  %v3023_v19 = vld [vmem:[#allocation2 + $0x8b8] sm:$0xff] }
 0xd3d   :  { %5357 = vmatprep.subr.mxu1 %v2295_v41 }
 0xd3e   :  { %5358 = vmatpush3.msra.mxu1 %v2295_v41 }
 0xd3f   :  { %5360 = vmatmul.mubr.f32.vlgmr.msra.gmra.mxu1 %v6232_v45 }
 0xd40   :  { %5362 = vmatprep.mubr.f32.mxu1 %v6239_v24 }
 0xd43   :  { %5363 = vmatmul.mubr.f32.gmra.mxu1 %v6242_v62 }
 0xd44   :  { %5365 = vmatprep.mubr.f32.mxu1 %v6246_v11 }
 0xd47   :  { %5366 = vmatmul.mubr.f32.gmra.mxu1 %v6250_v13 }
 0xdde   :  { %v5279_v53 = vpop.f32.mrf.mxu1  ;;  %v5320_v57 = vpop.f32.mrf.mxu0 }
 0xde0   :  { %v2155_v47 = vpop.f32.mrf.mxu1  ;;  %v2266_v59 = vpop.f32.mrf.mxu0 }
 0xde1   :  { %5380 = vmatprep.mubr.f32.mxu0 %v2155_v47 }
 0xde3   :  { %v5323_v1 = vpop.f32.mrf.mxu0  ;;  %v5282_v21 = vpop.f32.mrf.mxu1 }
 0xde5   :  { %v2276_v0 = vpop.f32.mrf.mxu0  ;;  %v2165_v12 = vpop.f32.mrf.mxu1 }
 0xde7   :  { %v5285_v22 = vpop.f32.mrf.mxu1 }
 0xde8   :  { %v5326_v2 = vpop.f32.mrf.mxu0 }
 0xde9   :  { %5368 = vmatprep.subr.mxu0 %v5326_v2  ;;  %v2175_v23 = vpop.f32.mrf.mxu1 }
 0xdea   :  { %v2286_v10 = vpop.f32.mrf.mxu0  ;;  %5369 = vmatpush3.xpose.msra.mxu0 %v5326_v2 }
 0xdeb   :  { %5370 = vmatprep.subr.mxu0 %v2286_v10 }
 0xdee   :  { %5371 = vmatpush3.xpose.msra.mxu0 %v2286_v10 }
 0xdef   :  { %5372 = vmatprep.subr.mxu0 %v5323_v1 }
 0xdf2   :  { %5373 = vmatpush3.xpose.msra.mxu0 %v5323_v1 }
 0xdf3   :  { %5374 = vmatprep.subr.mxu0 %v2276_v0 }
 0xdf6   :  { %5375 = vmatpush3.xpose.msra.mxu0 %v2276_v0 }
 0xdf7   :  { %5376 = vmatprep.subr.mxu0 %v5320_v57 }
 0xdfa   :  { %5377 = vmatpush3.xpose.msra.mxu0 %v5320_v57 }
 0xdfb   :  { %5378 = vmatprep.subr.mxu0 %v2266_v59 }
 0xdfe   :  { %5379 = vmatpush3.xpose.msra.mxu0 %v2266_v59 }
 0xdff   :  { %v5361_v4 = vpop.f32.mrf.mxu1  ;;  %5451 = vmatprep.subr.mxu0 %v2816_v55 }
 0xe01   :  { %v2377_v5 = vpop.f32.mrf.mxu1  ;;  %5381 = vmatmul.mubr.f32.vlgmr.msra.gmra.mxu0 %v5279_v53 }
 0xe02   :  { %5383 = vmatprep.mubr.f32.mxu0 %v2165_v12  ;;  %5452 = vmatpush3.msra.mxu0 %v2816_v55 }
 0xe03   :  { %v5364_v58 = vpop.f32.mrf.mxu1  ;;  %5453 = vmatprep.subr.mxu0 %v2815_v56 }
 0xe04   :  { %5454 = vmatpush3.msra.mxu0 %v2815_v56 }
 0xe05   :  { %v2387_v27 = vpop.f32.mrf.mxu1  ;;  %5384 = vmatmul.mubr.f32.gmra.mxu0 %v5282_v21  ;;  %5455 = vmatprep.subr.mxu0 %v2814_v25 }
 0xe06   :  { %5386 = vmatprep.mubr.f32.mxu0 %v2175_v23  ;;  %5456 = vmatpush3.msra.mxu0 %v2814_v25 }
 0xe07   :  { %v5367_v30 = vpop.f32.mrf.mxu1  ;;  %5457 = vmatprep.subr.mxu0 %v2813_v6 }
 0xe08   :  { %5389 = vmatprep.subr.mxu1 %v5367_v30  ;;  %5458 = vmatpush3.msra.mxu0 %v2813_v6 }
 0xe09   :  { %v2397_v32 = vpop.f32.mrf.mxu1  ;;  %5387 = vmatmul.mubr.f32.gmra.mxu0 %v5285_v22  ;;  %5390 = vmatpush3.msra.mxu1 %v5367_v30 }
 0xe0a   :  { %5459 = vmatprep.subr.mxu0 %v2812_v31  ;;  %5391 = vmatprep.subr.mxu1 %v2397_v32 }
 0xe0b   :  { %5460 = vmatpush3.msra.mxu0 %v2812_v31  ;;  %5483 = vmatprep.mubr.f32.mxu0 %v6229_v7 }
 0xe0c   :  { %5392 = vmatpush3.msra.mxu1 %v2397_v32  ;;  %5461 = vmatprep.subr.mxu0 %v2811_v34 }
 0xe0d   :  { %5393 = vmatprep.subr.mxu1 %v5364_v58  ;;  %5462 = vmatpush3.msra.mxu0 %v2811_v34 }
 0xe0e   :  { %5394 = vmatpush3.msra.mxu1 %v5364_v58  ;;  %5463 = vmatprep.subr.mxu0 %v2810_v37 }
 0xe0f   :  { %5395 = vmatprep.subr.mxu1 %v2387_v27  ;;  %5464 = vmatpush3.msra.mxu0 %v2810_v37 }
 0xe10   :  { %5396 = vmatpush3.msra.mxu1 %v2387_v27  ;;  %5465 = vmatprep.subr.mxu0 %v2809_v38 }
 0xe11   :  { %5397 = vmatprep.subr.mxu1 %v5361_v4  ;;  %5466 = vmatpush3.msra.mxu0 %v2809_v38 }
 0xe12   :  { %5398 = vmatpush3.msra.mxu1 %v5361_v4  ;;  %5467 = vmatprep.subr.mxu0 %v2808_v39 }
 0xe13   :  { %5399 = vmatprep.subr.mxu1 %v2377_v5  ;;  %5468 = vmatpush3.msra.mxu0 %v2808_v39 }
 0xe14   :  { %5400 = vmatpush3.msra.mxu1 %v2377_v5  ;;  %5469 = vmatprep.subr.mxu0 %v2807_v42 }
 0xe15   :  { %5470 = vmatpush3.msra.mxu0 %v2807_v42 }
 0xe16   :  { %5471 = vmatprep.subr.mxu0 %v2806_v43 }
 0xe17   :  { %5472 = vmatpush3.msra.mxu0 %v2806_v43 }
 0xe18   :  { %5473 = vmatprep.subr.mxu0 %v2805_v46 }
 0xe19   :  { %5474 = vmatpush3.msra.mxu0 %v2805_v46 }
 0xe1a   :  { %5475 = vmatprep.subr.mxu0 %v2804_v48 }
 0xe1b   :  { %5476 = vmatpush3.msra.mxu0 %v2804_v48 }
 0xe1c   :  { %5477 = vmatprep.subr.mxu0 %v2803_v20 }
 0xe1d   :  { %5478 = vmatpush3.msra.mxu0 %v2803_v20 }
 0xe1e   :  { %5479 = vmatprep.subr.mxu0 %v2802_v3 }
 0xe1f   :  { %5480 = vmatpush3.msra.mxu0 %v2802_v3 }
 0xe20   :  { %5481 = vmatprep.subr.mxu0 %v2801_v49 }
 0xe21   :  { %5482 = vmatpush3.msra.mxu0 %v2801_v49 }
 0xe22   :  { %5484 = vmatmul.mubr.f32.vlgmr.msra.gmra.mxu0 %v6232_v45  ;;  %5533 = vmatprep.subr.mxu0 %v3038_v60 }
 0xe23   :  { %5486 = vmatprep.mubr.f32.mxu0 %v6239_v24  ;;  %5534 = vmatpush3.msra.mxu0 %v3038_v60 }
 0xe24   :  { %5535 = vmatprep.subr.mxu0 %v3037_v50 }
 0xe25   :  { %5536 = vmatpush3.msra.mxu0 %v3037_v50 }
 0xe26   :  { %5487 = vmatmul.mubr.f32.gmra.mxu0 %v6242_v62  ;;  %5537 = vmatprep.subr.mxu0 %v3036_v61 }
 0xe27   :  { %5489 = vmatprep.mubr.f32.mxu0 %v6246_v11  ;;  %5538 = vmatpush3.msra.mxu0 %v3036_v61 }
 0xe28   :  { %5539 = vmatprep.subr.mxu0 %v3035_v8 }
 0xe29   :  { %5540 = vmatpush3.msra.mxu0 %v3035_v8 }
 0xe2a   :  { %5490 = vmatmul.mubr.f32.gmra.mxu0 %v6250_v13  ;;  %5541 = vmatprep.subr.mxu0 %v3034_v9 }
 0xe2b   :  { %5542 = vmatpush3.msra.mxu0 %v3034_v9  ;;  %5565 = vmatprep.mubr.f32.mxu0 %v6229_v7 }
 0xe2c   :  { %5543 = vmatprep.subr.mxu0 %v3033_v63 }
 0xe2d   :  { %5544 = vmatpush3.msra.mxu0 %v3033_v63 }
 0xe2e   :  { %5545 = vmatprep.subr.mxu0 %v3032_v52 }
 0xe2f   :  { %5546 = vmatpush3.msra.mxu0 %v3032_v52 }
 0xe30   :  { %5547 = vmatprep.subr.mxu0 %v3031_v14 }
 0xe31   :  { %5548 = vmatpush3.msra.mxu0 %v3031_v14 }
 0xe32   :  { %5549 = vmatprep.subr.mxu0 %v3030_v15 }
 0xe33   :  { %5550 = vmatpush3.msra.mxu0 %v3030_v15 }
 0xe34   :  { %5551 = vmatprep.subr.mxu0 %v3029_v17 }
 0xe35   :  { %5552 = vmatpush3.msra.mxu0 %v3029_v17 }
 0xe36   :  { %5553 = vmatprep.subr.mxu0 %v3028_v18 }
 0xe37   :  { %5554 = vmatpush3.msra.mxu0 %v3028_v18 }
 0xe38   :  { %5555 = vmatprep.subr.mxu0 %v3027_v16 }
 0xe39   :  { %5556 = vmatpush3.msra.mxu0 %v3027_v16 }
 0xe3a   :  { %5557 = vmatprep.subr.mxu0 %v3026_v51 }
 0xe3b   :  { %5558 = vmatpush3.msra.mxu0 %v3026_v51 }
 0xe3c   :  { %5559 = vmatprep.subr.mxu0 %v3025_v54 }
 0xe3d   :  { %5560 = vmatpush3.msra.mxu0 %v3025_v54 }
 0xe3e   :  { %5561 = vmatprep.subr.mxu0 %v3024_v35 }
 0xe3f   :  { %5562 = vmatpush3.msra.mxu0 %v3024_v35 }
 0xe40   :  { %5563 = vmatprep.subr.mxu0 %v3023_v19 }
 0xe41   :  { %5564 = vmatpush3.msra.mxu0 %v3023_v19 }
 0xe42   :  { %5566 = vmatmul.mubr.f32.vlgmr.msra.gmra.mxu0 %v6232_v45 }
 0xe43   :  { %5568 = vmatprep.mubr.f32.mxu0 %v6239_v24 }
 0xe46   :  { %5569 = vmatmul.mubr.f32.gmra.mxu0 %v6242_v62 }
 0xe47   :  { %5571 = vmatprep.mubr.f32.mxu0 %v6246_v11 }
 0xe4a   :  { %5572 = vmatmul.mubr.f32.gmra.mxu0 %v6250_v13 }
 0xec1   :  { %v5382_v41 = vpop.f32.mrf.mxu0 }
 0xec2   :  { %v2478_v53 = vadd.f32 %v5382_v41, %v6039_v28 }
 0xec3   :  { %v2472_v57 = vpop.f32.mrf.mxu0 }
 0xec4   :  { %v2473_v47 = vadd.f32 %v2472_v57, %v6037_v26  ;;  %v2504_v59 = vsel %vm609_vm4, %v2478_v53, -inf }
 0xec5   :  { %2505 = vmax.xlane.f32.xlu1 %v2504_v59  ;;  %v5385_v1 = vpop.f32.mrf.mxu0 }
 0xec6   :  { %v2488_v0 = vadd.f32 %v5385_v1, %v6046_v36  ;;  %v2501_v2 = vsel %vm609_vm4, %v2473_v47, -inf }
 0xec7   :  { %v2482_v10 = vpop.f32.mrf.mxu0  ;;  %2502 = vmax.xlane.f32.xlu0 %v2501_v2 }
 0xec8   :  { %v2483_v21 = vadd.f32 %v2482_v10, %v6042_v33  ;;  %v2510_v12 = vsel %vm609_vm4, %v2488_v0, -inf }
 0xec9   :  { %2511 = vmax.xlane.f32.xlu1 %v2510_v12  ;;  %v5388_v22 = vpop.f32.mrf.mxu0 }
 0xeca   :  { %v2498_v55 = vadd.f32 %v5388_v22, %v6054_v44  ;;  %v2507_v23 = vsel %vm609_vm4, %v2483_v21, -inf }
 0xecb   :  { %2508 = vmax.xlane.f32.xlu0 %v2507_v23  ;;  %v2492_v4 = vpop.f32.mrf.mxu0 }
 0xecc   :  { %v2493_v56 = vadd.f32 %v2492_v4, %v6049_v40  ;;  %v2516_v5 = vsel %vm609_vm4, %v2498_v55, -inf }
 0xecd   :  { %2517 = vmax.xlane.f32.xlu1 %v2516_v5 }
 0xece   :  { %v2513_v25 = vsel %vm609_vm4, %v2493_v56, -inf }
 0xecf   :  { %2514 = vmax.xlane.f32.xlu0 %v2513_v25 }
 0xee2   :  { %v6286_v58 = vpop.f32.mrf.mxu0 }
 0xee4   :  { %v6288_v6 = vpop.f32.mrf.mxu0 }
 0xee6   :  { %v6290_v27 = vpop.f32.mrf.mxu0 }
 0xee8   :  { %v6292_v30 = vpop.f32.mrf.mxu0 }
 0xeea   :  { %v6294_v31 = vpop.f32.mrf.mxu0 }
 0xeec   :  { %v6296_v32 = vpop.f32.mrf.mxu0 }
 0xf02   :  { %v5567_v34 = vpop.f32.mrf.mxu0 }
 0xf04   :  { %v3105_v37 = vpop.f32.mrf.mxu0 }
 0xf06   :  { %v5570_v38 = vpop.f32.mrf.mxu0 }
 0xf08   :  { %v3115_v39 = vpop.f32.mrf.mxu0 }
 0xf0a   :  { %v5573_v42 = vpop.f32.mrf.mxu0 }
 0xf0b   :  { %5595 = vmatprep.subr.mxu0 %v5573_v42 }
 0xf0c   :  { %v3125_v43 = vpop.f32.mrf.mxu0  ;;  %5596 = vmatpush3.msra.mxu0 %v5573_v42 }
 0xf0d   :  { %5597 = vmatprep.subr.mxu0 %v3125_v43 }
 0xf0e   :  { %5598 = vmatpush3.msra.mxu0 %v3125_v43 }
 0xf0f   :  { %5599 = vmatprep.subr.mxu0 %v5570_v38 }
 0xf10   :  { %5600 = vmatpush3.msra.mxu0 %v5570_v38 }
 0xf11   :  { %5601 = vmatprep.subr.mxu0 %v3115_v39 }
 0xf12   :  { %5602 = vmatpush3.msra.mxu0 %v3115_v39  ;;  %v2694_v39 = vld [vmem:[#allocation2 + $0x7a8] sm:$0xff] }
 0xf13   :  { %5603 = vmatprep.subr.mxu0 %v5567_v34 }
 0xf14   :  { %5604 = vmatpush3.msra.mxu0 %v5567_v34 }
 0xf15   :  { %5605 = vmatprep.subr.mxu0 %v3105_v37 }
 0xf16   :  { %5606 = vmatpush3.msra.mxu0 %v3105_v37 }
 0xf4e   :  { %v2506_v46 = vpop.xlane.xlu1 %2505 }
 0xf4f   :  { %v2520_v48 = vsub.f32 %v2478_v53, %v2506_v46  ;;  %v2693_v46 = vld [vmem:[#allocation2 + $0x7a0] sm:$0xff] }
 0xf50   :  { %v2503_v20 = vpop.xlane.xlu0 %2502 }
 0xf51   :  { %v2527_v3 = vmul.f32 1.442695, %v2520_v48  ;;  %v2519_v49 = vsub.f32 %v2473_v47, %v2503_v20 }
 0xf52   :  { %v2512_v60 = vpop.xlane.xlu1 %2511 }
 0xf53   :  { %5857 = vpow2.f32 %v2527_v3  ;;  %v2525_v50 = vmul.f32 1.442695, %v2519_v49  ;;  %v2522_v61 = vsub.f32 %v2488_v0, %v2512_v60  ;;  %v2692_v3 = vld [vmem:[#allocation2 + $0x798] sm:$0xff] }
 0xf54   :  { %v2509_v8 = vpop.xlane.xlu0 %2508 }
 0xf55   :  { %5859 = vpow2.f32 %v2525_v50  ;;  %v2531_v9 = vmul.f32 1.442695, %v2522_v61  ;;  %v2521_v63 = vsub.f32 %v2483_v21, %v2509_v8  ;;  %v2695_v21 = vld [vmem:[#allocation2 + $0x7b0] sm:$0xff]  ;;  %v2690_v8 = vld [vmem:[#allocation2 + $0x788] sm:$0xff] }
 0xf56   :  { %v2518_v52 = vpop.xlane.xlu1 %2517  ;;  %5410 = vmatprep.subr.mxu1 %v2695_v21  ;;  %v2691_v50 = vld [vmem:[#allocation2 + $0x790] sm:$0xff] }
 0xf57   :  { %5861 = vpow2.f32 %v2531_v9  ;;  %v2529_v14 = vmul.f32 1.442695, %v2521_v63  ;;  %v2524_v15 = vsub.f32 %v2498_v55, %v2518_v52  ;;  %v2689_v9 = vld [vmem:[#allocation2 + $0x780] sm:$0xff]  ;;  %v2688_v63 = vld [vmem:[#allocation2 + $0x778] sm:$0xff]  ;;  %v2687_v52 = vld [vmem:[#allocation2 + $0x770] sm:$0xff] }
 0xf58   :  { %v2515_v17 = vpop.xlane.xlu0 %2514 }
 0xf59   :  { %5863 = vpow2.f32 %v2529_v14  ;;  %v2535_v18 = vmul.f32 1.442695, %v2524_v15  ;;  %v2523_v16 = vsub.f32 %v2493_v56, %v2515_v17  ;;  %v2686_v14 = vld [vmem:[#allocation2 + $0x768] sm:$0xff]  ;;  %v2685_v15 = vld [vmem:[#allocation2 + $0x760] sm:$0xff]  ;;  %v2684_v17 = vld [vmem:[#allocation2 + $0x758] sm:$0xff] }
 0xf5b   :  { %5865 = vpow2.f32 %v2535_v18  ;;  %v2533_v51 = vmul.f32 1.442695, %v2523_v16  ;;  %v2683_v18 = vld [vmem:[#allocation2 + $0x750] sm:$0xff]  ;;  %v2682_v16 = vld [vmem:[#allocation2 + $0x748] sm:$0xff] }
 0xf5d   :  { %5867 = vpow2.f32 %v2533_v51  ;;  %v2681_v51 = vld [vmem:[#allocation2 + $0x740] sm:$0xff] }
 0xf60   :  { %v5858_v54 = vpop.eup %5857 }
 0xf61   :  { %v2540_v35 = vsel %vm609_vm4, %v5858_v54, 0.0 }
 0xf62   :  { %v5860_v19 = vpop.eup %5859  ;;  %2541 = vadd.xlane.f32.xlu1 %v2540_v35  ;;  %v2927_v35 = vld [vmem:[#allocation2 + $0x8b0] sm:$0xff] }
 0xf63   :  { %v2537_v41 = vsel %vm609_vm4, %v5860_v19, 0.0 }
 0xf64   :  { %v5862_v53 = vpop.eup %5861  ;;  %2538 = vadd.xlane.f32.xlu0 %v2537_v41 }
 0xf65   :  { %v2546_v57 = vsel %vm609_vm4, %v5862_v53, 0.0 }
 0xf66   :  { %v5864_v47 = vpop.eup %5863  ;;  %2547 = vadd.xlane.f32.xlu1 %v2546_v57 }
 0xf67   :  { %v2543_v59 = vsel %vm609_vm4, %v5864_v47, 0.0 }
 0xf68   :  { %v5866_v1 = vpop.eup %5865  ;;  %2544 = vadd.xlane.f32.xlu0 %v2543_v59 }
 0xf69   :  { %v2552_v0 = vsel %vm609_vm4, %v5866_v1, 0.0 }
 0xf6a   :  { %v5868_v2 = vpop.eup %5867  ;;  %2553 = vadd.xlane.f32.xlu1 %v2552_v0 }
 0xf6b   :  { %v2549_v10 = vsel %vm609_vm4, %v5868_v2, 0.0 }
 0xf6c   :  { %2550 = vadd.xlane.f32.xlu0 %v2549_v10 }
 0xfeb   :  { %v2542_v12 = vpop.xlane.xlu1 %2541 }
 0xfec   :  { %5869 = vrcp.f32 %v2542_v12  ;;  %v2921_v12 = vld [vmem:[#allocation2 + $0x880] sm:$0xff] }
 0xfed   :  { %v2539_v22 = vpop.xlane.xlu0 %2538 }
 0xfee   :  { %5871 = vrcp.f32 %v2539_v22  ;;  %v2920_v22 = vld [vmem:[#allocation2 + $0x878] sm:$0xff] }
 0xfef   :  { %v2548_v55 = vpop.xlane.xlu1 %2547 }
 0xff0   :  { %5873 = vrcp.f32 %v2548_v55  ;;  %v2919_v55 = vld [vmem:[#allocation2 + $0x870] sm:$0xff] }
 0xff1   :  { %v2545_v23 = vpop.xlane.xlu0 %2544 }
 0xff2   :  { %5875 = vrcp.f32 %v2545_v23  ;;  %v2918_v23 = vld [vmem:[#allocation2 + $0x868] sm:$0xff] }
 0xff3   :  { %v2554_v4 = vpop.xlane.xlu1 %2553 }
 0xff4   :  { %5877 = vrcp.f32 %v2554_v4  ;;  %v2917_v4 = vld [vmem:[#allocation2 + $0x860] sm:$0xff] }
 0xff5   :  { %v2551_v56 = vpop.xlane.xlu0 %2550 }
 0xff6   :  { %5879 = vrcp.f32 %v2551_v56  ;;  %v2916_v56 = vld [vmem:[#allocation2 + $0x858] sm:$0xff] }
 0xff9   :  { %v5870_v5 = vpop.eup %5869 }
 0xffa   :  { %v2558_v37 = vmul.f32 %v5870_v5, %v5858_v54  ;;  %v2680_v54 = vld [vmem:[#allocation2 + $0x738] sm:$0xff]  ;;  %v2915_v5 = vld [vmem:[#allocation2 + $0x850] sm:$0xff] }
 0xffb   :  { %v5872_v25 = vpop.eup %5871 }
 0xffc   :  { %v2556_v34 = vmul.f32 %v5872_v25, %v5860_v19  ;;  %v2914_v25 = vld [vmem:[#allocation2 + $0x848] sm:$0xff] }
 0xffd   :  { %v5874_v38 = vpop.eup %5873 }
 0xffe   :  { %5401 = vmatprep.mubr.msk.f32.mxu1 %vm609_vm4, %v2556_v34  ;;  %v2562_v48 = vmul.f32 %v5874_v38, %v5862_v53  ;;  %v2926_v53 = vld [vmem:[#allocation2 + $0x8a8] sm:$0xff]  ;;  %v2913_v34 = vld [vmem:[#allocation2 + $0x840] sm:$0xff] }
 0xfff   :  { %v5876_v42 = vpop.eup %5875  ;;  %5402 = vmatmul.mubr.msk.f32.vlgmr.msra.gmra.mxu1 %vm609_vm4, %v2558_v37  ;;  %v2912_v37 = vld [vmem:[#allocation2 + $0x838] sm:$0xff] }
0x1000   :  { %v2560_v43 = vmul.f32 %v5876_v42, %v5864_v47  ;;  %5411 = vmatpush3.msra.mxu1 %v2695_v21  ;;  %v2925_v47 = vld [vmem:[#allocation2 + $0x8a0] sm:$0xff]  ;;  %v2922_v21 = vld [vmem:[#allocation2 + $0x888] sm:$0xff] }
0x1001   :  { %5412 = vmatprep.subr.mxu1 %v2694_v39  ;;  %v5878_v20 = vpop.eup %5877 }
0x1002   :  { %5404 = vmatprep.mubr.msk.f32.mxu1 %vm609_vm4, %v2560_v43  ;;  %5413 = vmatpush3.msra.mxu1 %v2694_v39  ;;  %v2566_v61 = vmul.f32 %v5878_v20, %v5866_v1  ;;  %v2924_v1 = vld [vmem:[#allocation2 + $0x898] sm:$0xff] }
0x1003   :  { %v5880_v49 = vpop.eup %5879  ;;  %5405 = vmatmul.mubr.msk.f32.gmra.mxu1 %vm609_vm4, %v2562_v48  ;;  %5414 = vmatprep.subr.mxu1 %v2693_v46 }
0x1004   :  { %v2564_v60 = vmul.f32 %v5880_v49, %v5868_v2  ;;  %5415 = vmatpush3.msra.mxu1 %v2693_v46  ;;  %v2923_v2 = vld [vmem:[#allocation2 + $0x890] sm:$0xff] }
0x1005   :  { %5416 = vmatprep.subr.mxu1 %v2692_v3 }
0x1006   :  { %5407 = vmatprep.mubr.msk.f32.mxu1 %vm609_vm4, %v2564_v60  ;;  %5417 = vmatpush3.msra.mxu1 %v2692_v3 }
0x1007   :  { %5408 = vmatmul.mubr.msk.f32.gmra.mxu1 %vm609_vm4, %v2566_v61  ;;  %5418 = vmatprep.subr.mxu1 %v2691_v50 }
0x1008   :  { %5419 = vmatpush3.msra.mxu1 %v2691_v50 }
0x1009   :  { %5420 = vmatprep.subr.mxu1 %v2690_v8 }
0x100a   :  { %5421 = vmatpush3.msra.mxu1 %v2690_v8 }
0x100b   :  { %5422 = vmatprep.subr.mxu1 %v2689_v9 }
0x100c   :  { %5423 = vmatpush3.msra.mxu1 %v2689_v9 }
0x100d   :  { %5424 = vmatprep.subr.mxu1 %v2688_v63 }
0x100e   :  { %5425 = vmatpush3.msra.mxu1 %v2688_v63 }
0x100f   :  { %5426 = vmatprep.subr.mxu1 %v2687_v52 }
0x1010   :  { %5427 = vmatpush3.msra.mxu1 %v2687_v52 }
0x1011   :  { %5428 = vmatprep.subr.mxu1 %v2686_v14 }
0x1012   :  { %5429 = vmatpush3.msra.mxu1 %v2686_v14 }
0x1013   :  { %5430 = vmatprep.subr.mxu1 %v2685_v15 }
0x1014   :  { %5431 = vmatpush3.msra.mxu1 %v2685_v15 }
0x1015   :  { %5432 = vmatprep.subr.mxu1 %v2684_v17 }
0x1016   :  { %5433 = vmatpush3.msra.mxu1 %v2684_v17 }
0x1017   :  { %5434 = vmatprep.subr.mxu1 %v2683_v18 }
0x1018   :  { %5435 = vmatpush3.msra.mxu1 %v2683_v18 }
0x1019   :  { %5436 = vmatprep.subr.mxu1 %v2682_v16 }
0x101a   :  { %5437 = vmatpush3.msra.mxu1 %v2682_v16 }
0x101b   :  { %5438 = vmatprep.subr.mxu1 %v2681_v51 }
0x101c   :  { %5439 = vmatpush3.msra.mxu1 %v2681_v51 }
0x101d   :  { %5440 = vmatprep.subr.mxu1 %v2680_v54 }
0x101e   :  { %5441 = vmatpush3.msra.mxu1 %v2680_v54 }
0x101f   :  { %5492 = vmatprep.subr.mxu1 %v2927_v35 }
0x10bf   :  { %v5403_v19 = vpop.f32.mrf.mxu1 }
0x10c1   :  { %v2651_v41 = vpop.f32.mrf.mxu1 }
0x10c2   :  { %5442 = vmatprep.mubr.f32.mxu1 %v2651_v41 }
0x10c3   :  { %v5406_v57 = vpop.f32.mrf.mxu1  ;;  %5443 = vmatmul.mubr.f32.vlgmr.msra.gmra.mxu1 %v5403_v19 }
0x10c4   :  { %5493 = vmatpush3.msra.mxu1 %v2927_v35 }
0x10c5   :  { %5494 = vmatprep.subr.mxu1 %v2926_v53  ;;  %v2661_v59 = vpop.f32.mrf.mxu1 }
0x10c6   :  { %5495 = vmatpush3.msra.mxu1 %v2926_v53  ;;  %5445 = vmatprep.mubr.f32.mxu1 %v2661_v59 }
0x10c7   :  { %5496 = vmatprep.subr.mxu1 %v2925_v47  ;;  %v5409_v0 = vpop.f32.mrf.mxu1  ;;  %5446 = vmatmul.mubr.f32.gmra.mxu1 %v5406_v57 }
0x10c8   :  { %5497 = vmatpush3.msra.mxu1 %v2925_v47 }
0x10c9   :  { %5498 = vmatprep.subr.mxu1 %v2924_v1  ;;  %v2671_v10 = vpop.f32.mrf.mxu1 }
0x10ca   :  { %5499 = vmatpush3.msra.mxu1 %v2924_v1  ;;  %5448 = vmatprep.mubr.f32.mxu1 %v2671_v10 }
0x10cb   :  { %5500 = vmatprep.subr.mxu1 %v2923_v2  ;;  %5449 = vmatmul.mubr.f32.gmra.mxu1 %v5409_v0 }
0x10cc   :  { %5501 = vmatpush3.msra.mxu1 %v2923_v2  ;;  %5524 = vmatprep.mubr.f32.mxu1 %v6229_v7 }
0x10cd   :  { %5502 = vmatprep.subr.mxu1 %v2922_v21 }
0x10ce   :  { %5503 = vmatpush3.msra.mxu1 %v2922_v21 }
0x10cf   :  { %5504 = vmatprep.subr.mxu1 %v2921_v12 }
0x10d0   :  { %5505 = vmatpush3.msra.mxu1 %v2921_v12 }
0x10d1   :  { %5506 = vmatprep.subr.mxu1 %v2920_v22 }
0x10d2   :  { %5507 = vmatpush3.msra.mxu1 %v2920_v22 }
0x10d3   :  { %5508 = vmatprep.subr.mxu1 %v2919_v55 }
0x10d4   :  { %5509 = vmatpush3.msra.mxu1 %v2919_v55 }
0x10d5   :  { %5510 = vmatprep.subr.mxu1 %v2918_v23 }
0x10d6   :  { %5511 = vmatpush3.msra.mxu1 %v2918_v23 }
0x10d7   :  { %5512 = vmatprep.subr.mxu1 %v2917_v4 }
0x10d8   :  { %5513 = vmatpush3.msra.mxu1 %v2917_v4 }
0x10d9   :  { %5514 = vmatprep.subr.mxu1 %v2916_v56 }
0x10da   :  { %5515 = vmatpush3.msra.mxu1 %v2916_v56 }
0x10db   :  { %5516 = vmatprep.subr.mxu1 %v2915_v5 }
0x10dc   :  { %5517 = vmatpush3.msra.mxu1 %v2915_v5 }
0x10dd   :  { %5518 = vmatprep.subr.mxu1 %v2914_v25 }
0x10de   :  { %5519 = vmatpush3.msra.mxu1 %v2914_v25 }
0x10df   :  { %5520 = vmatprep.subr.mxu1 %v2913_v34 }
0x10e0   :  { %5521 = vmatpush3.msra.mxu1 %v2913_v34 }
0x10e1   :  { %5522 = vmatprep.subr.mxu1 %v2912_v37 }
0x10e2   :  { %5523 = vmatpush3.msra.mxu1 %v2912_v37 }
0x10e3   :  { %5525 = vmatmul.mubr.f32.vlgmr.msra.gmra.mxu1 %v6232_v45 }
0x10e4   :  { %5527 = vmatprep.mubr.f32.mxu1 %v6239_v24 }
0x10e7   :  { %5528 = vmatmul.mubr.f32.gmra.mxu1 %v6242_v62 }
0x10e8   :  { %5530 = vmatprep.mubr.f32.mxu1 %v6246_v11 }
0x10eb   :  { %5531 = vmatmul.mubr.f32.gmra.mxu1 %v6250_v13 }
0x10ec   :  { %5586 = vmatprep.mubr.f32.mxu1 %v6288_v6 }
0x1183   :  { %v6317_v38 = vpop.f32.mrf.mxu1 }
0x1185   :  { %v6319_v39 = vpop.f32.mrf.mxu1 }
0x1187   :  { %v6321_v42 = vpop.f32.mrf.mxu1 }
0x1189   :  { %v6323_v43 = vpop.f32.mrf.mxu1 }
0x118b   :  { %v6325_v46 = vpop.f32.mrf.mxu1 }
0x118d   :  { %v6327_v48 = vpop.f32.mrf.mxu1 }
0x11a3   :  { %v5526_v20 = vpop.f32.mrf.mxu1 }
0x11a5   :  { %v2994_v3 = vpop.f32.mrf.mxu1 }
0x11a7   :  { %v5529_v49 = vpop.f32.mrf.mxu1 }
0x11a9   :  { %v3004_v60 = vpop.f32.mrf.mxu1 }
0x11ab   :  { %v5532_v50 = vpop.f32.mrf.mxu1 }
0x11ac   :  { %5574 = vmatprep.subr.mxu1 %v5532_v50 }
0x11ad   :  { %v3014_v61 = vpop.f32.mrf.mxu1  ;;  %5575 = vmatpush3.xpose.msra.mxu1 %v5532_v50 }
0x11ae   :  { %5576 = vmatprep.subr.mxu1 %v3014_v61 }
0x11b1   :  { %5577 = vmatpush3.xpose.msra.mxu1 %v3014_v61 }
0x11b2   :  { %5578 = vmatprep.subr.mxu1 %v5529_v49 }
0x11b5   :  { %5579 = vmatpush3.xpose.msra.mxu1 %v5529_v49 }
0x11b6   :  { %5580 = vmatprep.subr.mxu1 %v3004_v60 }
0x11b9   :  { %5581 = vmatpush3.xpose.msra.mxu1 %v3004_v60  ;;  %v3423_v60 = vld [vmem:[#allocation2 + $0x9b0] sm:$0xff] }
0x11ba   :  { %5582 = vmatprep.subr.mxu1 %v5526_v20  ;;  %5616 = vmatprep.subr.mxu0 %v3423_v60 }
0x11bd   :  { %5583 = vmatpush3.xpose.msra.mxu1 %v5526_v20 }
0x11be   :  { %5584 = vmatprep.subr.mxu1 %v2994_v3 }
0x11c1   :  { %5585 = vmatpush3.xpose.msra.mxu1 %v2994_v3 }
0x11c4   :  { %5587 = vmatmul.mubr.f32.vlgmr.msra.gmra.mxu1 %v6286_v58 }
0x11c5   :  { %5589 = vmatprep.mubr.f32.mxu1 %v6292_v30 }
0x11c8   :  { %5590 = vmatmul.mubr.f32.gmra.mxu1 %v6290_v27 }
0x11c9   :  { %5592 = vmatprep.mubr.f32.mxu1 %v6296_v32 }
0x11cc   :  { %5593 = vmatmul.mubr.f32.gmra.mxu1 %v6294_v31 }
0x1284   :  { %v5588_v6 = vpop.f32.mrf.mxu1 }
0x1285   :  { %v3206_v8 = vadd.f32 %v5588_v6, %v6039_v28 }
0x1286   :  { %v3200_v9 = vpop.f32.mrf.mxu1 }
0x1287   :  { %v3201_v63 = vadd.f32 %v3200_v9, %v6037_v26  ;;  %v3232_v52 = vsel %vm609_vm4, %v3206_v8, -inf }
0x1288   :  { %3233 = vmax.xlane.f32.xlu1 %v3232_v52  ;;  %v5591_v14 = vpop.f32.mrf.mxu1 }
0x1289   :  { %v3216_v58 = vadd.f32 %v5591_v14, %v6046_v36  ;;  %v3229_v30 = vsel %vm609_vm4, %v3201_v63, -inf }
0x128a   :  { %v3210_v15 = vpop.f32.mrf.mxu1  ;;  %3230 = vmax.xlane.f32.xlu0 %v3229_v30 }
0x128b   :  { %v3211_v27 = vadd.f32 %v3210_v15, %v6042_v33  ;;  %v3238_v31 = vsel %vm609_vm4, %v3216_v58, -inf }
0x128c   :  { %3239 = vmax.xlane.f32.xlu1 %v3238_v31  ;;  %v5594_v32 = vpop.f32.mrf.mxu1 }
0x128d   :  { %v3226_v28 = vadd.f32 %v5594_v32, %v6054_v44  ;;  %v3235_v26 = vsel %vm609_vm4, %v3211_v27, -inf }
0x128e   :  { %v3220_v17 = vpop.f32.mrf.mxu1  ;;  %3236 = vmax.xlane.f32.xlu0 %v3235_v26 }
0x128f   :  { %v3221_v18 = vadd.f32 %v3220_v17, %v6049_v40  ;;  %v3244_v36 = vsel %vm609_vm4, %v3226_v28, -inf }
0x1290   :  { %3245 = vmax.xlane.f32.xlu1 %v3244_v36 }
0x1291   :  { %v3241_v16 = vsel %vm609_vm4, %v3221_v18, -inf }
0x1292   :  { %3242 = vmax.xlane.f32.xlu0 %v3241_v16 }
0x1311   :  { %v3234_v51 = vpop.xlane.xlu1 %3233 }
0x1312   :  { %v3248_v33 = vsub.f32 %v3206_v8, %v3234_v51  ;;  %v3419_v51 = vld [vmem:[#allocation2 + $0x990] sm:$0xff] }
0x1313   :  { %v3231_v54 = vpop.xlane.xlu0 %3230 }
0x1314   :  { %v3255_v35 = vmul.f32 1.442695, %v3248_v33  ;;  %v3247_v19 = vsub.f32 %v3201_v63, %v3231_v54  ;;  %v3418_v54 = vld [vmem:[#allocation2 + $0x988] sm:$0xff] }
0x1315   :  { %v3240_v41 = vpop.xlane.xlu1 %3239 }
0x1316   :  { %5881 = vpow2.f32 %v3255_v35  ;;  %v3253_v44 = vmul.f32 1.442695, %v3247_v19  ;;  %v3250_v53 = vsub.f32 %v3216_v58, %v3240_v41  ;;  %v3417_v35 = vld [vmem:[#allocation2 + $0x980] sm:$0xff]  ;;  %v3416_v19 = vld [vmem:[#allocation2 + $0x978] sm:$0xff]  ;;  %v3415_v41 = vld [vmem:[#allocation2 + $0x970] sm:$0xff] }
0x1317   :  { %v3237_v57 = vpop.xlane.xlu0 %3236 }
0x1318   :  { %5883 = vpow2.f32 %v3253_v44  ;;  %v3259_v47 = vmul.f32 1.442695, %v3250_v53  ;;  %v3249_v59 = vsub.f32 %v3211_v27, %v3237_v57  ;;  %v3422_v27 = vld [vmem:[#allocation2 + $0x9a8] sm:$0xff]  ;;  %v3413_v53 = vld [vmem:[#allocation2 + $0x960] sm:$0xff]  ;;  %v3412_v57 = vld [vmem:[#allocation2 + $0x958] sm:$0xff] }
0x1319   :  { %v3246_v40 = vpop.xlane.xlu1 %3245  ;;  %v3414_v44 = vld [vmem:[#allocation2 + $0x968] sm:$0xff] }
0x131a   :  { %5885 = vpow2.f32 %v3259_v47  ;;  %v3257_v1 = vmul.f32 1.442695, %v3249_v59  ;;  %v3252_v0 = vsub.f32 %v3226_v28, %v3246_v40  ;;  %v3421_v28 = vld [vmem:[#allocation2 + $0x9a0] sm:$0xff]  ;;  %v3411_v47 = vld [vmem:[#allocation2 + $0x950] sm:$0xff]  ;;  %v3410_v59 = vld [vmem:[#allocation2 + $0x948] sm:$0xff] }
0x131b   :  { %v3243_v2 = vpop.xlane.xlu0 %3242  ;;  %v3409_v40 = vld [vmem:[#allocation2 + $0x940] sm:$0xff] }
0x131c   :  { %5887 = vpow2.f32 %v3257_v1  ;;  %v3263_v10 = vmul.f32 1.442695, %v3252_v0  ;;  %v3251_v21 = vsub.f32 %v3221_v18, %v3243_v2  ;;  %v3420_v18 = vld [vmem:[#allocation2 + $0x998] sm:$0xff] }
0x131d   :  { %v3408_v1 = vld [vmem:[#allocation2 + $0x938] sm:$0xff] }
0x131e   :  { %5889 = vpow2.f32 %v3263_v10  ;;  %v3261_v12 = vmul.f32 1.442695, %v3251_v21 }
0x1320   :  { %5891 = vpow2.f32 %v3261_v12 }
0x1323   :  { %v5882_v22 = vpop.eup %5881 }
0x1324   :  { %v3268_v55 = vsel %vm609_vm4, %v5882_v22, 0.0 }
0x1325   :  { %v5884_v23 = vpop.eup %5883  ;;  %3269 = vadd.xlane.f32.xlu1 %v3268_v55  ;;  %v4116_v55 = vld [vmem:[#allocation2 + $0x9b8] ss:$0 sm:$0xff] }
0x1326   :  { %v3265_v4 = vsel %vm609_vm4, %v5884_v23, 0.0 }
0x1327   :  { %v5886_v56 = vpop.eup %5885  ;;  %3266 = vadd.xlane.f32.xlu0 %v3265_v4 }
0x1328   :  { %v3274_v5 = vsel %vm609_vm4, %v5886_v56, 0.0 }
0x1329   :  { %v5888_v25 = vpop.eup %5887  ;;  %3275 = vadd.xlane.f32.xlu1 %v3274_v5 }
0x132a   :  { %v3271_v34 = vsel %vm609_vm4, %v5888_v25, 0.0 }
0x132b   :  { %v5890_v37 = vpop.eup %5889  ;;  %3272 = vadd.xlane.f32.xlu0 %v3271_v34  ;;  %v2798_v34 = vadd.f32 %v6321_v42, %v4116_v55  ;;  %v2799_v42 = vadd.f32 %v4116_v55, %v6327_v48 }
0x132c   :  { %v3280_v20 = vsel %vm609_vm4, %v5890_v37, 0.0 }
0x132d   :  { %v5892_v3 = vpop.eup %5891  ;;  %3281 = vadd.xlane.f32.xlu1 %v3280_v20 }
0x132e   :  { %v3277_v49 = vsel %vm609_vm4, %v5892_v3, 0.0 }
0x132f   :  { %3278 = vadd.xlane.f32.xlu0 %v3277_v49  ;;  %v2797_v49 = vadd.f32 %v4116_v55, %v6323_v43 }
0x13ae   :  { %v3270_v50 = vpop.xlane.xlu1 %3269 }
0x13af   :  { %5893 = vrcp.f32 %v3270_v50 }
0x13b0   :  { %v3267_v61 = vpop.xlane.xlu0 %3266 }
0x13b1   :  { %5895 = vrcp.f32 %v3267_v61 }
0x13b2   :  { %v3276_v6 = vpop.xlane.xlu1 %3275 }
0x13b3   :  { %5897 = vrcp.f32 %v3276_v6 }
0x13b4   :  { %v3273_v8 = vpop.xlane.xlu0 %3272 }
0x13b5   :  { %5899 = vrcp.f32 %v3273_v8 }
0x13b6   :  { %v3282_v9 = vpop.xlane.xlu1 %3281 }
0x13b7   :  { %5901 = vrcp.f32 %v3282_v9 }
0x13b8   :  { %v3279_v63 = vpop.xlane.xlu0 %3278 }
0x13b9   :  { %5903 = vrcp.f32 %v3279_v63 }
0x13bc   :  { %v5894_v52 = vpop.eup %5893 }
0x13bd   :  { %v3286_v30 = vmul.f32 %v5894_v52, %v5882_v22 }
0x13be   :  { %v5896_v14 = vpop.eup %5895 }
0x13bf   :  { %v3284_v58 = vmul.f32 %v5896_v14, %v5884_v23  ;;  %v2796_v23 = vadd.f32 %v6317_v38, %v4116_v55  ;;  %v2800_v38 = vadd.f32 %v6325_v46, %v4116_v55  ;;  %v3640_v46 = vld [vmem:[#allocation2 + $0xa48] sm:$0xff]  ;;  %v3639_v14 = vld [vmem:[#allocation2 + $0xa40] sm:$0xff] }
0x13c0   :  { %v5898_v15 = vpop.eup %5897  ;;  %5657 = vmatprep.subr.mxu1 %v3640_v46 }
0x13c1   :  { %5607 = vmatprep.mubr.msk.f32.mxu0 %vm609_vm4, %v3284_v58  ;;  %v3290_v26 = vmul.f32 %v5898_v15, %v5886_v56  ;;  %v2795_v56 = vadd.f32 %v4116_v55, %v6319_v39  ;;  %5658 = vmatpush3.msra.mxu1 %v3640_v46  ;;  %v3632_v55 = vld [vmem:[#allocation2 + $0xa08] sm:$0xff] }
0x13c2   :  { %v5900_v31 = vpop.eup %5899  ;;  %5608 = vmatmul.mubr.msk.f32.vlgmr.msra.gmra.mxu0 %vm609_vm4, %v3286_v30  ;;  %5659 = vmatprep.subr.mxu1 %v3639_v14 }
0x13c3   :  { %v3288_v32 = vmul.f32 %v5900_v31, %v5888_v25  ;;  %5617 = vmatpush3.msra.mxu0 %v3423_v60  ;;  %5660 = vmatpush3.msra.mxu1 %v3639_v14 }
0x13c4   :  { %5618 = vmatprep.subr.mxu0 %v3422_v27  ;;  %v5902_v17 = vpop.eup %5901 }
0x13c5   :  { %5610 = vmatprep.mubr.msk.f32.mxu0 %vm609_vm4, %v3288_v32  ;;  %5619 = vmatpush3.msra.mxu0 %v3422_v27  ;;  %v3294_v33 = vmul.f32 %v5902_v17, %v5890_v37 }
0x13c6   :  { %v5904_v36 = vpop.eup %5903  ;;  %5611 = vmatmul.mubr.msk.f32.gmra.mxu0 %vm609_vm4, %v3290_v26  ;;  %5620 = vmatprep.subr.mxu0 %v3421_v28 }
0x13c7   :  { %v3292_v16 = vmul.f32 %v5904_v36, %v5892_v3  ;;  %5621 = vmatpush3.msra.mxu0 %v3421_v28 }
0x13c8   :  { %5622 = vmatprep.subr.mxu0 %v3420_v18 }
0x13c9   :  { %5613 = vmatprep.mubr.msk.f32.mxu0 %vm609_vm4, %v3292_v16  ;;  %5623 = vmatpush3.msra.mxu0 %v3420_v18 }
0x13ca   :  { %5614 = vmatmul.mubr.msk.f32.gmra.mxu0 %vm609_vm4, %v3294_v33  ;;  %5624 = vmatprep.subr.mxu0 %v3419_v51 }
0x13cb   :  { %5625 = vmatpush3.msra.mxu0 %v3419_v51 }
0x13cc   :  { %5626 = vmatprep.subr.mxu0 %v3418_v54 }
0x13cd   :  { %5627 = vmatpush3.msra.mxu0 %v3418_v54 }
0x13ce   :  { %5628 = vmatprep.subr.mxu0 %v3417_v35 }
0x13cf   :  { %5629 = vmatpush3.msra.mxu0 %v3417_v35 }
0x13d0   :  { %5630 = vmatprep.subr.mxu0 %v3416_v19 }
0x13d1   :  { %5631 = vmatpush3.msra.mxu0 %v3416_v19 }
0x13d2   :  { %5632 = vmatprep.subr.mxu0 %v3415_v41 }
0x13d3   :  { %5633 = vmatpush3.msra.mxu0 %v3415_v41 }
0x13d4   :  { %5634 = vmatprep.subr.mxu0 %v3414_v44 }
0x13d5   :  { %5635 = vmatpush3.msra.mxu0 %v3414_v44 }
0x13d6   :  { %5636 = vmatprep.subr.mxu0 %v3413_v53 }
0x13d7   :  { %5637 = vmatpush3.msra.mxu0 %v3413_v53 }
0x13d8   :  { %5638 = vmatprep.subr.mxu0 %v3412_v57 }
0x13d9   :  { %5639 = vmatpush3.msra.mxu0 %v3412_v57 }
0x13da   :  { %5640 = vmatprep.subr.mxu0 %v3411_v47 }
0x13db   :  { %5641 = vmatpush3.msra.mxu0 %v3411_v47 }
0x13dc   :  { %5642 = vmatprep.subr.mxu0 %v3410_v59 }
0x13dd   :  { %5643 = vmatpush3.msra.mxu0 %v3410_v59 }
0x13de   :  { %5644 = vmatprep.subr.mxu0 %v3409_v40 }
0x13df   :  { %5645 = vmatpush3.msra.mxu0 %v3409_v40 }
0x13e0   :  { %5646 = vmatprep.subr.mxu0 %v3408_v1 }
0x13e1   :  { %5647 = vmatpush3.msra.mxu0 %v3408_v1 }
0x1482   :  { %v5609_v0 = vpop.f32.mrf.mxu0 }
0x1484   :  { %v3379_v2 = vpop.f32.mrf.mxu0 }
0x1485   :  { %5648 = vmatprep.mubr.f32.mxu0 %v3379_v2  ;;  %v3637_v2 = vld [vmem:[#allocation2 + $0xa30] sm:$0xff] }
0x1486   :  { %v5612_v10 = vpop.f32.mrf.mxu0  ;;  %5649 = vmatmul.mubr.f32.vlgmr.msra.gmra.mxu0 %v5609_v0 }
0x1488   :  { %v3389_v21 = vpop.f32.mrf.mxu0 }
0x1489   :  { %5651 = vmatprep.mubr.f32.mxu0 %v3389_v21  ;;  %v3635_v21 = vld [vmem:[#allocation2 + $0xa20] sm:$0xff] }
0x148a   :  { %v5615_v12 = vpop.f32.mrf.mxu0  ;;  %5652 = vmatmul.mubr.f32.gmra.mxu0 %v5612_v10  ;;  %v3636_v10 = vld [vmem:[#allocation2 + $0xa28] sm:$0xff] }
0x148c   :  { %v3399_v22 = vpop.f32.mrf.mxu0 }
0x148d   :  { %5654 = vmatprep.mubr.f32.mxu0 %v3399_v22  ;;  %v3633_v22 = vld [vmem:[#allocation2 + $0xa10] sm:$0xff] }
0x148e   :  { %5655 = vmatmul.mubr.f32.gmra.mxu0 %v5615_v12  ;;  %v3634_v12 = vld [vmem:[#allocation2 + $0xa18] sm:$0xff] }
0x1546   :  { %v5650_v4 = vpop.f32.mrf.mxu0 }
0x1547   :  { %v3520_v5 = vadd.f32 %v5650_v4, %v2796_v23  ;;  %v3631_v23 = vld [vmem:[#allocation2 + $0xa00] sm:$0xff]  ;;  %v3630_v4 = vld [vmem:[#allocation2 + $0x9f8] sm:$0xff] }
0x1548   :  { %v3490_v25 = vpop.f32.mrf.mxu0 }
0x1549   :  { %v3519_v37 = vadd.f32 %v3490_v25, %v2795_v56  ;;  %v3526_v20 = vadd.f32 %v3520_v5, %v6232_v45  ;;  %v3629_v56 = vld [vmem:[#allocation2 + $0x9f0] sm:$0xff]  ;;  %v3628_v5 = vld [vmem:[#allocation2 + $0x9e8] sm:$0xff]  ;;  %v3627_v25 = vld [vmem:[#allocation2 + $0x9e0] sm:$0xff] }
0x154a   :  { %v5653_v3 = vpop.f32.mrf.mxu0 }
0x154b   :  { %v3522_v60 = vadd.f32 %v5653_v3, %v2798_v34  ;;  %3533 = vadd.xlane.f32.xlu1 %v3526_v20  ;;  %v3525_v50 = vadd.f32 %v3519_v37, %v6229_v7  ;;  %v3626_v34 = vld [vmem:[#allocation2 + $0x9d8] sm:$0xff]  ;;  %v3625_v37 = vld [vmem:[#allocation2 + $0x9d0] sm:$0xff]  ;;  %v3761_v3 = vld [vmem:[#allocation2 + $0xac8] sm:$0xff] }
0x154c   :  { %v3500_v61 = vpop.f32.mrf.mxu0 }
0x154d   :  { %v3521_v6 = vadd.f32 %v3500_v61, %v2797_v49  ;;  %3531 = vadd.xlane.f32.xlu0 %v3525_v50  ;;  %v3528_v39 = vadd.f32 %v3522_v60, %v6242_v62  ;;  %v3638_v62 = vld [vmem:[#allocation2 + $0xa38] sm:$0xff]  ;;  %v3760_v49 = vld [vmem:[#allocation2 + $0xac0] sm:$0xff]  ;;  %v3757_v61 = vld [vmem:[#allocation2 + $0xaa8] sm:$0xff] }
0x154e   :  { %v5656_v8 = vpop.f32.mrf.mxu0  ;;  %5661 = vmatprep.subr.mxu1 %v3638_v62  ;;  %v3759_v60 = vld [vmem:[#allocation2 + $0xab8] sm:$0xff] }
0x154f   :  { %v3524_v9 = vadd.f32 %v5656_v8, %v2800_v38  ;;  %3537 = vadd.xlane.f32.xlu1 %v3528_v39  ;;  %v3527_v45 = vadd.f32 %v3521_v6, %v6239_v24  ;;  %5662 = vmatpush3.msra.mxu1 %v3638_v62  ;;  %v3756_v38 = vld [vmem:[#allocation2 + $0xaa0] sm:$0xff]  ;;  %v3755_v6 = vld [vmem:[#allocation2 + $0xa98] sm:$0xff]  ;;  %v3753_v8 = vld [vmem:[#allocation2 + $0xa88] sm:$0xff] }
0x1550   :  { %v3510_v63 = vpop.f32.mrf.mxu0  ;;  %5663 = vmatprep.subr.mxu1 %v3637_v2 }
0x1551   :  { %v3523_v43 = vadd.f32 %v3510_v63, %v2799_v42  ;;  %3535 = vadd.xlane.f32.xlu0 %v3527_v45  ;;  %v3530_v52 = vadd.f32 %v3524_v9, %v6250_v13  ;;  %5664 = vmatpush3.msra.mxu1 %v3637_v2  ;;  %v3752_v42 = vld [vmem:[#allocation2 + $0xa80] sm:$0xff]  ;;  %v3751_v9 = vld [vmem:[#allocation2 + $0xa78] sm:$0xff] }
0x1552   :  { %5665 = vmatprep.subr.mxu1 %v3636_v10 }
0x1553   :  { %3541 = vadd.xlane.f32.xlu1 %v3530_v52  ;;  %v3529_v7 = vadd.f32 %v3523_v43, %v6246_v11  ;;  %5666 = vmatpush3.msra.mxu1 %v3636_v10 }
0x1554   :  { %5667 = vmatprep.subr.mxu1 %v3635_v21 }
0x1555   :  { %3539 = vadd.xlane.f32.xlu0 %v3529_v7  ;;  %5668 = vmatpush3.msra.mxu1 %v3635_v21 }
0x1556   :  { %5669 = vmatprep.subr.mxu1 %v3634_v12 }
0x1557   :  { %5670 = vmatpush3.msra.mxu1 %v3634_v12 }
0x1558   :  { %5671 = vmatprep.subr.mxu1 %v3633_v22 }
0x1559   :  { %5672 = vmatpush3.msra.mxu1 %v3633_v22 }
0x155a   :  { %5673 = vmatprep.subr.mxu1 %v3632_v55 }
0x155b   :  { %5674 = vmatpush3.msra.mxu1 %v3632_v55 }
0x155c   :  { %5675 = vmatprep.subr.mxu1 %v3631_v23 }
0x155d   :  { %5676 = vmatpush3.msra.mxu1 %v3631_v23 }
0x155e   :  { %5677 = vmatprep.subr.mxu1 %v3630_v4 }
0x155f   :  { %5678 = vmatpush3.msra.mxu1 %v3630_v4 }
0x1560   :  { %5679 = vmatprep.subr.mxu1 %v3629_v56 }
0x1561   :  { %5680 = vmatpush3.msra.mxu1 %v3629_v56  ;;  %v3750_v56 = vld [vmem:[#allocation2 + $0xa70] sm:$0xff] }
0x1562   :  { %5681 = vmatprep.subr.mxu1 %v3628_v5 }
0x1563   :  { %5682 = vmatpush3.msra.mxu1 %v3628_v5  ;;  %v3748_v5 = vld [vmem:[#allocation2 + $0xa60] sm:$0xff] }
0x1564   :  { %5683 = vmatprep.subr.mxu1 %v3627_v25 }
0x1565   :  { %5684 = vmatpush3.msra.mxu1 %v3627_v25  ;;  %v4125_v25 = vld [vmem:[#allocation2 + $0xa50] ss:$0 sm:$0xff] }
0x1566   :  { %5685 = vmatprep.subr.mxu1 %v3626_v34 }
0x1567   :  { %5686 = vmatpush3.msra.mxu1 %v3626_v34 }
0x1568   :  { %5687 = vmatprep.subr.mxu1 %v3625_v37 }
0x1569   :  { %5688 = vmatpush3.msra.mxu1 %v3625_v37 }
0x15d4   :  { %v3534_v48 = vpop.xlane.xlu1 %3533 }
0x15d5   :  { %v3544_v24 = vmul.f32 0.03125, %v3534_v48 }
0x15d6   :  { %v3532_v58 = vpop.xlane.xlu0 %3531 }
0x15d7   :  { %v3550_v30 = vsub.f32 %v3526_v20, %v3544_v24  ;;  %v3543_v15 = vmul.f32 0.03125, %v3532_v58  ;;  %v3762_v20 = vld [vmem:[#allocation2 + $0xad0] sm:$0xff] }
0x15d8   :  { %v3538_v27 = vpop.xlane.xlu1 %3537  ;;  %5698 = vmatprep.subr.mxu0 %v3762_v20 }
0x15d9   :  { %v3549_v13 = vsub.f32 %v3525_v50, %v3543_v15  ;;  %v3546_v31 = vmul.f32 0.03125, %v3538_v27  ;;  %v6371_v11 = vmul.f32 %v6146_v29, %v3550_v30  ;;  %5699 = vmatpush3.msra.mxu0 %v3762_v20  ;;  %v3758_v50 = vld [vmem:[#allocation2 + $0xab0] sm:$0xff] }
0x15da   :  { %v3536_v32 = vpop.xlane.xlu0 %3535  ;;  %5700 = vmatprep.subr.mxu0 %v3761_v3 }
0x15db   :  { %v3552_v28 = vsub.f32 %v3528_v39, %v3546_v31  ;;  %v3545_v26 = vmul.f32 0.03125, %v3536_v32  ;;  %v3562_v17 = vmul.f32 %v6371_v11, %v6371_v11  ;;  %v6376_v18 = vmul.f32 %v6146_v29, %v3549_v13  ;;  %5701 = vmatpush3.msra.mxu0 %v3761_v3  ;;  %v3754_v39 = vld [vmem:[#allocation2 + $0xa90] sm:$0xff] }
0x15dc   :  { %v3542_v36 = vpop.xlane.xlu1 %3541  ;;  %5702 = vmatprep.subr.mxu0 %v3760_v49 }
0x15dd   :  { %v3551_v16 = vsub.f32 %v3527_v45, %v3545_v26  ;;  %v3548_v51 = vmul.f32 0.03125, %v3542_v36  ;;  %3569 = vadd.xlane.f32.xlu1 %v3562_v17  ;;  %v3561_v33 = vmul.f32 %v6376_v18, %v6376_v18  ;;  %v6381_v54 = vmul.f32 %v6146_v29, %v3552_v28  ;;  %5703 = vmatpush3.msra.mxu0 %v3760_v49  ;;  %v4123_v36 = vld [vmem:[#allocation2 + $0x9c0] ss:$0 sm:$0xff] }
0x15de   :  { %v3540_v35 = vpop.xlane.xlu0 %3539  ;;  %5704 = vmatprep.subr.mxu0 %v3759_v60 }
0x15df   :  { %v3554_v19 = vsub.f32 %v3530_v52, %v3548_v51  ;;  %v3547_v41 = vmul.f32 0.03125, %v3540_v35  ;;  %3567 = vadd.xlane.f32.xlu0 %v3561_v33  ;;  %v3564_v44 = vmul.f32 %v6381_v54, %v6381_v54  ;;  %v6386_v53 = vmul.f32 %v6146_v29, %v3551_v16  ;;  %5705 = vmatpush3.msra.mxu0 %v3759_v60 }
0x15e0   :  { %5706 = vmatprep.subr.mxu0 %v3758_v50 }
0x15e1   :  { %v3553_v57 = vsub.f32 %v3529_v7, %v3547_v41  ;;  %3573 = vadd.xlane.f32.xlu1 %v3564_v44  ;;  %v3563_v47 = vmul.f32 %v6386_v53, %v6386_v53  ;;  %v6391_v59 = vmul.f32 %v6146_v29, %v3554_v19  ;;  %5707 = vmatpush3.msra.mxu0 %v3758_v50  ;;  %v4124_v41 = vld [vmem:[#allocation2 + $0x9c8] ss:$0 sm:$0xff] }
0x15e2   :  { %5708 = vmatprep.subr.mxu0 %v3757_v61 }
0x15e3   :  { %3571 = vadd.xlane.f32.xlu0 %v3563_v47  ;;  %v3566_v40 = vmul.f32 %v6391_v59, %v6391_v59  ;;  %v6396_v1 = vmul.f32 %v6146_v29, %v3553_v57  ;;  %5709 = vmatpush3.msra.mxu0 %v3757_v61 }
0x15e4   :  { %5710 = vmatprep.subr.mxu0 %v3756_v38 }
0x15e5   :  { %3577 = vadd.xlane.f32.xlu1 %v3566_v40  ;;  %v3565_v0 = vmul.f32 %v6396_v1, %v6396_v1  ;;  %5711 = vmatpush3.msra.mxu0 %v3756_v38 }
0x15e6   :  { %5712 = vmatprep.subr.mxu0 %v3755_v6 }
0x15e7   :  { %3575 = vadd.xlane.f32.xlu0 %v3565_v0  ;;  %5713 = vmatpush3.msra.mxu0 %v3755_v6 }
0x15e8   :  { %5714 = vmatprep.subr.mxu0 %v3754_v39 }
0x15e9   :  { %5715 = vmatpush3.msra.mxu0 %v3754_v39 }
0x15ea   :  { %5716 = vmatprep.subr.mxu0 %v3753_v8 }
0x15eb   :  { %5717 = vmatpush3.msra.mxu0 %v3753_v8 }
0x15ec   :  { %5718 = vmatprep.subr.mxu0 %v3752_v42 }
0x15ed   :  { %5719 = vmatpush3.msra.mxu0 %v3752_v42 }
0x15ee   :  { %5720 = vmatprep.subr.mxu0 %v3751_v9 }
0x15ef   :  { %5721 = vmatpush3.msra.mxu0 %v3751_v9 }
0x15f0   :  { %5722 = vmatprep.subr.mxu0 %v3750_v56 }
0x15f1   :  { %5723 = vmatpush3.msra.mxu0 %v3750_v56 }
0x1666   :  { %v3570_v45 = vpop.xlane.xlu1 %3569 }
0x1667   :  { %v3580_v63 = vmul.f32 0.03125, %v3570_v45 }
0x1668   :  { %v3568_v43 = vpop.xlane.xlu0 %3567 }
0x1669   :  { %v3586_v52 = vadd.f32 1e-05, %v3580_v63  ;;  %v3579_v7 = vmul.f32 0.03125, %v3568_v43 }
0x166a   :  { %v3574_v46 = vpop.xlane.xlu1 %3573 }
0x166b   :  { %5905 = vrsqrt.f32 %v3586_v52  ;;  %v3585_v14 = vadd.f32 1e-05, %v3579_v7  ;;  %v3582_v62 = vmul.f32 0.03125, %v3574_v46  ;;  %v4126_v7 = vld [vmem:[#allocation2 + $0xad8] ss:$0 sm:$0xff] }
0x166c   :  { %v3572_v48 = vpop.xlane.xlu0 %3571 }
0x166d   :  { %5907 = vrsqrt.f32 %v3585_v14  ;;  %v3588_v24 = vadd.f32 1e-05, %v3582_v62  ;;  %v3581_v58 = vmul.f32 0.03125, %v3572_v48 }
0x166e   :  { %v3578_v30 = vpop.xlane.xlu1 %3577 }
0x166f   :  { %5909 = vrsqrt.f32 %v3588_v24  ;;  %v3587_v15 = vadd.f32 1e-05, %v3581_v58  ;;  %v3584_v27 = vmul.f32 0.03125, %v3578_v30 }
0x1670   :  { %v3576_v13 = vpop.xlane.xlu0 %3575 }
0x1671   :  { %5911 = vrsqrt.f32 %v3587_v15  ;;  %v3590_v31 = vadd.f32 1e-05, %v3584_v27  ;;  %v3583_v32 = vmul.f32 0.03125, %v3576_v13 }
0x1673   :  { %5913 = vrsqrt.f32 %v3590_v31  ;;  %v3589_v28 = vadd.f32 1e-05, %v3583_v32 }
0x1675   :  { %5915 = vrsqrt.f32 %v3589_v28 }
0x1678   :  { %v5906_v26 = vpop.eup %5905 }
0x1679   :  { %v3598_v17 = vmul.f32 %v5906_v26, %v6371_v11 }
0x167a   :  { %v5908_v16 = vpop.eup %5907 }
0x167b   :  { %v3597_v51 = vmul.f32 %v5908_v16, %v6376_v18  ;;  %v3609_v35 = vmul.f32 %v4123_v36, %v3598_v17 }
0x167c   :  { %v5910_v33 = vpop.eup %5909 }
0x167d   :  { %v3608_v19 = vmul.f32 %v4123_v36, %v3597_v51  ;;  %v3600_v44 = vmul.f32 %v5910_v33, %v6381_v54  ;;  %v3620_v2 = vadd.f32 %v4124_v41, %v3609_v35  ;;  %v3978_v33 = vld [vmem:[#allocation2 + $0xb68] sm:$0xff]  ;;  %v3977_v35 = vld [vmem:[#allocation2 + $0xb60] sm:$0xff] }
0x167e   :  { %v5912_v57 = vpop.eup %5911  ;;  %5739 = vmatprep.subr.mxu1 %v3978_v33 }
0x167f   :  { %v6403_v47 = vadd.f32 %v4124_v41, %v3608_v19  ;;  %v3599_v40 = vmul.f32 %v5912_v57, %v6386_v53  ;;  %v3611_v10 = vmul.f32 %v4123_v36, %v3600_v44  ;;  %v3976_v19 = vld [vmem:[#allocation2 + $0xb58] sm:$0xff] }
0x1680   :  { %v5914_v0 = vpop.eup %5913 }
0x1681   :  { %5689 = vmatprep.mubr.f32.mxu1 %v6403_v47  ;;  %v3610_v11 = vmul.f32 %v4123_v36, %v3599_v40  ;;  %v3602_v21 = vmul.f32 %v5914_v0, %v6391_v59  ;;  %v3622_v54 = vadd.f32 %v4124_v41, %v3611_v10  ;;  %v3749_v59 = vld [vmem:[#allocation2 + $0xa68] sm:$0xff] }
0x1682   :  { %v5916_v18 = vpop.eup %5915  ;;  %5690 = vmatmul.mubr.f32.vlgmr.msra.gmra.mxu1 %v3620_v2  ;;  %5724 = vmatprep.subr.mxu0 %v3749_v59 }
0x1683   :  { %v6408_v12 = vadd.f32 %v4124_v41, %v3610_v11  ;;  %v3601_v22 = vmul.f32 %v5916_v18, %v6396_v1  ;;  %v3613_v55 = vmul.f32 %v4123_v36, %v3602_v21  ;;  %5725 = vmatpush3.msra.mxu0 %v3749_v59  ;;  %v3747_v1 = vld [vmem:[#allocation2 + $0xa58] sm:$0xff]  ;;  %5740 = vmatpush3.msra.mxu1 %v3978_v33 }
0x1684   :  { %5726 = vmatprep.subr.mxu0 %v3748_v5  ;;  %5741 = vmatprep.subr.mxu1 %v3977_v35 }
0x1685   :  { %5692 = vmatprep.mubr.f32.mxu1 %v6408_v12  ;;  %v3612_v23 = vmul.f32 %v4123_v36, %v3601_v22  ;;  %v3624_v4 = vadd.f32 %v4124_v41, %v3613_v55  ;;  %5727 = vmatpush3.msra.mxu0 %v3748_v5 }
0x1686   :  { %5693 = vmatmul.mubr.f32.gmra.mxu1 %v3622_v54  ;;  %5728 = vmatprep.subr.mxu0 %v3747_v1 }
0x1687   :  { %v6412_v53 = vadd.f32 %v4124_v41, %v3612_v23  ;;  %5729 = vmatpush3.msra.mxu0 %v3747_v1  ;;  %5742 = vmatpush3.msra.mxu1 %v3977_v35 }
0x1688   :  { %5743 = vmatprep.subr.mxu1 %v3976_v19 }
0x1689   :  { %5695 = vmatprep.mubr.f32.mxu1 %v6412_v53  ;;  %5744 = vmatpush3.msra.mxu1 %v3976_v19  ;;  %v4127_v19 = vld [vmem:[#allocation2 + $0xae0] ss:$0 sm:$0xff] }
0x168a   :  { %5696 = vmatmul.mubr.f32.gmra.mxu1 %v3624_v4 }
0x1742   :  { %v5691_v34 = vpop.f32.mrf.mxu1 }
0x1743   :  { %v3718_v37 = vadd.f32 %v5691_v34, %v4125_v25 }
0x1744   :  { %v3712_v20 = vpop.f32.mrf.mxu1 }
0x1745   :  { %v3713_v3 = vadd.f32 %v4125_v25, %v3712_v20  ;;  %v3742_v50 = vmax.f32 %v3718_v37, 0.0 }
0x1746   :  { %v5694_v49 = vpop.f32.mrf.mxu1 }
0x1747   :  { %v3741_v60 = vmax.f32 %v3713_v3, 0.0  ;;  %v3728_v61 = vadd.f32 %v5694_v49, %v4125_v25 }
0x1748   :  { %v3722_v38 = vpop.f32.mrf.mxu1 }
0x1749   :  { %v3723_v6 = vadd.f32 %v4125_v25, %v3722_v38  ;;  %5730 = vmatprep.mubr.f32.mxu0 %v3741_v60  ;;  %v3744_v42 = vmax.f32 %v3728_v61, 0.0  ;;  %v3975_v61 = vld [vmem:[#allocation2 + $0xb50] sm:$0xff]  ;;  %v3974_v38 = vld [vmem:[#allocation2 + $0xb48] sm:$0xff] }
0x174a   :  { %v5697_v39 = vpop.f32.mrf.mxu1  ;;  %5731 = vmatmul.mubr.f32.vlgmr.msra.gmra.mxu0 %v3742_v50  ;;  %5745 = vmatprep.subr.mxu1 %v3975_v61 }
0x174b   :  { %v3743_v8 = vmax.f32 %v3723_v6, 0.0  ;;  %v3738_v9 = vadd.f32 %v5697_v39, %v4125_v25  ;;  %5746 = vmatpush3.msra.mxu1 %v3975_v61  ;;  %v3973_v6 = vld [vmem:[#allocation2 + $0xb40] sm:$0xff]  ;;  %v3972_v39 = vld [vmem:[#allocation2 + $0xb38] sm:$0xff] }
0x174c   :  { %v3732_v45 = vpop.f32.mrf.mxu1  ;;  %5747 = vmatprep.subr.mxu1 %v3974_v38 }
0x174d   :  { %v3733_v63 = vadd.f32 %v4125_v25, %v3732_v45  ;;  %5733 = vmatprep.mubr.f32.mxu0 %v3743_v8  ;;  %v3746_v52 = vmax.f32 %v3738_v9, 0.0  ;;  %5748 = vmatpush3.msra.mxu1 %v3974_v38  ;;  %v3971_v8 = vld [vmem:[#allocation2 + $0xb30] sm:$0xff]  ;;  %v3968_v9 = vld [vmem:[#allocation2 + $0xb18] sm:$0xff] }
0x174e   :  { %5734 = vmatmul.mubr.f32.gmra.mxu0 %v3744_v42  ;;  %5749 = vmatprep.subr.mxu1 %v3973_v6  ;;  %v3969_v42 = vld [vmem:[#allocation2 + $0xb20] sm:$0xff]  ;;  %v3967_v45 = vld [vmem:[#allocation2 + $0xb10] sm:$0xff] }
0x174f   :  { %v3745_v43 = vmax.f32 %v3733_v63, 0.0  ;;  %5750 = vmatpush3.msra.mxu1 %v3973_v6  ;;  %v3966_v63 = vld [vmem:[#allocation2 + $0xb08] sm:$0xff] }
0x1750   :  { %5751 = vmatprep.subr.mxu1 %v3972_v39 }
0x1751   :  { %5736 = vmatprep.mubr.f32.mxu0 %v3745_v43  ;;  %5752 = vmatpush3.msra.mxu1 %v3972_v39  ;;  %v3965_v43 = vld [vmem:[#allocation2 + $0xb00] sm:$0xff] }
0x1752   :  { %5737 = vmatmul.mubr.f32.gmra.mxu0 %v3746_v52  ;;  %5753 = vmatprep.subr.mxu1 %v3971_v8  ;;  %v3964_v52 = vld [vmem:[#allocation2 + $0xaf8] sm:$0xff] }
0x1753   :  { %5754 = vmatpush3.msra.mxu1 %v3971_v8 }
0x180a   :  { %v5732_v46 = vpop.f32.mrf.mxu0 }
0x180b   :  { %v3840_v14 = vadd.f32 %v5732_v46, %v4126_v7 }
0x180c   :  { %v3834_v62 = vpop.f32.mrf.mxu0 }
0x180d   :  { %v3835_v48 = vadd.f32 %v4126_v7, %v3834_v62  ;;  %v3864_v24 = vadd.f32 %v3840_v14, %v3620_v2 }
0x180e   :  { %v5735_v58 = vpop.f32.mrf.mxu0 }
0x180f   :  { %v3850_v30 = vadd.f32 %v5735_v58, %v4126_v7  ;;  %3871 = vadd.xlane.f32.xlu1 %v3864_v24  ;;  %v3863_v15 = vadd.f32 %v3835_v48, %v6403_v47 }
0x1810   :  { %v3844_v27 = vpop.f32.mrf.mxu0 }
0x1811   :  { %v3845_v13 = vadd.f32 %v4126_v7, %v3844_v27  ;;  %3869 = vadd.xlane.f32.xlu0 %v3863_v15  ;;  %v3866_v31 = vadd.f32 %v3850_v30, %v3622_v54 }
0x1812   :  { %v5738_v32 = vpop.f32.mrf.mxu0 }
0x1813   :  { %v3860_v28 = vadd.f32 %v5738_v32, %v4126_v7  ;;  %3875 = vadd.xlane.f32.xlu1 %v3866_v31  ;;  %v3865_v26 = vadd.f32 %v3845_v13, %v6408_v12 }
0x1814   :  { %v3854_v17 = vpop.f32.mrf.mxu0 }
0x1815   :  { %v3855_v36 = vadd.f32 %v4126_v7, %v3854_v17  ;;  %3873 = vadd.xlane.f32.xlu0 %v3865_v26  ;;  %v3868_v16 = vadd.f32 %v3860_v28, %v3624_v4  ;;  %v3963_v7 = vld [vmem:[#allocation2 + $0xaf0] sm:$0xff] }
0x1817   :  { %3879 = vadd.xlane.f32.xlu1 %v3868_v16  ;;  %v3867_v51 = vadd.f32 %v3855_v36, %v6412_v53 }
0x1819   :  { %3877 = vadd.xlane.f32.xlu0 %v3867_v51 }
0x1898   :  { %v3872_v41 = vpop.xlane.xlu1 %3871 }
0x1899   :  { %v3882_v44 = vmul.f32 0.03125, %v3872_v41 }
0x189a   :  { %v3870_v57 = vpop.xlane.xlu0 %3869 }
0x189b   :  { %v3888_v47 = vsub.f32 %v3864_v24, %v3882_v44  ;;  %v3881_v40 = vmul.f32 0.03125, %v3870_v57 }
0x189c   :  { %v3876_v0 = vpop.xlane.xlu1 %3875 }
0x189d   :  { %v3887_v2 = vsub.f32 %v3863_v15, %v3881_v40  ;;  %v3884_v10 = vmul.f32 0.03125, %v3876_v0  ;;  %v6419_v11 = vmul.f32 %v6146_v29, %v3888_v47  ;;  %v4128_v0 = vld [vmem:[#allocation2 + $0xae8] ss:$0 sm:$0xff] }
0x189e   :  { %v3874_v21 = vpop.xlane.xlu0 %3873 }
0x189f   :  { %v3890_v18 = vsub.f32 %v3866_v31, %v3884_v10  ;;  %v3883_v12 = vmul.f32 0.03125, %v3874_v21  ;;  %v3900_v22 = vmul.f32 %v6419_v11, %v6419_v11  ;;  %v6424_v54 = vmul.f32 %v6146_v29, %v3887_v2 }
0x18a0   :  { %v3880_v55 = vpop.xlane.xlu1 %3879 }
0x18a1   :  { %v3889_v23 = vsub.f32 %v3865_v26, %v3883_v12  ;;  %v3886_v53 = vmul.f32 0.03125, %v3880_v55  ;;  %3907 = vadd.xlane.f32.xlu1 %v3900_v22  ;;  %v3899_v4 = vmul.f32 %v6424_v54, %v6424_v54  ;;  %v6429_v56 = vmul.f32 %v6146_v29, %v3890_v18 }
0x18a2   :  { %v3878_v59 = vpop.xlane.xlu0 %3877 }
0x18a3   :  { %v3892_v5 = vsub.f32 %v3868_v16, %v3886_v53  ;;  %v3885_v1 = vmul.f32 0.03125, %v3878_v59  ;;  %3905 = vadd.xlane.f32.xlu0 %v3899_v4  ;;  %v3902_v25 = vmul.f32 %v6429_v56, %v6429_v56  ;;  %v6434_v34 = vmul.f32 %v6146_v29, %v3889_v23 }
0x18a5   :  { %v3891_v37 = vsub.f32 %v3867_v51, %v3885_v1  ;;  %3911 = vadd.xlane.f32.xlu1 %v3902_v25  ;;  %v3901_v20 = vmul.f32 %v6434_v34, %v6434_v34  ;;  %v6439_v3 = vmul.f32 %v6146_v29, %v3892_v5 }
0x18a7   :  { %3909 = vadd.xlane.f32.xlu0 %v3901_v20  ;;  %v3904_v49 = vmul.f32 %v6439_v3, %v6439_v3  ;;  %v6444_v60 = vmul.f32 %v6146_v29, %v3891_v37  ;;  %v3970_v29 = vld [vmem:[#allocation2 + $0xb28] sm:$0xff] }
0x18a8   :  { %5755 = vmatprep.subr.mxu1 %v3970_v29 }
0x18a9   :  { %3915 = vadd.xlane.f32.xlu1 %v3904_v49  ;;  %v3903_v50 = vmul.f32 %v6444_v60, %v6444_v60  ;;  %5756 = vmatpush3.msra.mxu1 %v3970_v29 }
0x18aa   :  { %5757 = vmatprep.subr.mxu1 %v3969_v42 }
0x18ab   :  { %3913 = vadd.xlane.f32.xlu0 %v3903_v50  ;;  %5758 = vmatpush3.msra.mxu1 %v3969_v42 }
0x18ac   :  { %5759 = vmatprep.subr.mxu1 %v3968_v9 }
0x18ad   :  { %5760 = vmatpush3.msra.mxu1 %v3968_v9 }
0x18ae   :  { %5761 = vmatprep.subr.mxu1 %v3967_v45 }
0x18af   :  { %5762 = vmatpush3.msra.mxu1 %v3967_v45 }
0x18b0   :  { %5763 = vmatprep.subr.mxu1 %v3966_v63 }
0x18b1   :  { %5764 = vmatpush3.msra.mxu1 %v3966_v63 }
0x18b2   :  { %5765 = vmatprep.subr.mxu1 %v3965_v43 }
0x18b3   :  { %5766 = vmatpush3.msra.mxu1 %v3965_v43 }
0x18b4   :  { %5767 = vmatprep.subr.mxu1 %v3964_v52 }
0x18b5   :  { %5768 = vmatpush3.msra.mxu1 %v3964_v52 }
0x18b6   :  { %5769 = vmatprep.subr.mxu1 %v3963_v7 }
0x18b7   :  { %5770 = vmatpush3.msra.mxu1 %v3963_v7 }
0x192a   :  { %v3908_v46 = vpop.xlane.xlu1 %3907 }
0x192b   :  { %v3918_v14 = vmul.f32 0.03125, %v3908_v46 }
0x192c   :  { %v3906_v62 = vpop.xlane.xlu0 %3905 }
0x192d   :  { %v3924_v48 = vadd.f32 1e-05, %v3918_v14  ;;  %v3917_v24 = vmul.f32 0.03125, %v3906_v62 }
0x192e   :  { %v3912_v58 = vpop.xlane.xlu1 %3911 }
0x192f   :  { %5917 = vrsqrt.f32 %v3924_v48  ;;  %v3923_v30 = vadd.f32 1e-05, %v3917_v24  ;;  %v3920_v15 = vmul.f32 0.03125, %v3912_v58 }
0x1930   :  { %v3910_v27 = vpop.xlane.xlu0 %3909 }
0x1931   :  { %5919 = vrsqrt.f32 %v3923_v30  ;;  %v3926_v13 = vadd.f32 1e-05, %v3920_v15  ;;  %v3919_v31 = vmul.f32 0.03125, %v3910_v27 }
0x1932   :  { %v3916_v32 = vpop.xlane.xlu1 %3915 }
0x1933   :  { %5921 = vrsqrt.f32 %v3926_v13  ;;  %v3925_v28 = vadd.f32 1e-05, %v3919_v31  ;;  %v3922_v26 = vmul.f32 0.03125, %v3916_v32 }
0x1934   :  { %v3914_v17 = vpop.xlane.xlu0 %3913 }
0x1935   :  { %5923 = vrsqrt.f32 %v3925_v28  ;;  %v3928_v36 = vadd.f32 1e-05, %v3922_v26  ;;  %v3921_v16 = vmul.f32 0.03125, %v3914_v17 }
0x1937   :  { %5925 = vrsqrt.f32 %v3928_v36  ;;  %v3927_v51 = vadd.f32 1e-05, %v3921_v16 }
0x1939   :  { %5927 = vrsqrt.f32 %v3927_v51 }
0x193c   :  { %v5918_v33 = vpop.eup %5917 }
0x193d   :  { %v3936_v35 = vmul.f32 %v5918_v33, %v6419_v11 }
0x193e   :  { %v5920_v41 = vpop.eup %5919 }
0x193f   :  { %v3935_v44 = vmul.f32 %v5920_v41, %v6424_v54  ;;  %v3947_v47 = vmul.f32 %v4127_v19, %v3936_v35 }
0x1940   :  { %v5922_v57 = vpop.eup %5921 }
0x1941   :  { %v3946_v40 = vmul.f32 %v4127_v19, %v3935_v44  ;;  %v3938_v2 = vmul.f32 %v5922_v57, %v6429_v56  ;;  %v3958_v22 = vadd.f32 %v4128_v0, %v3947_v47 }
0x1942   :  { %v5924_v10 = vpop.eup %5923 }
0x1943   :  { %v3957_v21 = vadd.f32 %v4128_v0, %v3946_v40  ;;  %v3937_v18 = vmul.f32 %v5924_v10, %v6434_v34  ;;  %v3949_v55 = vmul.f32 %v4127_v19, %v3938_v2  ;;  %v4129_v34 = vld [vmem:[#allocation2 + $0xb70] ss:$0 sm:$0xff] }
0x1944   :  { %v5926_v12 = vpop.eup %5925 }
0x1945   :  { %5771 = vmatprep.mubr.f32.mxu1 %v3957_v21  ;;  %v3948_v23 = vmul.f32 %v4127_v19, %v3937_v18  ;;  %v3940_v11 = vmul.f32 %v5926_v12, %v6439_v3  ;;  %v3960_v59 = vadd.f32 %v4128_v0, %v3949_v55 }
0x1946   :  { %v5928_v53 = vpop.eup %5927  ;;  %5772 = vmatmul.mubr.f32.vlgmr.msra.gmra.mxu1 %v3958_v22 }
0x1947   :  { %v3959_v54 = vadd.f32 %v4128_v0, %v3948_v23  ;;  %v3939_v4 = vmul.f32 %v5928_v53, %v6444_v60  ;;  %v3951_v5 = vmul.f32 %v4127_v19, %v3940_v11 }
0x1949   :  { %5774 = vmatprep.mubr.f32.mxu1 %v3959_v54  ;;  %v3950_v56 = vmul.f32 %v4127_v19, %v3939_v4  ;;  %v3962_v25 = vadd.f32 %v4128_v0, %v3951_v5 }
0x194a   :  { %5775 = vmatmul.mubr.f32.gmra.mxu1 %v3960_v59 }
0x194b   :  { %v3961_v1 = vadd.f32 %v4128_v0, %v3950_v56 }
0x194d   :  { %5777 = vmatprep.mubr.f32.mxu1 %v3961_v1 }
0x194e   :  { %5778 = vmatmul.mubr.f32.gmra.mxu1 %v3962_v25 }
0x1a06   :  { %v5773_v37 = vpop.f32.mrf.mxu1 }
0x1a07   :  { %v4056_v20 = vadd.f32 %v5773_v37, %v4129_v34 }
0x1a08   :  { %v4050_v49 = vpop.f32.mrf.mxu1 }
0x1a09   :  { %4080 = vst [vmem:[%s6474_s2 + $0x8] sm:$0xff] %v4056_v20  ;;  %v4051_v3 = vadd.f32 %v4129_v34, %v4050_v49 }
0x1a0a   :  { %v5776_v50 = vpop.f32.mrf.mxu1 }
0x1a0b   :  { %4079 = vst [vmem:[%s6474_s2] sm:$0xff] %v4051_v3  ;;  %v4066_v60 = vadd.f32 %v5776_v50, %v4129_v34 }
0x1a0c   :  { %v4060_v61 = vpop.f32.mrf.mxu1 }
0x1a0d   :  { %4082 = vst [vmem:[%s6474_s2 + $0x18] sm:$0xff] %v4066_v60  ;;  %v4061_v38 = vadd.f32 %v4129_v34, %v4060_v61 }
0x1a0e   :  { %v5779_v6 = vpop.f32.mrf.mxu1 }
0x1a0f   :  { %4081 = vst [vmem:[%s6474_s2 + $0x10] sm:$0xff] %v4061_v38  ;;  %v4076_v39 = vadd.f32 %v5779_v6, %v4129_v34 }
0x1a10   :  { %v4070_v8 = vpop.f32.mrf.mxu1 }
0x1a11   :  { %4084 = vst [vmem:[%s6474_s2 + $0x28] sm:$0xff] %v4076_v39  ;;  %v4071_v29 = vadd.f32 %v4129_v34, %v4070_v8 }
0x1a13   :  { %4083 = vst [vmem:[%s6474_s2 + $0x20] sm:$0xff] %v4071_v29 }
0x1a14   :  { %4089 = vsyncpa [#allocation3], 1 }

</bundles_post_ra>
